<compile_context>
chip_gen: v7x
topology: tpu7x:2x2x1
jax: 0.10.0
libtpu: 0.0.40
codegen_flags: <defaults>
</compile_context>

<pallas_src>
import jax
import jax.numpy as jnp
from jax import lax
from jax.experimental import pallas as pl
from jax.experimental.pallas import tpu as pltpu


def _make_sepconv_kernel(H, W, C_in, C_out, k, stride, padding):
    """Builds the fused SepConv kernel body for fixed static shapes."""
    s, p = stride, padding
    H1 = (H + 2 * p - k) // s + 1          # after depthwise #1 (stride s)
    W1 = (W + 2 * p - k) // s + 1
    H2 = H1 + 2 * p - k + 1                # after depthwise #2 (stride 1)
    W2 = W1 + 2 * p - k + 1
    # Left spatial pad along W rounded up to a sublane multiple so scratch
    # stores are aligned; conv window reads start at column (wl - p + j).
    wl = ((p + 7) // 8) * 8

    def read_window(pad_ref, row, col, Ho, Wo, st):
        if st == 1:
            return pad_ref[row:row + Ho, col:col + Wo, :]
        return pad_ref[pl.ds(row, Ho, stride=st), pl.ds(col, Wo, stride=st), :]

    def kernel(x_ref, dw1_ref, pw1_ref, bn1s_ref, bn1b_ref,
               dw2_ref, pw2_ref, bn2s_ref, bn2b_ref,
               o_ref, pad1_ref, pad2_ref, dwo1_ref, dwo2_ref):
        # Zero the padded scratch images (borders must read as zeros).
        pad1_ref[...] = jnp.zeros_like(pad1_ref)
        pad2_ref[...] = jnp.zeros_like(pad2_ref)

        # ---- stage 1: ReLU, written into padded scratch (channels-last) ----
        x = x_ref[0].astype(jnp.float32)                       # (H, W, C_in)
        pad1_ref[p:p + H, wl:wl + W, :] = jnp.maximum(x, 0.0)

        # ---- stage 2: depthwise k x k, stride s (VPU madds over taps) ------
        acc1 = jnp.zeros((H1, W1, C_in), jnp.float32)
        for i in range(k):
            for j in range(k):
                w_ij = dw1_ref[i:i + 1, j:j + 1, :]            # (1, 1, C_in)
                acc1 = acc1 + read_window(pad1_ref, i, wl - p + j, H1, W1, s) * w_ij
        for h in range(H1):                                    # pack to 2D
            dwo1_ref[h * W1:(h + 1) * W1, :] = acc1[h]

        # ---- stage 3: 1x1 pointwise (MXU) + folded BN + ReLU ---------------
        y = jnp.dot(dwo1_ref[...], pw1_ref[...],
                    preferred_element_type=jnp.float32,
                    precision=lax.Precision.HIGHEST)           # (H1*W1, C_in)
        y = jnp.maximum(y * bn1s_ref[...] + bn1b_ref[...], 0.0)

        # ---- stage 4: unpack into second padded scratch --------------------
        for h in range(H1):
            pad2_ref[p + h, wl:wl + W1, :] = y[h * W1:(h + 1) * W1, :]

        # ---- stage 5: depthwise k x k, stride 1 ----------------------------
        acc2 = jnp.zeros((H2, W2, C_in), jnp.float32)
        for i in range(k):
            for j in range(k):
                w_ij = dw2_ref[i:i + 1, j:j + 1, :]
                acc2 = acc2 + read_window(pad2_ref, i, wl - p + j, H2, W2, 1) * w_ij
        for h in range(H2):
            dwo2_ref[h * W2:(h + 1) * W2, :] = acc2[h]

        # ---- stage 6: 1x1 pointwise (MXU) + folded BN ----------------------
        z = jnp.dot(dwo2_ref[...], pw2_ref[...],
                    preferred_element_type=jnp.float32,
                    precision=lax.Precision.HIGHEST)           # (H2*W2, C_out)
        o_ref[0] = (z * bn2s_ref[...] + bn2b_ref[...]).astype(o_ref.dtype)

    scratch = [
        pltpu.VMEM((H + 2 * p, wl + W + p, C_in), jnp.float32),    # padded img 1
        pltpu.VMEM((H1 + 2 * p, wl + W1 + p, C_in), jnp.float32),  # padded img 2
        pltpu.VMEM((H1 * W1, C_in), jnp.float32),                  # dw #1 output
        pltpu.VMEM((H2 * W2, C_in), jnp.float32),                  # dw #2 output
    ]
    return kernel, scratch, (H1, W1, H2, W2)


def sep_conv(x_nchw, params, *, kernel_size, stride, padding, eps=1e-5):
    """Pallas SepConv forward. Input/output in NCHW like the PyTorch module."""
    N, C_in, H, W = x_nchw.shape
    k = kernel_size
    C_out = params["pw2"].shape[0]

    # Kernel-friendly weight layouts (channels lane-dense).
    dw1_k = jnp.transpose(params["dw1"][:, 0, :, :], (1, 2, 0)).astype(jnp.float32)  # (k,k,Cin)
    dw2_k = jnp.transpose(params["dw2"][:, 0, :, :], (1, 2, 0)).astype(jnp.float32)
    pw1_k = jnp.transpose(params["pw1"][:, :, 0, 0], (1, 0)).astype(jnp.float32)     # (Cin,Cin)
    pw2_k = jnp.transpose(params["pw2"][:, :, 0, 0], (1, 0)).astype(jnp.float32)     # (Cin,Cout)

    def fold_bn(g, b, m, v):
        scale = (g / jnp.sqrt(v + eps)).astype(jnp.float32)
        bias = (b - m * scale).astype(jnp.float32)
        return scale.reshape(1, -1), bias.reshape(1, -1)

    bn1s, bn1b = fold_bn(params["bn1_gamma"], params["bn1_beta"],
                         params["bn1_mean"], params["bn1_var"])
    bn2s, bn2b = fold_bn(params["bn2_gamma"], params["bn2_beta"],
                         params["bn2_mean"], params["bn2_var"])

    kernel, scratch, (H1, W1, H2, W2) = _make_sepconv_kernel(
        H, W, C_in, C_out, k, stride, padding)

    x_nhwc = jnp.transpose(x_nchw, (0, 2, 3, 1)).astype(jnp.float32)

    out = pl.pallas_call(
        kernel,
        out_shape=jax.ShapeDtypeStruct((N, H2 * W2, C_out), jnp.float32),
        grid_spec=pltpu.PrefetchScalarGridSpec(
            num_scalar_prefetch=0,
            grid=(N,),
            in_specs=[
                pl.BlockSpec((1, H, W, C_in), lambda n: (n, 0, 0, 0)),
                pl.BlockSpec((k, k, C_in), lambda n: (0, 0, 0)),
                pl.BlockSpec((C_in, C_in), lambda n: (0, 0)),
                pl.BlockSpec((1, C_in), lambda n: (0, 0)),
                pl.BlockSpec((1, C_in), lambda n: (0, 0)),
                pl.BlockSpec((k, k, C_in), lambda n: (0, 0, 0)),
                pl.BlockSpec((C_in, C_out), lambda n: (0, 0)),
                pl.BlockSpec((1, C_out), lambda n: (0, 0)),
                pl.BlockSpec((1, C_out), lambda n: (0, 0)),
            ],
            out_specs=pl.BlockSpec((1, H2 * W2, C_out), lambda n: (n, 0, 0)),
            scratch_shapes=scratch,
        ),
        compiler_params=pltpu.CompilerParams(
            dimension_semantics=("parallel",),
        ),
    )(x_nhwc, dw1_k, pw1_k, bn1s, bn1b, dw2_k, pw2_k, bn2s, bn2b)

    out = out.reshape(N, H2, W2, C_out)
    return jnp.transpose(out, (0, 3, 1, 2))        # back to NCHW


def sep_conv_reference(x_nchw, params, *, stride, padding, eps=1e-5):
    """Pure-JAX reference (XLA convs) mirroring the PyTorch SepConv forward."""
    dn = ("NCHW", "OIHW", "NCHW")
    hp = lax.Precision.HIGHEST
    C_in = x_nchw.shape[1]

    def bn(y, g, b, m, v):
        inv = g / jnp.sqrt(v + eps)
        return (y - m[None, :, None, None]) * inv[None, :, None, None] \
            + b[None, :, None, None]

    y = jnp.maximum(x_nchw, 0.0)
    y = lax.conv_general_dilated(y, params["dw1"], (stride, stride),
                                 [(padding, padding)] * 2, dimension_numbers=dn,
                                 feature_group_count=C_in, precision=hp)
    y = lax.conv_general_dilated(y, params["pw1"], (1, 1), [(0, 0)] * 2,
                                 dimension_numbers=dn, precision=hp)
    y = bn(y, params["bn1_gamma"], params["bn1_beta"],
           params["bn1_mean"], params["bn1_var"])
    y = jnp.maximum(y, 0.0)
    y = lax.conv_general_dilated(y, params["dw2"], (1, 1),
                                 [(padding, padding)] * 2, dimension_numbers=dn,
                                 feature_group_count=C_in, precision=hp)
    y = lax.conv_general_dilated(y, params["pw2"], (1, 1), [(0, 0)] * 2,
                                 dimension_numbers=dn, precision=hp)
    y = bn(y, params["bn2_gamma"], params["bn2_beta"],
           params["bn2_mean"], params["bn2_var"])
    return y


if __name__ == "__main__":
    N, C_in, H, W = 2, 4, 16, 16
    C_out = 8
    kernel_size, stride, padding = 3, 1, 1

    keys = jax.random.split(jax.random.PRNGKey(0), 13)
    params = {
        "dw1": 0.3 * jax.random.normal(keys[0], (C_in, 1, kernel_size, kernel_size), jnp.float32),
        "pw1": 0.3 * jax.random.normal(keys[1], (C_in, C_in, 1, 1), jnp.float32),
        "bn1_gamma": 1.0 + 0.1 * jax.random.normal(keys[2], (C_in,), jnp.float32),
        "bn1_beta": 0.1 * jax.random.normal(keys[3], (C_in,), jnp.float32),
        "bn1_mean": 0.1 * jax.random.normal(keys[4], (C_in,), jnp.float32),
        "bn1_var": jax.random.uniform(keys[5], (C_in,), jnp.float32, 0.5, 1.5),
        "dw2": 0.3 * jax.random.normal(keys[6], (C_in, 1, kernel_size, kernel_size), jnp.float32),
        "pw2": 0.3 * jax.random.normal(keys[7], (C_out, C_in, 1, 1), jnp.float32),
        "bn2_gamma": 1.0 + 0.1 * jax.random.normal(keys[8], (C_out,), jnp.float32),
        "bn2_beta": 0.1 * jax.random.normal(keys[9], (C_out,), jnp.float32),
        "bn2_mean": 0.1 * jax.random.normal(keys[10], (C_out,), jnp.float32),
        "bn2_var": jax.random.uniform(keys[11], (C_out,), jnp.float32, 0.5, 1.5),
    }
    x = jax.random.normal(keys[12], (N, C_in, H, W), jnp.float32)

    y = sep_conv(x, params, kernel_size=kernel_size, stride=stride, padding=padding)
    jax.block_until_ready(y)

    y_ref = sep_conv_reference(x, params, stride=stride, padding=padding)
    assert y.shape == y_ref.shape == (N, C_out, H, W), y.shape
    max_err = float(jnp.max(jnp.abs(y - y_ref)))
    assert max_err < 1e-3, f"max abs err vs reference: {max_err}"
    print("KERNEL_OK")
</pallas_src>

<mosaic_0001>
module attributes {stable_mosaic.version = 11 : i64} {
  func.func @kernel(%arg0: i32, %arg1: memref<1x16x16x4xf32, #tpu.memory_space<vmem>>, %arg2: memref<3x3x4xf32, #tpu.memory_space<vmem>>, %arg3: memref<4x4xf32, #tpu.memory_space<vmem>>, %arg4: memref<1x4xf32, #tpu.memory_space<vmem>>, %arg5: memref<1x4xf32, #tpu.memory_space<vmem>>, %arg6: memref<3x3x4xf32, #tpu.memory_space<vmem>>, %arg7: memref<4x8xf32, #tpu.memory_space<vmem>>, %arg8: memref<1x8xf32, #tpu.memory_space<vmem>>, %arg9: memref<1x8xf32, #tpu.memory_space<vmem>>, %arg10: memref<1x256x8xf32, #tpu.memory_space<vmem>>, %arg11: memref<18x25x4xf32, #tpu.memory_space<vmem>>, %arg12: memref<18x25x4xf32, #tpu.memory_space<vmem>>, %arg13: memref<256x4xf32, #tpu.memory_space<vmem>>, %arg14: memref<256x4xf32, #tpu.memory_space<vmem>>) attributes {dimension_semantics = [#tpu.dimension_semantics<parallel>], iteration_bounds = array<i64: 2>, scalar_prefetch = 0 : i64, scratch_operands = 4 : i64, tpu.core_type = #tpu.core_type<tc>, window_params = [{transform_indices = @transform_0, window_bounds = array<i64: 1, 16, 16, 4>}, {pipeline_mode = #tpu.pipeline_mode<synchronous>, transform_indices = @transform_1, window_bounds = array<i64: 3, 3, 4>}, {pipeline_mode = #tpu.pipeline_mode<synchronous>, transform_indices = @transform_2, window_bounds = array<i64: 4, 4>}, {pipeline_mode = #tpu.pipeline_mode<synchronous>, transform_indices = @transform_3, window_bounds = array<i64: 1, 4>}, {pipeline_mode = #tpu.pipeline_mode<synchronous>, transform_indices = @transform_4, window_bounds = array<i64: 1, 4>}, {pipeline_mode = #tpu.pipeline_mode<synchronous>, transform_indices = @transform_5, window_bounds = array<i64: 3, 3, 4>}, {pipeline_mode = #tpu.pipeline_mode<synchronous>, transform_indices = @transform_6, window_bounds = array<i64: 4, 8>}, {pipeline_mode = #tpu.pipeline_mode<synchronous>, transform_indices = @transform_7, window_bounds = array<i64: 1, 8>}, {pipeline_mode = #tpu.pipeline_mode<synchronous>, transform_indices = @transform_8, window_bounds = array<i64: 1, 8>}, {transform_indices = @transform_9, window_bounds = array<i64: 1, 256, 8>}]} {
    %cst = arith.constant 0.000000e+00 : f32
    %0 = vector.broadcast %cst : f32 to vector<18x25x4xf32>
    %c0 = arith.constant 0 : index
    %c0_0 = arith.constant 0 : index
    %c0_1 = arith.constant 0 : index
    %1 = vector.load %arg11[%c0, %c0_0, %c0_1] : memref<18x25x4xf32, #tpu.memory_space<vmem>>, vector<18x25x4xf32>
    tpu.vector_store %arg11[%c0, %c0_0, %c0_1], %0 {strides = array<i32>} : memref<18x25x4xf32, #tpu.memory_space<vmem>>, vector<18x25x4xf32>,
    %cst_2 = arith.constant 0.000000e+00 : f32
    %2 = vector.broadcast %cst_2 : f32 to vector<18x25x4xf32>
    %c0_3 = arith.constant 0 : index
    %c0_4 = arith.constant 0 : index
    %c0_5 = arith.constant 0 : index
    %3 = vector.load %arg12[%c0_3, %c0_4, %c0_5] : memref<18x25x4xf32, #tpu.memory_space<vmem>>, vector<18x25x4xf32>
    tpu.vector_store %arg12[%c0_3, %c0_4, %c0_5], %2 {strides = array<i32>} : memref<18x25x4xf32, #tpu.memory_space<vmem>>, vector<18x25x4xf32>,
    %c0_6 = arith.constant 0 : index
    %c0_7 = arith.constant 0 : index
    %c0_8 = arith.constant 0 : index
    %c0_9 = arith.constant 0 : index
    %4 = vector.load %arg1[%c0_6, %c0_7, %c0_8, %c0_9] : memref<1x16x16x4xf32, #tpu.memory_space<vmem>>, vector<1x16x16x4xf32>
    %5 = vector.shape_cast %4 : vector<1x16x16x4xf32> to vector<16x16x4xf32>
    %cst_10 = arith.constant 0.000000e+00 : f32
    %6 = vector.broadcast %cst_10 : f32 to vector<16x16x4xf32>
    %7 = arith.maximumf %5, %6 : vector<16x16x4xf32>
    %c1 = arith.constant 1 : index
    %c8 = arith.constant 8 : index
    %c0_11 = arith.constant 0 : index
    %8 = vector.load %arg11[%c1, %c8, %c0_11] : memref<18x25x4xf32, #tpu.memory_space<vmem>>, vector<16x16x4xf32>
    tpu.vector_store %arg11[%c1, %c8, %c0_11], %7 {strides = array<i32>} : memref<18x25x4xf32, #tpu.memory_space<vmem>>, vector<16x16x4xf32>,
    %cst_12 = arith.constant 0.000000e+00 : f32
    %9 = vector.broadcast %cst_12 : f32 to vector<16x16x4xf32>
    %c0_13 = arith.constant 0 : index
    %c0_14 = arith.constant 0 : index
    %c0_15 = arith.constant 0 : index
    %10 = vector.load %arg2[%c0_13, %c0_14, %c0_15] : memref<3x3x4xf32, #tpu.memory_space<vmem>>, vector<1x1x4xf32>
    %c0_16 = arith.constant 0 : index
    %c7 = arith.constant 7 : index
    %c0_17 = arith.constant 0 : index
    %11 = vector.load %arg11[%c0_16, %c7, %c0_17] : memref<18x25x4xf32, #tpu.memory_space<vmem>>, vector<16x16x4xf32>
    %12 = vector.broadcast %10 : vector<1x1x4xf32> to vector<16x16x4xf32>
    %13 = arith.mulf %11, %12 : vector<16x16x4xf32>
    %14 = arith.addf %9, %13 : vector<16x16x4xf32>
    %c0_18 = arith.constant 0 : index
    %c1_19 = arith.constant 1 : index
    %c0_20 = arith.constant 0 : index
    %15 = vector.load %arg2[%c0_18, %c1_19, %c0_20] : memref<3x3x4xf32, #tpu.memory_space<vmem>>, vector<1x1x4xf32>
    %c0_21 = arith.constant 0 : index
    %c8_22 = arith.constant 8 : index
    %c0_23 = arith.constant 0 : index
    %16 = vector.load %arg11[%c0_21, %c8_22, %c0_23] : memref<18x25x4xf32, #tpu.memory_space<vmem>>, vector<16x16x4xf32>
    %17 = vector.broadcast %15 : vector<1x1x4xf32> to vector<16x16x4xf32>
    %18 = arith.mulf %16, %17 : vector<16x16x4xf32>
    %19 = arith.addf %14, %18 : vector<16x16x4xf32>
    %c0_24 = arith.constant 0 : index
    %c2 = arith.constant 2 : index
    %c0_25 = arith.constant 0 : index
    %20 = vector.load %arg2[%c0_24, %c2, %c0_25] : memref<3x3x4xf32, #tpu.memory_space<vmem>>, vector<1x1x4xf32>
    %c0_26 = arith.constant 0 : index
    %c9 = arith.constant 9 : index
    %c0_27 = arith.constant 0 : index
    %21 = vector.load %arg11[%c0_26, %c9, %c0_27] : memref<18x25x4xf32, #tpu.memory_space<vmem>>, vector<16x16x4xf32>
    %22 = vector.broadcast %20 : vector<1x1x4xf32> to vector<16x16x4xf32>
    %23 = arith.mulf %21, %22 : vector<16x16x4xf32>
    %24 = arith.addf %19, %23 : vector<16x16x4xf32>
    %c1_28 = arith.constant 1 : index
    %c0_29 = arith.constant 0 : index
    %c0_30 = arith.constant 0 : index
    %25 = vector.load %arg2[%c1_28, %c0_29, %c0_30] : memref<3x3x4xf32, #tpu.memory_space<vmem>>, vector<1x1x4xf32>
    %c1_31 = arith.constant 1 : index
    %c7_32 = arith.constant 7 : index
    %c0_33 = arith.constant 0 : index
    %26 = vector.load %arg11[%c1_31, %c7_32, %c0_33] : memref<18x25x4xf32, #tpu.memory_space<vmem>>, vector<16x16x4xf32>
    %27 = vector.broadcast %25 : vector<1x1x4xf32> to vector<16x16x4xf32>
    %28 = arith.mulf %26, %27 : vector<16x16x4xf32>
    %29 = arith.addf %24, %28 : vector<16x16x4xf32>
    %c1_34 = arith.constant 1 : index
    %c1_35 = arith.constant 1 : index
    %c0_36 = arith.constant 0 : index
    %30 = vector.load %arg2[%c1_34, %c1_35, %c0_36] : memref<3x3x4xf32, #tpu.memory_space<vmem>>, vector<1x1x4xf32>
    %c1_37 = arith.constant 1 : index
    %c8_38 = arith.constant 8 : index
    %c0_39 = arith.constant 0 : index
    %31 = vector.load %arg11[%c1_37, %c8_38, %c0_39] : memref<18x25x4xf32, #tpu.memory_space<vmem>>, vector<16x16x4xf32>
    %32 = vector.broadcast %30 : vector<1x1x4xf32> to vector<16x16x4xf32>
    %33 = arith.mulf %31, %32 : vector<16x16x4xf32>
    %34 = arith.addf %29, %33 : vector<16x16x4xf32>
    %c1_40 = arith.constant 1 : index
    %c2_41 = arith.constant 2 : index
    %c0_42 = arith.constant 0 : index
    %35 = vector.load %arg2[%c1_40, %c2_41, %c0_42] : memref<3x3x4xf32, #tpu.memory_space<vmem>>, vector<1x1x4xf32>
    %c1_43 = arith.constant 1 : index
    %c9_44 = arith.constant 9 : index
    %c0_45 = arith.constant 0 : index
    %36 = vector.load %arg11[%c1_43, %c9_44, %c0_45] : memref<18x25x4xf32, #tpu.memory_space<vmem>>, vector<16x16x4xf32>
    %37 = vector.broadcast %35 : vector<1x1x4xf32> to vector<16x16x4xf32>
    %38 = arith.mulf %36, %37 : vector<16x16x4xf32>
    %39 = arith.addf %34, %38 : vector<16x16x4xf32>
    %c2_46 = arith.constant 2 : index
    %c0_47 = arith.constant 0 : index
    %c0_48 = arith.constant 0 : index
    %40 = vector.load %arg2[%c2_46, %c0_47, %c0_48] : memref<3x3x4xf32, #tpu.memory_space<vmem>>, vector<1x1x4xf32>
    %c2_49 = arith.constant 2 : index
    %c7_50 = arith.constant 7 : index
    %c0_51 = arith.constant 0 : index
    %41 = vector.load %arg11[%c2_49, %c7_50, %c0_51] : memref<18x25x4xf32, #tpu.memory_space<vmem>>, vector<16x16x4xf32>
    %42 = vector.broadcast %40 : vector<1x1x4xf32> to vector<16x16x4xf32>
    %43 = arith.mulf %41, %42 : vector<16x16x4xf32>
    %44 = arith.addf %39, %43 : vector<16x16x4xf32>
    %c2_52 = arith.constant 2 : index
    %c1_53 = arith.constant 1 : index
    %c0_54 = arith.constant 0 : index
    %45 = vector.load %arg2[%c2_52, %c1_53, %c0_54] : memref<3x3x4xf32, #tpu.memory_space<vmem>>, vector<1x1x4xf32>
    %c2_55 = arith.constant 2 : index
    %c8_56 = arith.constant 8 : index
    %c0_57 = arith.constant 0 : index
    %46 = vector.load %arg11[%c2_55, %c8_56, %c0_57] : memref<18x25x4xf32, #tpu.memory_space<vmem>>, vector<16x16x4xf32>
    %47 = vector.broadcast %45 : vector<1x1x4xf32> to vector<16x16x4xf32>
    %48 = arith.mulf %46, %47 : vector<16x16x4xf32>
    %49 = arith.addf %44, %48 : vector<16x16x4xf32>
    %c2_58 = arith.constant 2 : index
    %c2_59 = arith.constant 2 : index
    %c0_60 = arith.constant 0 : index
    %50 = vector.load %arg2[%c2_58, %c2_59, %c0_60] : memref<3x3x4xf32, #tpu.memory_space<vmem>>, vector<1x1x4xf32>
    %c2_61 = arith.constant 2 : index
    %c9_62 = arith.constant 9 : index
    %c0_63 = arith.constant 0 : index
    %51 = vector.load %arg11[%c2_61, %c9_62, %c0_63] : memref<18x25x4xf32, #tpu.memory_space<vmem>>, vector<16x16x4xf32>
    %52 = vector.broadcast %50 : vector<1x1x4xf32> to vector<16x16x4xf32>
    %53 = arith.mulf %51, %52 : vector<16x16x4xf32>
    %54 = arith.addf %49, %53 : vector<16x16x4xf32>
    %55 = vector.extract_strided_slice %54 {offsets = [0, 0, 0], sizes = [1, 16, 4], strides = [1, 1, 1]} : vector<16x16x4xf32> to vector<1x16x4xf32>
    %56 = vector.shape_cast %55 : vector<1x16x4xf32> to vector<16x4xf32>
    %c0_64 = arith.constant 0 : index
    %c0_65 = arith.constant 0 : index
    %57 = vector.load %arg13[%c0_64, %c0_65] : memref<256x4xf32, #tpu.memory_space<vmem>>, vector<16x4xf32>
    tpu.vector_store %arg13[%c0_64, %c0_65], %56 {strides = array<i32>} : memref<256x4xf32, #tpu.memory_space<vmem>>, vector<16x4xf32>,
    %58 = vector.extract_strided_slice %54 {offsets = [1, 0, 0], sizes = [1, 16, 4], strides = [1, 1, 1]} : vector<16x16x4xf32> to vector<1x16x4xf32>
    %59 = vector.shape_cast %58 : vector<1x16x4xf32> to vector<16x4xf32>
    %c16 = arith.constant 16 : index
    %c0_66 = arith.constant 0 : index
    %60 = vector.load %arg13[%c16, %c0_66] : memref<256x4xf32, #tpu.memory_space<vmem>>, vector<16x4xf32>
    tpu.vector_store %arg13[%c16, %c0_66], %59 {strides = array<i32>} : memref<256x4xf32, #tpu.memory_space<vmem>>, vector<16x4xf32>,
    %61 = vector.extract_strided_slice %54 {offsets = [2, 0, 0], sizes = [1, 16, 4], strides = [1, 1, 1]} : vector<16x16x4xf32> to vector<1x16x4xf32>
    %62 = vector.shape_cast %61 : vector<1x16x4xf32> to vector<16x4xf32>
    %c32 = arith.constant 32 : index
    %c0_67 = arith.constant 0 : index
    %63 = vector.load %arg13[%c32, %c0_67] : memref<256x4xf32, #tpu.memory_space<vmem>>, vector<16x4xf32>
    tpu.vector_store %arg13[%c32, %c0_67], %62 {strides = array<i32>} : memref<256x4xf32, #tpu.memory_space<vmem>>, vector<16x4xf32>,
    %64 = vector.extract_strided_slice %54 {offsets = [3, 0, 0], sizes = [1, 16, 4], strides = [1, 1, 1]} : vector<16x16x4xf32> to vector<1x16x4xf32>
    %65 = vector.shape_cast %64 : vector<1x16x4xf32> to vector<16x4xf32>
    %c48 = arith.constant 48 : index
    %c0_68 = arith.constant 0 : index
    %66 = vector.load %arg13[%c48, %c0_68] : memref<256x4xf32, #tpu.memory_space<vmem>>, vector<16x4xf32>
    tpu.vector_store %arg13[%c48, %c0_68], %65 {strides = array<i32>} : memref<256x4xf32, #tpu.memory_space<vmem>>, vector<16x4xf32>,
    %67 = vector.extract_strided_slice %54 {offsets = [4, 0, 0], sizes = [1, 16, 4], strides = [1, 1, 1]} : vector<16x16x4xf32> to vector<1x16x4xf32>
    %68 = vector.shape_cast %67 : vector<1x16x4xf32> to vector<16x4xf32>
    %c64 = arith.constant 64 : index
    %c0_69 = arith.constant 0 : index
    %69 = vector.load %arg13[%c64, %c0_69] : memref<256x4xf32, #tpu.memory_space<vmem>>, vector<16x4xf32>
    tpu.vector_store %arg13[%c64, %c0_69], %68 {strides = array<i32>} : memref<256x4xf32, #tpu.memory_space<vmem>>, vector<16x4xf32>,
    %70 = vector.extract_strided_slice %54 {offsets = [5, 0, 0], sizes = [1, 16, 4], strides = [1, 1, 1]} : vector<16x16x4xf32> to vector<1x16x4xf32>
    %71 = vector.shape_cast %70 : vector<1x16x4xf32> to vector<16x4xf32>
    %c80 = arith.constant 80 : index
    %c0_70 = arith.constant 0 : index
    %72 = vector.load %arg13[%c80, %c0_70] : memref<256x4xf32, #tpu.memory_space<vmem>>, vector<16x4xf32>
    tpu.vector_store %arg13[%c80, %c0_70], %71 {strides = array<i32>} : memref<256x4xf32, #tpu.memory_space<vmem>>, vector<16x4xf32>,
    %73 = vector.extract_strided_slice %54 {offsets = [6, 0, 0], sizes = [1, 16, 4], strides = [1, 1, 1]} : vector<16x16x4xf32> to vector<1x16x4xf32>
    %74 = vector.shape_cast %73 : vector<1x16x4xf32> to vector<16x4xf32>
    %c96 = arith.constant 96 : index
    %c0_71 = arith.constant 0 : index
    %75 = vector.load %arg13[%c96, %c0_71] : memref<256x4xf32, #tpu.memory_space<vmem>>, vector<16x4xf32>
    tpu.vector_store %arg13[%c96, %c0_71], %74 {strides = array<i32>} : memref<256x4xf32, #tpu.memory_space<vmem>>, vector<16x4xf32>,
    %76 = vector.extract_strided_slice %54 {offsets = [7, 0, 0], sizes = [1, 16, 4], strides = [1, 1, 1]} : vector<16x16x4xf32> to vector<1x16x4xf32>
    %77 = vector.shape_cast %76 : vector<1x16x4xf32> to vector<16x4xf32>
    %c112 = arith.constant 112 : index
    %c0_72 = arith.constant 0 : index
    %78 = vector.load %arg13[%c112, %c0_72] : memref<256x4xf32, #tpu.memory_space<vmem>>, vector<16x4xf32>
    tpu.vector_store %arg13[%c112, %c0_72], %77 {strides = array<i32>} : memref<256x4xf32, #tpu.memory_space<vmem>>, vector<16x4xf32>,
    %79 = vector.extract_strided_slice %54 {offsets = [8, 0, 0], sizes = [1, 16, 4], strides = [1, 1, 1]} : vector<16x16x4xf32> to vector<1x16x4xf32>
    %80 = vector.shape_cast %79 : vector<1x16x4xf32> to vector<16x4xf32>
    %c128 = arith.constant 128 : index
    %c0_73 = arith.constant 0 : index
    %81 = vector.load %arg13[%c128, %c0_73] : memref<256x4xf32, #tpu.memory_space<vmem>>, vector<16x4xf32>
    tpu.vector_store %arg13[%c128, %c0_73], %80 {strides = array<i32>} : memref<256x4xf32, #tpu.memory_space<vmem>>, vector<16x4xf32>,
    %82 = vector.extract_strided_slice %54 {offsets = [9, 0, 0], sizes = [1, 16, 4], strides = [1, 1, 1]} : vector<16x16x4xf32> to vector<1x16x4xf32>
    %83 = vector.shape_cast %82 : vector<1x16x4xf32> to vector<16x4xf32>
    %c144 = arith.constant 144 : index
    %c0_74 = arith.constant 0 : index
    %84 = vector.load %arg13[%c144, %c0_74] : memref<256x4xf32, #tpu.memory_space<vmem>>, vector<16x4xf32>
    tpu.vector_store %arg13[%c144, %c0_74], %83 {strides = array<i32>} : memref<256x4xf32, #tpu.memory_space<vmem>>, vector<16x4xf32>,
    %85 = vector.extract_strided_slice %54 {offsets = [10, 0, 0], sizes = [1, 16, 4], strides = [1, 1, 1]} : vector<16x16x4xf32> to vector<1x16x4xf32>
    %86 = vector.shape_cast %85 : vector<1x16x4xf32> to vector<16x4xf32>
    %c160 = arith.constant 160 : index
    %c0_75 = arith.constant 0 : index
    %87 = vector.load %arg13[%c160, %c0_75] : memref<256x4xf32, #tpu.memory_space<vmem>>, vector<16x4xf32>
    tpu.vector_store %arg13[%c160, %c0_75], %86 {strides = array<i32>} : memref<256x4xf32, #tpu.memory_space<vmem>>, vector<16x4xf32>,
    %88 = vector.extract_strided_slice %54 {offsets = [11, 0, 0], sizes = [1, 16, 4], strides = [1, 1, 1]} : vector<16x16x4xf32> to vector<1x16x4xf32>
    %89 = vector.shape_cast %88 : vector<1x16x4xf32> to vector<16x4xf32>
    %c176 = arith.constant 176 : index
    %c0_76 = arith.constant 0 : index
    %90 = vector.load %arg13[%c176, %c0_76] : memref<256x4xf32, #tpu.memory_space<vmem>>, vector<16x4xf32>
    tpu.vector_store %arg13[%c176, %c0_76], %89 {strides = array<i32>} : memref<256x4xf32, #tpu.memory_space<vmem>>, vector<16x4xf32>,
    %91 = vector.extract_strided_slice %54 {offsets = [12, 0, 0], sizes = [1, 16, 4], strides = [1, 1, 1]} : vector<16x16x4xf32> to vector<1x16x4xf32>
    %92 = vector.shape_cast %91 : vector<1x16x4xf32> to vector<16x4xf32>
    %c192 = arith.constant 192 : index
    %c0_77 = arith.constant 0 : index
    %93 = vector.load %arg13[%c192, %c0_77] : memref<256x4xf32, #tpu.memory_space<vmem>>, vector<16x4xf32>
    tpu.vector_store %arg13[%c192, %c0_77], %92 {strides = array<i32>} : memref<256x4xf32, #tpu.memory_space<vmem>>, vector<16x4xf32>,
    %94 = vector.extract_strided_slice %54 {offsets = [13, 0, 0], sizes = [1, 16, 4], strides = [1, 1, 1]} : vector<16x16x4xf32> to vector<1x16x4xf32>
    %95 = vector.shape_cast %94 : vector<1x16x4xf32> to vector<16x4xf32>
    %c208 = arith.constant 208 : index
    %c0_78 = arith.constant 0 : index
    %96 = vector.load %arg13[%c208, %c0_78] : memref<256x4xf32, #tpu.memory_space<vmem>>, vector<16x4xf32>
    tpu.vector_store %arg13[%c208, %c0_78], %95 {strides = array<i32>} : memref<256x4xf32, #tpu.memory_space<vmem>>, vector<16x4xf32>,
    %97 = vector.extract_strided_slice %54 {offsets = [14, 0, 0], sizes = [1, 16, 4], strides = [1, 1, 1]} : vector<16x16x4xf32> to vector<1x16x4xf32>
    %98 = vector.shape_cast %97 : vector<1x16x4xf32> to vector<16x4xf32>
    %c224 = arith.constant 224 : index
    %c0_79 = arith.constant 0 : index
    %99 = vector.load %arg13[%c224, %c0_79] : memref<256x4xf32, #tpu.memory_space<vmem>>, vector<16x4xf32>
    tpu.vector_store %arg13[%c224, %c0_79], %98 {strides = array<i32>} : memref<256x4xf32, #tpu.memory_space<vmem>>, vector<16x4xf32>,
    %100 = vector.extract_strided_slice %54 {offsets = [15, 0, 0], sizes = [1, 16, 4], strides = [1, 1, 1]} : vector<16x16x4xf32> to vector<1x16x4xf32>
    %101 = vector.shape_cast %100 : vector<1x16x4xf32> to vector<16x4xf32>
    %c240 = arith.constant 240 : index
    %c0_80 = arith.constant 0 : index
    %102 = vector.load %arg13[%c240, %c0_80] : memref<256x4xf32, #tpu.memory_space<vmem>>, vector<16x4xf32>
    tpu.vector_store %arg13[%c240, %c0_80], %101 {strides = array<i32>} : memref<256x4xf32, #tpu.memory_space<vmem>>, vector<16x4xf32>,
    %c0_81 = arith.constant 0 : index
    %c0_82 = arith.constant 0 : index
    %103 = vector.load %arg13[%c0_81, %c0_82] : memref<256x4xf32, #tpu.memory_space<vmem>>, vector<256x4xf32>
    %c0_83 = arith.constant 0 : index
    %c0_84 = arith.constant 0 : index
    %104 = vector.load %arg3[%c0_83, %c0_84] : memref<4x4xf32, #tpu.memory_space<vmem>>, vector<4x4xf32>
    %cst_85 = arith.constant dense<0.000000e+00> : vector<256x4xf32>
    %105 = tpu.matmul %103, %104, %cst_85 {dimension_numbers = #tpu.dot_dimension_numbers<[1], [0], [0], [1], [0, 0, 1, 1], [], []>, precision = #tpu.contract_precision<fp32>} : vector<256x4xf32>, vector<4x4xf32>, vector<256x4xf32> -> vector<256x4xf32>
    %c0_86 = arith.constant 0 : index
    %c0_87 = arith.constant 0 : index
    %106 = vector.load %arg4[%c0_86, %c0_87] : memref<1x4xf32, #tpu.memory_space<vmem>>, vector<1x4xf32>
    %107 = vector.broadcast %106 : vector<1x4xf32> to vector<256x4xf32>
    %108 = arith.mulf %105, %107 : vector<256x4xf32>
    %c0_88 = arith.constant 0 : index
    %c0_89 = arith.constant 0 : index
    %109 = vector.load %arg5[%c0_88, %c0_89] : memref<1x4xf32, #tpu.memory_space<vmem>>, vector<1x4xf32>
    %110 = vector.broadcast %109 : vector<1x4xf32> to vector<256x4xf32>
    %111 = arith.addf %108, %110 : vector<256x4xf32>
    %cst_90 = arith.constant 0.000000e+00 : f32
    %112 = vector.broadcast %cst_90 : f32 to vector<256x4xf32>
    %113 = arith.maximumf %111, %112 : vector<256x4xf32>
    %114 = vector.extract_strided_slice %113 {offsets = [0, 0], sizes = [16, 4], strides = [1, 1]} : vector<256x4xf32> to vector<16x4xf32>
    %c1_91 = arith.constant 1 : index
    %c8_92 = arith.constant 8 : index
    %c0_93 = arith.constant 0 : index
    %115 = vector.load %arg12[%c1_91, %c8_92, %c0_93] : memref<18x25x4xf32, #tpu.memory_space<vmem>>, vector<1x16x4xf32>
    %116 = vector.shape_cast %115 : vector<1x16x4xf32> to vector<16x4xf32>
    %117 = vector.shape_cast %114 : vector<16x4xf32> to vector<1x16x4xf32>
    tpu.vector_store %arg12[%c1_91, %c8_92, %c0_93], %117 {strides = array<i32>} : memref<18x25x4xf32, #tpu.memory_space<vmem>>, vector<1x16x4xf32>,
    %118 = vector.extract_strided_slice %113 {offsets = [16, 0], sizes = [16, 4], strides = [1, 1]} : vector<256x4xf32> to vector<16x4xf32>
    %c2_94 = arith.constant 2 : index
    %c8_95 = arith.constant 8 : index
    %c0_96 = arith.constant 0 : index
    %119 = vector.load %arg12[%c2_94, %c8_95, %c0_96] : memref<18x25x4xf32, #tpu.memory_space<vmem>>, vector<1x16x4xf32>
    %120 = vector.shape_cast %119 : vector<1x16x4xf32> to vector<16x4xf32>
    %121 = vector.shape_cast %118 : vector<16x4xf32> to vector<1x16x4xf32>
    tpu.vector_store %arg12[%c2_94, %c8_95, %c0_96], %121 {strides = array<i32>} : memref<18x25x4xf32, #tpu.memory_space<vmem>>, vector<1x16x4xf32>,
    %122 = vector.extract_strided_slice %113 {offsets = [32, 0], sizes = [16, 4], strides = [1, 1]} : vector<256x4xf32> to vector<16x4xf32>
    %c3 = arith.constant 3 : index
    %c8_97 = arith.constant 8 : index
    %c0_98 = arith.constant 0 : index
    %123 = vector.load %arg12[%c3, %c8_97, %c0_98] : memref<18x25x4xf32, #tpu.memory_space<vmem>>, vector<1x16x4xf32>
    %124 = vector.shape_cast %123 : vector<1x16x4xf32> to vector<16x4xf32>
    %125 = vector.shape_cast %122 : vector<16x4xf32> to vector<1x16x4xf32>
    tpu.vector_store %arg12[%c3, %c8_97, %c0_98], %125 {strides = array<i32>} : memref<18x25x4xf32, #tpu.memory_space<vmem>>, vector<1x16x4xf32>,
    %126 = vector.extract_strided_slice %113 {offsets = [48, 0], sizes = [16, 4], strides = [1, 1]} : vector<256x4xf32> to vector<16x4xf32>
    %c4 = arith.constant 4 : index
    %c8_99 = arith.constant 8 : index
    %c0_100 = arith.constant 0 : index
    %127 = vector.load %arg12[%c4, %c8_99, %c0_100] : memref<18x25x4xf32, #tpu.memory_space<vmem>>, vector<1x16x4xf32>
    %128 = vector.shape_cast %127 : vector<1x16x4xf32> to vector<16x4xf32>
    %129 = vector.shape_cast %126 : vector<16x4xf32> to vector<1x16x4xf32>
    tpu.vector_store %arg12[%c4, %c8_99, %c0_100], %129 {strides = array<i32>} : memref<18x25x4xf32, #tpu.memory_space<vmem>>, vector<1x16x4xf32>,
    %130 = vector.extract_strided_slice %113 {offsets = [64, 0], sizes = [16, 4], strides = [1, 1]} : vector<256x4xf32> to vector<16x4xf32>
    %c5 = arith.constant 5 : index
    %c8_101 = arith.constant 8 : index
    %c0_102 = arith.constant 0 : index
    %131 = vector.load %arg12[%c5, %c8_101, %c0_102] : memref<18x25x4xf32, #tpu.memory_space<vmem>>, vector<1x16x4xf32>
    %132 = vector.shape_cast %131 : vector<1x16x4xf32> to vector<16x4xf32>
    %133 = vector.shape_cast %130 : vector<16x4xf32> to vector<1x16x4xf32>
    tpu.vector_store %arg12[%c5, %c8_101, %c0_102], %133 {strides = array<i32>} : memref<18x25x4xf32, #tpu.memory_space<vmem>>, vector<1x16x4xf32>,
    %134 = vector.extract_strided_slice %113 {offsets = [80, 0], sizes = [16, 4], strides = [1, 1]} : vector<256x4xf32> to vector<16x4xf32>
    %c6 = arith.constant 6 : index
    %c8_103 = arith.constant 8 : index
    %c0_104 = arith.constant 0 : index
    %135 = vector.load %arg12[%c6, %c8_103, %c0_104] : memref<18x25x4xf32, #tpu.memory_space<vmem>>, vector<1x16x4xf32>
    %136 = vector.shape_cast %135 : vector<1x16x4xf32> to vector<16x4xf32>
    %137 = vector.shape_cast %134 : vector<16x4xf32> to vector<1x16x4xf32>
    tpu.vector_store %arg12[%c6, %c8_103, %c0_104], %137 {strides = array<i32>} : memref<18x25x4xf32, #tpu.memory_space<vmem>>, vector<1x16x4xf32>,
    %138 = vector.extract_strided_slice %113 {offsets = [96, 0], sizes = [16, 4], strides = [1, 1]} : vector<256x4xf32> to vector<16x4xf32>
    %c7_105 = arith.constant 7 : index
    %c8_106 = arith.constant 8 : index
    %c0_107 = arith.constant 0 : index
    %139 = vector.load %arg12[%c7_105, %c8_106, %c0_107] : memref<18x25x4xf32, #tpu.memory_space<vmem>>, vector<1x16x4xf32>
    %140 = vector.shape_cast %139 : vector<1x16x4xf32> to vector<16x4xf32>
    %141 = vector.shape_cast %138 : vector<16x4xf32> to vector<1x16x4xf32>
    tpu.vector_store %arg12[%c7_105, %c8_106, %c0_107], %141 {strides = array<i32>} : memref<18x25x4xf32, #tpu.memory_space<vmem>>, vector<1x16x4xf32>,
    %142 = vector.extract_strided_slice %113 {offsets = [112, 0], sizes = [16, 4], strides = [1, 1]} : vector<256x4xf32> to vector<16x4xf32>
    %c8_108 = arith.constant 8 : index
    %c8_109 = arith.constant 8 : index
    %c0_110 = arith.constant 0 : index
    %143 = vector.load %arg12[%c8_108, %c8_109, %c0_110] : memref<18x25x4xf32, #tpu.memory_space<vmem>>, vector<1x16x4xf32>
    %144 = vector.shape_cast %143 : vector<1x16x4xf32> to vector<16x4xf32>
    %145 = vector.shape_cast %142 : vector<16x4xf32> to vector<1x16x4xf32>
    tpu.vector_store %arg12[%c8_108, %c8_109, %c0_110], %145 {strides = array<i32>} : memref<18x25x4xf32, #tpu.memory_space<vmem>>, vector<1x16x4xf32>,
    %146 = vector.extract_strided_slice %113 {offsets = [128, 0], sizes = [16, 4], strides = [1, 1]} : vector<256x4xf32> to vector<16x4xf32>
    %c9_111 = arith.constant 9 : index
    %c8_112 = arith.constant 8 : index
    %c0_113 = arith.constant 0 : index
    %147 = vector.load %arg12[%c9_111, %c8_112, %c0_113] : memref<18x25x4xf32, #tpu.memory_space<vmem>>, vector<1x16x4xf32>
    %148 = vector.shape_cast %147 : vector<1x16x4xf32> to vector<16x4xf32>
    %149 = vector.shape_cast %146 : vector<16x4xf32> to vector<1x16x4xf32>
    tpu.vector_store %arg12[%c9_111, %c8_112, %c0_113], %149 {strides = array<i32>} : memref<18x25x4xf32, #tpu.memory_space<vmem>>, vector<1x16x4xf32>,
    %150 = vector.extract_strided_slice %113 {offsets = [144, 0], sizes = [16, 4], strides = [1, 1]} : vector<256x4xf32> to vector<16x4xf32>
    %c10 = arith.constant 10 : index
    %c8_114 = arith.constant 8 : index
    %c0_115 = arith.constant 0 : index
    %151 = vector.load %arg12[%c10, %c8_114, %c0_115] : memref<18x25x4xf32, #tpu.memory_space<vmem>>, vector<1x16x4xf32>
    %152 = vector.shape_cast %151 : vector<1x16x4xf32> to vector<16x4xf32>
    %153 = vector.shape_cast %150 : vector<16x4xf32> to vector<1x16x4xf32>
    tpu.vector_store %arg12[%c10, %c8_114, %c0_115], %153 {strides = array<i32>} : memref<18x25x4xf32, #tpu.memory_space<vmem>>, vector<1x16x4xf32>,
    %154 = vector.extract_strided_slice %113 {offsets = [160, 0], sizes = [16, 4], strides = [1, 1]} : vector<256x4xf32> to vector<16x4xf32>
    %c11 = arith.constant 11 : index
    %c8_116 = arith.constant 8 : index
    %c0_117 = arith.constant 0 : index
    %155 = vector.load %arg12[%c11, %c8_116, %c0_117] : memref<18x25x4xf32, #tpu.memory_space<vmem>>, vector<1x16x4xf32>
    %156 = vector.shape_cast %155 : vector<1x16x4xf32> to vector<16x4xf32>
    %157 = vector.shape_cast %154 : vector<16x4xf32> to vector<1x16x4xf32>
    tpu.vector_store %arg12[%c11, %c8_116, %c0_117], %157 {strides = array<i32>} : memref<18x25x4xf32, #tpu.memory_space<vmem>>, vector<1x16x4xf32>,
    %158 = vector.extract_strided_slice %113 {offsets = [176, 0], sizes = [16, 4], strides = [1, 1]} : vector<256x4xf32> to vector<16x4xf32>
    %c12 = arith.constant 12 : index
    %c8_118 = arith.constant 8 : index
    %c0_119 = arith.constant 0 : index
    %159 = vector.load %arg12[%c12, %c8_118, %c0_119] : memref<18x25x4xf32, #tpu.memory_space<vmem>>, vector<1x16x4xf32>
    %160 = vector.shape_cast %159 : vector<1x16x4xf32> to vector<16x4xf32>
    %161 = vector.shape_cast %158 : vector<16x4xf32> to vector<1x16x4xf32>
    tpu.vector_store %arg12[%c12, %c8_118, %c0_119], %161 {strides = array<i32>} : memref<18x25x4xf32, #tpu.memory_space<vmem>>, vector<1x16x4xf32>,
    %162 = vector.extract_strided_slice %113 {offsets = [192, 0], sizes = [16, 4], strides = [1, 1]} : vector<256x4xf32> to vector<16x4xf32>
    %c13 = arith.constant 13 : index
    %c8_120 = arith.constant 8 : index
    %c0_121 = arith.constant 0 : index
    %163 = vector.load %arg12[%c13, %c8_120, %c0_121] : memref<18x25x4xf32, #tpu.memory_space<vmem>>, vector<1x16x4xf32>
    %164 = vector.shape_cast %163 : vector<1x16x4xf32> to vector<16x4xf32>
    %165 = vector.shape_cast %162 : vector<16x4xf32> to vector<1x16x4xf32>
    tpu.vector_store %arg12[%c13, %c8_120, %c0_121], %165 {strides = array<i32>} : memref<18x25x4xf32, #tpu.memory_space<vmem>>, vector<1x16x4xf32>,
    %166 = vector.extract_strided_slice %113 {offsets = [208, 0], sizes = [16, 4], strides = [1, 1]} : vector<256x4xf32> to vector<16x4xf32>
    %c14 = arith.constant 14 : index
    %c8_122 = arith.constant 8 : index
    %c0_123 = arith.constant 0 : index
    %167 = vector.load %arg12[%c14, %c8_122, %c0_123] : memref<18x25x4xf32, #tpu.memory_space<vmem>>, vector<1x16x4xf32>
    %168 = vector.shape_cast %167 : vector<1x16x4xf32> to vector<16x4xf32>
    %169 = vector.shape_cast %166 : vector<16x4xf32> to vector<1x16x4xf32>
    tpu.vector_store %arg12[%c14, %c8_122, %c0_123], %169 {strides = array<i32>} : memref<18x25x4xf32, #tpu.memory_space<vmem>>, vector<1x16x4xf32>,
    %170 = vector.extract_strided_slice %113 {offsets = [224, 0], sizes = [16, 4], strides = [1, 1]} : vector<256x4xf32> to vector<16x4xf32>
    %c15 = arith.constant 15 : index
    %c8_124 = arith.constant 8 : index
    %c0_125 = arith.constant 0 : index
    %171 = vector.load %arg12[%c15, %c8_124, %c0_125] : memref<18x25x4xf32, #tpu.memory_space<vmem>>, vector<1x16x4xf32>
    %172 = vector.shape_cast %171 : vector<1x16x4xf32> to vector<16x4xf32>
    %173 = vector.shape_cast %170 : vector<16x4xf32> to vector<1x16x4xf32>
    tpu.vector_store %arg12[%c15, %c8_124, %c0_125], %173 {strides = array<i32>} : memref<18x25x4xf32, #tpu.memory_space<vmem>>, vector<1x16x4xf32>,
    %174 = vector.extract_strided_slice %113 {offsets = [240, 0], sizes = [16, 4], strides = [1, 1]} : vector<256x4xf32> to vector<16x4xf32>
    %c16_126 = arith.constant 16 : index
    %c8_127 = arith.constant 8 : index
    %c0_128 = arith.constant 0 : index
    %175 = vector.load %arg12[%c16_126, %c8_127, %c0_128] : memref<18x25x4xf32, #tpu.memory_space<vmem>>, vector<1x16x4xf32>
    %176 = vector.shape_cast %175 : vector<1x16x4xf32> to vector<16x4xf32>
    %177 = vector.shape_cast %174 : vector<16x4xf32> to vector<1x16x4xf32>
    tpu.vector_store %arg12[%c16_126, %c8_127, %c0_128], %177 {strides = array<i32>} : memref<18x25x4xf32, #tpu.memory_space<vmem>>, vector<1x16x4xf32>,
    %cst_129 = arith.constant 0.000000e+00 : f32
    %178 = vector.broadcast %cst_129 : f32 to vector<16x16x4xf32>
    %c0_130 = arith.constant 0 : index
    %c0_131 = arith.constant 0 : index
    %c0_132 = arith.constant 0 : index
    %179 = vector.load %arg6[%c0_130, %c0_131, %c0_132] : memref<3x3x4xf32, #tpu.memory_space<vmem>>, vector<1x1x4xf32>
    %c0_133 = arith.constant 0 : index
    %c7_134 = arith.constant 7 : index
    %c0_135 = arith.constant 0 : index
    %180 = vector.load %arg12[%c0_133, %c7_134, %c0_135] : memref<18x25x4xf32, #tpu.memory_space<vmem>>, vector<16x16x4xf32>
    %181 = vector.broadcast %179 : vector<1x1x4xf32> to vector<16x16x4xf32>
    %182 = arith.mulf %180, %181 : vector<16x16x4xf32>
    %183 = arith.addf %178, %182 : vector<16x16x4xf32>
    %c0_136 = arith.constant 0 : index
    %c1_137 = arith.constant 1 : index
    %c0_138 = arith.constant 0 : index
    %184 = vector.load %arg6[%c0_136, %c1_137, %c0_138] : memref<3x3x4xf32, #tpu.memory_space<vmem>>, vector<1x1x4xf32>
    %c0_139 = arith.constant 0 : index
    %c8_140 = arith.constant 8 : index
    %c0_141 = arith.constant 0 : index
    %185 = vector.load %arg12[%c0_139, %c8_140, %c0_141] : memref<18x25x4xf32, #tpu.memory_space<vmem>>, vector<16x16x4xf32>
    %186 = vector.broadcast %184 : vector<1x1x4xf32> to vector<16x16x4xf32>
    %187 = arith.mulf %185, %186 : vector<16x16x4xf32>
    %188 = arith.addf %183, %187 : vector<16x16x4xf32>
    %c0_142 = arith.constant 0 : index
    %c2_143 = arith.constant 2 : index
    %c0_144 = arith.constant 0 : index
    %189 = vector.load %arg6[%c0_142, %c2_143, %c0_144] : memref<3x3x4xf32, #tpu.memory_space<vmem>>, vector<1x1x4xf32>
    %c0_145 = arith.constant 0 : index
    %c9_146 = arith.constant 9 : index
    %c0_147 = arith.constant 0 : index
    %190 = vector.load %arg12[%c0_145, %c9_146, %c0_147] : memref<18x25x4xf32, #tpu.memory_space<vmem>>, vector<16x16x4xf32>
    %191 = vector.broadcast %189 : vector<1x1x4xf32> to vector<16x16x4xf32>
    %192 = arith.mulf %190, %191 : vector<16x16x4xf32>
    %193 = arith.addf %188, %192 : vector<16x16x4xf32>
    %c1_148 = arith.constant 1 : index
    %c0_149 = arith.constant 0 : index
    %c0_150 = arith.constant 0 : index
    %194 = vector.load %arg6[%c1_148, %c0_149, %c0_150] : memref<3x3x4xf32, #tpu.memory_space<vmem>>, vector<1x1x4xf32>
    %c1_151 = arith.constant 1 : index
    %c7_152 = arith.constant 7 : index
    %c0_153 = arith.constant 0 : index
    %195 = vector.load %arg12[%c1_151, %c7_152, %c0_153] : memref<18x25x4xf32, #tpu.memory_space<vmem>>, vector<16x16x4xf32>
    %196 = vector.broadcast %194 : vector<1x1x4xf32> to vector<16x16x4xf32>
    %197 = arith.mulf %195, %196 : vector<16x16x4xf32>
    %198 = arith.addf %193, %197 : vector<16x16x4xf32>
    %c1_154 = arith.constant 1 : index
    %c1_155 = arith.constant 1 : index
    %c0_156 = arith.constant 0 : index
    %199 = vector.load %arg6[%c1_154, %c1_155, %c0_156] : memref<3x3x4xf32, #tpu.memory_space<vmem>>, vector<1x1x4xf32>
    %c1_157 = arith.constant 1 : index
    %c8_158 = arith.constant 8 : index
    %c0_159 = arith.constant 0 : index
    %200 = vector.load %arg12[%c1_157, %c8_158, %c0_159] : memref<18x25x4xf32, #tpu.memory_space<vmem>>, vector<16x16x4xf32>
    %201 = vector.broadcast %199 : vector<1x1x4xf32> to vector<16x16x4xf32>
    %202 = arith.mulf %200, %201 : vector<16x16x4xf32>
    %203 = arith.addf %198, %202 : vector<16x16x4xf32>
    %c1_160 = arith.constant 1 : index
    %c2_161 = arith.constant 2 : index
    %c0_162 = arith.constant 0 : index
    %204 = vector.load %arg6[%c1_160, %c2_161, %c0_162] : memref<3x3x4xf32, #tpu.memory_space<vmem>>, vector<1x1x4xf32>
    %c1_163 = arith.constant 1 : index
    %c9_164 = arith.constant 9 : index
    %c0_165 = arith.constant 0 : index
    %205 = vector.load %arg12[%c1_163, %c9_164, %c0_165] : memref<18x25x4xf32, #tpu.memory_space<vmem>>, vector<16x16x4xf32>
    %206 = vector.broadcast %204 : vector<1x1x4xf32> to vector<16x16x4xf32>
    %207 = arith.mulf %205, %206 : vector<16x16x4xf32>
    %208 = arith.addf %203, %207 : vector<16x16x4xf32>
    %c2_166 = arith.constant 2 : index
    %c0_167 = arith.constant 0 : index
    %c0_168 = arith.constant 0 : index
    %209 = vector.load %arg6[%c2_166, %c0_167, %c0_168] : memref<3x3x4xf32, #tpu.memory_space<vmem>>, vector<1x1x4xf32>
    %c2_169 = arith.constant 2 : index
    %c7_170 = arith.constant 7 : index
    %c0_171 = arith.constant 0 : index
    %210 = vector.load %arg12[%c2_169, %c7_170, %c0_171] : memref<18x25x4xf32, #tpu.memory_space<vmem>>, vector<16x16x4xf32>
    %211 = vector.broadcast %209 : vector<1x1x4xf32> to vector<16x16x4xf32>
    %212 = arith.mulf %210, %211 : vector<16x16x4xf32>
    %213 = arith.addf %208, %212 : vector<16x16x4xf32>
    %c2_172 = arith.constant 2 : index
    %c1_173 = arith.constant 1 : index
    %c0_174 = arith.constant 0 : index
    %214 = vector.load %arg6[%c2_172, %c1_173, %c0_174] : memref<3x3x4xf32, #tpu.memory_space<vmem>>, vector<1x1x4xf32>
    %c2_175 = arith.constant 2 : index
    %c8_176 = arith.constant 8 : index
    %c0_177 = arith.constant 0 : index
    %215 = vector.load %arg12[%c2_175, %c8_176, %c0_177] : memref<18x25x4xf32, #tpu.memory_space<vmem>>, vector<16x16x4xf32>
    %216 = vector.broadcast %214 : vector<1x1x4xf32> to vector<16x16x4xf32>
    %217 = arith.mulf %215, %216 : vector<16x16x4xf32>
    %218 = arith.addf %213, %217 : vector<16x16x4xf32>
    %c2_178 = arith.constant 2 : index
    %c2_179 = arith.constant 2 : index
    %c0_180 = arith.constant 0 : index
    %219 = vector.load %arg6[%c2_178, %c2_179, %c0_180] : memref<3x3x4xf32, #tpu.memory_space<vmem>>, vector<1x1x4xf32>
    %c2_181 = arith.constant 2 : index
    %c9_182 = arith.constant 9 : index
    %c0_183 = arith.constant 0 : index
    %220 = vector.load %arg12[%c2_181, %c9_182, %c0_183] : memref<18x25x4xf32, #tpu.memory_space<vmem>>, vector<16x16x4xf32>
    %221 = vector.broadcast %219 : vector<1x1x4xf32> to vector<16x16x4xf32>
    %222 = arith.mulf %220, %221 : vector<16x16x4xf32>
    %223 = arith.addf %218, %222 : vector<16x16x4xf32>
    %224 = vector.extract_strided_slice %223 {offsets = [0, 0, 0], sizes = [1, 16, 4], strides = [1, 1, 1]} : vector<16x16x4xf32> to vector<1x16x4xf32>
    %225 = vector.shape_cast %224 : vector<1x16x4xf32> to vector<16x4xf32>
    %c0_184 = arith.constant 0 : index
    %c0_185 = arith.constant 0 : index
    %226 = vector.load %arg14[%c0_184, %c0_185] : memref<256x4xf32, #tpu.memory_space<vmem>>, vector<16x4xf32>
    tpu.vector_store %arg14[%c0_184, %c0_185], %225 {strides = array<i32>} : memref<256x4xf32, #tpu.memory_space<vmem>>, vector<16x4xf32>,
    %227 = vector.extract_strided_slice %223 {offsets = [1, 0, 0], sizes = [1, 16, 4], strides = [1, 1, 1]} : vector<16x16x4xf32> to vector<1x16x4xf32>
    %228 = vector.shape_cast %227 : vector<1x16x4xf32> to vector<16x4xf32>
    %c16_186 = arith.constant 16 : index
    %c0_187 = arith.constant 0 : index
    %229 = vector.load %arg14[%c16_186, %c0_187] : memref<256x4xf32, #tpu.memory_space<vmem>>, vector<16x4xf32>
    tpu.vector_store %arg14[%c16_186, %c0_187], %228 {strides = array<i32>} : memref<256x4xf32, #tpu.memory_space<vmem>>, vector<16x4xf32>,
    %230 = vector.extract_strided_slice %223 {offsets = [2, 0, 0], sizes = [1, 16, 4], strides = [1, 1, 1]} : vector<16x16x4xf32> to vector<1x16x4xf32>
    %231 = vector.shape_cast %230 : vector<1x16x4xf32> to vector<16x4xf32>
    %c32_188 = arith.constant 32 : index
    %c0_189 = arith.constant 0 : index
    %232 = vector.load %arg14[%c32_188, %c0_189] : memref<256x4xf32, #tpu.memory_space<vmem>>, vector<16x4xf32>
    tpu.vector_store %arg14[%c32_188, %c0_189], %231 {strides = array<i32>} : memref<256x4xf32, #tpu.memory_space<vmem>>, vector<16x4xf32>,
    %233 = vector.extract_strided_slice %223 {offsets = [3, 0, 0], sizes = [1, 16, 4], strides = [1, 1, 1]} : vector<16x16x4xf32> to vector<1x16x4xf32>
    %234 = vector.shape_cast %233 : vector<1x16x4xf32> to vector<16x4xf32>
    %c48_190 = arith.constant 48 : index
    %c0_191 = arith.constant 0 : index
    %235 = vector.load %arg14[%c48_190, %c0_191] : memref<256x4xf32, #tpu.memory_space<vmem>>, vector<16x4xf32>
    tpu.vector_store %arg14[%c48_190, %c0_191], %234 {strides = array<i32>} : memref<256x4xf32, #tpu.memory_space<vmem>>, vector<16x4xf32>,
    %236 = vector.extract_strided_slice %223 {offsets = [4, 0, 0], sizes = [1, 16, 4], strides = [1, 1, 1]} : vector<16x16x4xf32> to vector<1x16x4xf32>
    %237 = vector.shape_cast %236 : vector<1x16x4xf32> to vector<16x4xf32>
    %c64_192 = arith.constant 64 : index
    %c0_193 = arith.constant 0 : index
    %238 = vector.load %arg14[%c64_192, %c0_193] : memref<256x4xf32, #tpu.memory_space<vmem>>, vector<16x4xf32>
    tpu.vector_store %arg14[%c64_192, %c0_193], %237 {strides = array<i32>} : memref<256x4xf32, #tpu.memory_space<vmem>>, vector<16x4xf32>,
    %239 = vector.extract_strided_slice %223 {offsets = [5, 0, 0], sizes = [1, 16, 4], strides = [1, 1, 1]} : vector<16x16x4xf32> to vector<1x16x4xf32>
    %240 = vector.shape_cast %239 : vector<1x16x4xf32> to vector<16x4xf32>
    %c80_194 = arith.constant 80 : index
    %c0_195 = arith.constant 0 : index
    %241 = vector.load %arg14[%c80_194, %c0_195] : memref<256x4xf32, #tpu.memory_space<vmem>>, vector<16x4xf32>
    tpu.vector_store %arg14[%c80_194, %c0_195], %240 {strides = array<i32>} : memref<256x4xf32, #tpu.memory_space<vmem>>, vector<16x4xf32>,
    %242 = vector.extract_strided_slice %223 {offsets = [6, 0, 0], sizes = [1, 16, 4], strides = [1, 1, 1]} : vector<16x16x4xf32> to vector<1x16x4xf32>
    %243 = vector.shape_cast %242 : vector<1x16x4xf32> to vector<16x4xf32>
    %c96_196 = arith.constant 96 : index
    %c0_197 = arith.constant 0 : index
    %244 = vector.load %arg14[%c96_196, %c0_197] : memref<256x4xf32, #tpu.memory_space<vmem>>, vector<16x4xf32>
    tpu.vector_store %arg14[%c96_196, %c0_197], %243 {strides = array<i32>} : memref<256x4xf32, #tpu.memory_space<vmem>>, vector<16x4xf32>,
    %245 = vector.extract_strided_slice %223 {offsets = [7, 0, 0], sizes = [1, 16, 4], strides = [1, 1, 1]} : vector<16x16x4xf32> to vector<1x16x4xf32>
    %246 = vector.shape_cast %245 : vector<1x16x4xf32> to vector<16x4xf32>
    %c112_198 = arith.constant 112 : index
    %c0_199 = arith.constant 0 : index
    %247 = vector.load %arg14[%c112_198, %c0_199] : memref<256x4xf32, #tpu.memory_space<vmem>>, vector<16x4xf32>
    tpu.vector_store %arg14[%c112_198, %c0_199], %246 {strides = array<i32>} : memref<256x4xf32, #tpu.memory_space<vmem>>, vector<16x4xf32>,
    %248 = vector.extract_strided_slice %223 {offsets = [8, 0, 0], sizes = [1, 16, 4], strides = [1, 1, 1]} : vector<16x16x4xf32> to vector<1x16x4xf32>
    %249 = vector.shape_cast %248 : vector<1x16x4xf32> to vector<16x4xf32>
    %c128_200 = arith.constant 128 : index
    %c0_201 = arith.constant 0 : index
    %250 = vector.load %arg14[%c128_200, %c0_201] : memref<256x4xf32, #tpu.memory_space<vmem>>, vector<16x4xf32>
    tpu.vector_store %arg14[%c128_200, %c0_201], %249 {strides = array<i32>} : memref<256x4xf32, #tpu.memory_space<vmem>>, vector<16x4xf32>,
    %251 = vector.extract_strided_slice %223 {offsets = [9, 0, 0], sizes = [1, 16, 4], strides = [1, 1, 1]} : vector<16x16x4xf32> to vector<1x16x4xf32>
    %252 = vector.shape_cast %251 : vector<1x16x4xf32> to vector<16x4xf32>
    %c144_202 = arith.constant 144 : index
    %c0_203 = arith.constant 0 : index
    %253 = vector.load %arg14[%c144_202, %c0_203] : memref<256x4xf32, #tpu.memory_space<vmem>>, vector<16x4xf32>
    tpu.vector_store %arg14[%c144_202, %c0_203], %252 {strides = array<i32>} : memref<256x4xf32, #tpu.memory_space<vmem>>, vector<16x4xf32>,
    %254 = vector.extract_strided_slice %223 {offsets = [10, 0, 0], sizes = [1, 16, 4], strides = [1, 1, 1]} : vector<16x16x4xf32> to vector<1x16x4xf32>
    %255 = vector.shape_cast %254 : vector<1x16x4xf32> to vector<16x4xf32>
    %c160_204 = arith.constant 160 : index
    %c0_205 = arith.constant 0 : index
    %256 = vector.load %arg14[%c160_204, %c0_205] : memref<256x4xf32, #tpu.memory_space<vmem>>, vector<16x4xf32>
    tpu.vector_store %arg14[%c160_204, %c0_205], %255 {strides = array<i32>} : memref<256x4xf32, #tpu.memory_space<vmem>>, vector<16x4xf32>,
    %257 = vector.extract_strided_slice %223 {offsets = [11, 0, 0], sizes = [1, 16, 4], strides = [1, 1, 1]} : vector<16x16x4xf32> to vector<1x16x4xf32>
    %258 = vector.shape_cast %257 : vector<1x16x4xf32> to vector<16x4xf32>
    %c176_206 = arith.constant 176 : index
    %c0_207 = arith.constant 0 : index
    %259 = vector.load %arg14[%c176_206, %c0_207] : memref<256x4xf32, #tpu.memory_space<vmem>>, vector<16x4xf32>
    tpu.vector_store %arg14[%c176_206, %c0_207], %258 {strides = array<i32>} : memref<256x4xf32, #tpu.memory_space<vmem>>, vector<16x4xf32>,
    %260 = vector.extract_strided_slice %223 {offsets = [12, 0, 0], sizes = [1, 16, 4], strides = [1, 1, 1]} : vector<16x16x4xf32> to vector<1x16x4xf32>
    %261 = vector.shape_cast %260 : vector<1x16x4xf32> to vector<16x4xf32>
    %c192_208 = arith.constant 192 : index
    %c0_209 = arith.constant 0 : index
    %262 = vector.load %arg14[%c192_208, %c0_209] : memref<256x4xf32, #tpu.memory_space<vmem>>, vector<16x4xf32>
    tpu.vector_store %arg14[%c192_208, %c0_209], %261 {strides = array<i32>} : memref<256x4xf32, #tpu.memory_space<vmem>>, vector<16x4xf32>,
    %263 = vector.extract_strided_slice %223 {offsets = [13, 0, 0], sizes = [1, 16, 4], strides = [1, 1, 1]} : vector<16x16x4xf32> to vector<1x16x4xf32>
    %264 = vector.shape_cast %263 : vector<1x16x4xf32> to vector<16x4xf32>
    %c208_210 = arith.constant 208 : index
    %c0_211 = arith.constant 0 : index
    %265 = vector.load %arg14[%c208_210, %c0_211] : memref<256x4xf32, #tpu.memory_space<vmem>>, vector<16x4xf32>
    tpu.vector_store %arg14[%c208_210, %c0_211], %264 {strides = array<i32>} : memref<256x4xf32, #tpu.memory_space<vmem>>, vector<16x4xf32>,
    %266 = vector.extract_strided_slice %223 {offsets = [14, 0, 0], sizes = [1, 16, 4], strides = [1, 1, 1]} : vector<16x16x4xf32> to vector<1x16x4xf32>
    %267 = vector.shape_cast %266 : vector<1x16x4xf32> to vector<16x4xf32>
    %c224_212 = arith.constant 224 : index
    %c0_213 = arith.constant 0 : index
    %268 = vector.load %arg14[%c224_212, %c0_213] : memref<256x4xf32, #tpu.memory_space<vmem>>, vector<16x4xf32>
    tpu.vector_store %arg14[%c224_212, %c0_213], %267 {strides = array<i32>} : memref<256x4xf32, #tpu.memory_space<vmem>>, vector<16x4xf32>,
    %269 = vector.extract_strided_slice %223 {offsets = [15, 0, 0], sizes = [1, 16, 4], strides = [1, 1, 1]} : vector<16x16x4xf32> to vector<1x16x4xf32>
    %270 = vector.shape_cast %269 : vector<1x16x4xf32> to vector<16x4xf32>
    %c240_214 = arith.constant 240 : index
    %c0_215 = arith.constant 0 : index
    %271 = vector.load %arg14[%c240_214, %c0_215] : memref<256x4xf32, #tpu.memory_space<vmem>>, vector<16x4xf32>
    tpu.vector_store %arg14[%c240_214, %c0_215], %270 {strides = array<i32>} : memref<256x4xf32, #tpu.memory_space<vmem>>, vector<16x4xf32>,
    %c0_216 = arith.constant 0 : index
    %c0_217 = arith.constant 0 : index
    %272 = vector.load %arg14[%c0_216, %c0_217] : memref<256x4xf32, #tpu.memory_space<vmem>>, vector<256x4xf32>
    %c0_218 = arith.constant 0 : index
    %c0_219 = arith.constant 0 : index
    %273 = vector.load %arg7[%c0_218, %c0_219] : memref<4x8xf32, #tpu.memory_space<vmem>>, vector<4x8xf32>
    %cst_220 = arith.constant dense<0.000000e+00> : vector<256x8xf32>
    %274 = tpu.matmul %272, %273, %cst_220 {dimension_numbers = #tpu.dot_dimension_numbers<[1], [0], [0], [1], [0, 0, 1, 1], [], []>, precision = #tpu.contract_precision<fp32>} : vector<256x4xf32>, vector<4x8xf32>, vector<256x8xf32> -> vector<256x8xf32>
    %c0_221 = arith.constant 0 : index
    %c0_222 = arith.constant 0 : index
    %275 = vector.load %arg8[%c0_221, %c0_222] : memref<1x8xf32, #tpu.memory_space<vmem>>, vector<1x8xf32>
    %276 = vector.broadcast %275 : vector<1x8xf32> to vector<256x8xf32>
    %277 = arith.mulf %274, %276 : vector<256x8xf32>
    %c0_223 = arith.constant 0 : index
    %c0_224 = arith.constant 0 : index
    %278 = vector.load %arg9[%c0_223, %c0_224] : memref<1x8xf32, #tpu.memory_space<vmem>>, vector<1x8xf32>
    %279 = vector.broadcast %278 : vector<1x8xf32> to vector<256x8xf32>
    %280 = arith.addf %277, %279 : vector<256x8xf32>
    %c0_225 = arith.constant 0 : index
    %c0_226 = arith.constant 0 : index
    %c0_227 = arith.constant 0 : index
    %281 = vector.load %arg10[%c0_225, %c0_226, %c0_227] : memref<1x256x8xf32, #tpu.memory_space<vmem>>, vector<1x256x8xf32>
    %282 = vector.shape_cast %281 : vector<1x256x8xf32> to vector<256x8xf32>
    %283 = vector.shape_cast %280 : vector<256x8xf32> to vector<1x256x8xf32>
    tpu.vector_store %arg10[%c0_225, %c0_226, %c0_227], %283 {strides = array<i32>} : memref<1x256x8xf32, #tpu.memory_space<vmem>>, vector<1x256x8xf32>,
    return
  }
  func.func @transform_0(%arg0: i32) -> (i32, i32, i32, i32) {
    %c0_i32 = arith.constant 0 : i32
    %c0_i32_0 = arith.constant 0 : i32
    %c0_i32_1 = arith.constant 0 : i32
    %c0_i32_2 = arith.constant 0 : i32
    return %arg0, %c0_i32, %c0_i32_0, %c0_i32_1 : i32, i32, i32, i32
  }
  func.func @transform_1(%arg0: i32) -> (i32, i32, i32) {
    %c0_i32 = arith.constant 0 : i32
    %c0_i32_0 = arith.constant 0 : i32
    %c0_i32_1 = arith.constant 0 : i32
    %c0_i32_2 = arith.constant 0 : i32
    return %c0_i32, %c0_i32_0, %c0_i32_1 : i32, i32, i32
  }
  func.func @transform_2(%arg0: i32) -> (i32, i32) {
    %c0_i32 = arith.constant 0 : i32
    %c0_i32_0 = arith.constant 0 : i32
    %c0_i32_1 = arith.constant 0 : i32
    return %c0_i32, %c0_i32_0 : i32, i32
  }
  func.func @transform_3(%arg0: i32) -> (i32, i32) {
    %c0_i32 = arith.constant 0 : i32
    %c0_i32_0 = arith.constant 0 : i32
    %c0_i32_1 = arith.constant 0 : i32
    return %c0_i32, %c0_i32_0 : i32, i32
  }
  func.func @transform_4(%arg0: i32) -> (i32, i32) {
    %c0_i32 = arith.constant 0 : i32
    %c0_i32_0 = arith.constant 0 : i32
    %c0_i32_1 = arith.constant 0 : i32
    return %c0_i32, %c0_i32_0 : i32, i32
  }
  func.func @transform_5(%arg0: i32) -> (i32, i32, i32) {
    %c0_i32 = arith.constant 0 : i32
    %c0_i32_0 = arith.constant 0 : i32
    %c0_i32_1 = arith.constant 0 : i32
    %c0_i32_2 = arith.constant 0 : i32
    return %c0_i32, %c0_i32_0, %c0_i32_1 : i32, i32, i32
  }
  func.func @transform_6(%arg0: i32) -> (i32, i32) {
    %c0_i32 = arith.constant 0 : i32
    %c0_i32_0 = arith.constant 0 : i32
    %c0_i32_1 = arith.constant 0 : i32
    return %c0_i32, %c0_i32_0 : i32, i32
  }
  func.func @transform_7(%arg0: i32) -> (i32, i32) {
    %c0_i32 = arith.constant 0 : i32
    %c0_i32_0 = arith.constant 0 : i32
    %c0_i32_1 = arith.constant 0 : i32
    return %c0_i32, %c0_i32_0 : i32, i32
  }
  func.func @transform_8(%arg0: i32) -> (i32, i32) {
    %c0_i32 = arith.constant 0 : i32
    %c0_i32_0 = arith.constant 0 : i32
    %c0_i32_1 = arith.constant 0 : i32
    return %c0_i32, %c0_i32_0 : i32, i32
  }
  func.func @transform_9(%arg0: i32) -> (i32, i32, i32) {
    %c0_i32 = arith.constant 0 : i32
    %c0_i32_0 = arith.constant 0 : i32
    %c0_i32_1 = arith.constant 0 : i32
    return %arg0, %c0_i32, %c0_i32_0 : i32, i32, i32
  }
}

</mosaic_0001>

<bundles_post_ra>
// kernel: tpu_custom_call.1
= control target key start
LH: loop header
LB: loop body
LE: loop exit
PB: predicated region body
PF: predicated region fallthrough
CT: control target
= control target key end

     0   :  { %s8061_s30 = smov 0   ;;  %s11336_s0 = inlined_call_operand.vmem [shape: f32[2,16,16,4], index: 0, kind: input, shape index: {}]   ;;  %s11337_s1 = inlined_call_operand.vmem [shape: f32[3,3,4], index: 1, kind: input, shape index: {}]   ;;  %s11338_s2 = inlined_call_operand.vmem [shape: f32[4,4], index: 2, kind: input, shape index: {}]   ;;  %s11339_s3 = inlined_call_operand.vmem [shape: f32[1,4], index: 3, kind: input, shape index: {}]   ;;  %s11340_s4 = inlined_call_operand.vmem [shape: f32[1,4], index: 4, kind: input, shape index: {}]   ;;  %s11341_s5 = inlined_call_operand.vmem [shape: f32[3,3,4], index: 5, kind: input, shape index: {}]   ;;  %s11342_s6 = inlined_call_operand.vmem [shape: f32[4,8], index: 6, kind: input, shape index: {}]   ;;  %s11343_s7 = inlined_call_operand.vmem [shape: f32[1,8], index: 7, kind: input, shape index: {}]   ;;  %s11344_s8 = inlined_call_operand.vmem [shape: f32[1,8], index: 8, kind: input, shape index: {}]   ;;  %s11345_s9 = inlined_call_operand.vmem [shape: f32[2,256,8], index: 9, kind: output, shape index: {}]  }
   0x1 LB: > { %s6610_s10 = sadd.s32 4294967295, %s8008_s30   ;;  %p6614_p0 = scmp.ge.s32.totalorder %s8008_s30, 1  ;;  %s8008_s30 = sphi %s8061_s30, %s19_s30  }
   0x2   : > { %p287_p1 = scmp.lt.s32.totalorder %s8008_s30, 3 }
   0x4   : > { %p288_p2 = pnand %p6614_p0, %p287_p1 }
   0x6   : > { %291 = sbr.rel (%p288_p2) target bundleno = 1545 (0x609), region = 56 }
   0xd   : > { %v1552_v0 = vld [vmem:[%s11338_s2] sm:$0xf]  ;;  %vm1649_vm0 = vcmask 1043456   ;;  %p8074_p3 = scmp.lt.s32.totalorder %s6610_s10, 1  ;;  %vm333_vm1 = vcmask 31744   ;;  %v8010_v2 = vmov 0.0  }
   0xe   : > { %v8079_v1 = vsel %vm1649_vm0, %v1552_v0, 0  ;;  %334 = vst.msk [vmem:[#allocation2] sm:$0xff] %vm333_vm1, %v8010_v2  ;;  %335 = vst.msk [vmem:[#allocation2 + $0x8] sm:$0xff] %vm333_vm1, %v8010_v2  ;;  %vm337_vm2 = vcmask 24576   ;;  %v8395_v5 = vld [vmem:[%s11337_s1] ss:$0 sm:$0xff] }
   0xf   : > { %336 = vst.msk [vmem:[#allocation2 + $0x10] sm:$0xff] %vm333_vm1, %v8010_v2  ;;  %339 = vst.msk [vmem:[#allocation2 + $0x20] sm:$0xff] %vm333_vm1, %v8010_v2  ;;  %v8298_v3 = vand.u32 4294901760, %v8079_v1  ;;  %s11767_s10 = smov (!%p8074_p3, %s6610_s10), 1  ;;  %v8400_v6 = vld [vmem:[%s11337_s1 + $0x1] ss:$0 sm:$0xff] }
  0x10   : > { %340 = vst.msk [vmem:[#allocation2 + $0x28] sm:$0xff] %vm333_vm1, %v8010_v2  ;;  %341 = vst.msk [vmem:[#allocation2 + $0x30] sm:$0xff] %vm333_vm1, %v8010_v2  ;;  %s6655_s14 = sshll.u32 %s11767_s10, 8  ;;  %v8405_v7 = vld [vmem:[%s11337_s1 + $0x2] ss:$0 sm:$0xff]  ;;  %vm6522_vm3 = vcmask 64512  }
  0x11   : > { %343 = vst.msk [vmem:[#allocation2 + $0x40] sm:$0xff] %vm333_vm1, %v8010_v2  ;;  %344 = vst.msk [vmem:[#allocation2 + $0x48] sm:$0xff] %vm333_vm1, %v8010_v2  ;;  %7053 = vmatprep.subr.mxu0 %v8298_v3  ;;  %v8382_v4 = vsub.f32 %v8079_v1, %v8298_v3  ;;  %s8390_s17 = scalar_lea.vmem %s11336_s0, %s6655_s14  ;;  %v8440_v44 = vld [vmem:[%s11337_s1 + $0x4] ss:$0 sm:$0xff]  ;;  %v8445_v45 = vld [vmem:[%s11337_s1 + $0x5] ss:$0 sm:$0xff]  ;;  %s11204_s18 = scalar_lea.vmem %s11345_s9, %s6655_s14 }
  0x12   : > { %345 = vst.msk [vmem:[#allocation2 + $0x50] sm:$0xff] %vm333_vm1, %v8010_v2  ;;  %347 = vst.msk [vmem:[#allocation2 + $0x60] sm:$0xff] %vm333_vm1, %v8010_v2  ;;  %7054 = vmatpush3.msra.mxu0 %v8298_v3  ;;  %v479_v8 = vld [vmem:[%s8390_s17] sm:$0xff]  ;;  %v480_v9 = vld [vmem:[%s8390_s17 + $0x8] sm:$0xff] }
  0x13   : > { %348 = vst.msk [vmem:[#allocation2 + $0x68] sm:$0xff] %vm333_vm1, %v8010_v2  ;;  %349 = vst.msk [vmem:[#allocation2 + $0x70] sm:$0xff] %vm333_vm1, %v8010_v2  ;;  %v481_v10 = vld [vmem:[%s8390_s17 + $0x10] sm:$0xff]  ;;  %v8411_v11 = vand.u32 4294901760, %v8382_v4  ;;  %v482_v12 = vld [vmem:[%s8390_s17 + $0x18] sm:$0xff]  ;;  %v511_v13 = vmax.f32 %v479_v8, 0.0 }
  0x14   : > { %351 = vst.msk [vmem:[#allocation2 + $0x80] sm:$0xff] %vm333_vm1, %v8010_v2  ;;  %352 = vst.msk [vmem:[#allocation2 + $0x88] sm:$0xff] %vm333_vm1, %v8010_v2  ;;  %v512_v14 = vmax.f32 %v480_v9, 0.0  ;;  %v513_v15 = vmax.f32 %v481_v10, 0.0  ;;  %v483_v16 = vld [vmem:[%s8390_s17 + $0x20] sm:$0xff]  ;;  %v484_v17 = vld [vmem:[%s8390_s17 + $0x28] sm:$0xff] }
  0x15   : > { %353 = vst.msk [vmem:[#allocation2 + $0x90] sm:$0xff] %vm333_vm1, %v8010_v2  ;;  %355 = vst.msk [vmem:[#allocation2 + $0xa0] sm:$0xff] %vm333_vm1, %v8010_v2  ;;  %v514_v18 = vmax.f32 %v482_v12, 0.0  ;;  %v577_v19 = vld [vmem:[#allocation2 + $0x7] sm:$0xff]  ;;  %v2043_v22 = vsub.f32 %v8382_v4, %v8411_v11  ;;  %v515_v23 = vmax.f32 %v483_v16, 0.0  ;;  %v516_v24 = vmax.f32 %v484_v17, 0.0 }
  0x16   : > { %356 = vst.msk [vmem:[#allocation2 + $0xa8] sm:$0xff] %vm333_vm1, %v8010_v2  ;;  %357 = vst.msk [vmem:[#allocation2 + $0xb0] sm:$0xff] %vm333_vm1, %v8010_v2  ;;  %v678_v20 = vld [vmem:[#allocation2 + $0x8] sm:$0xff]  ;;  %v613_v25 = vmul.f32 %v8395_v5, %v577_v19  ;;  %v679_v28 = vld [vmem:[#allocation2 + $0x10] sm:$0xff] }
  0x17   : > { %359 = vst.msk [vmem:[#allocation2 + $0xc0] sm:$0xff] %vm333_vm1, %v8010_v2  ;;  %360 = vst.msk [vmem:[#allocation2 + $0xc8] sm:$0xff] %vm333_vm1, %v8010_v2  ;;  %v779_v21 = vld [vmem:[#allocation2 + $0x9] sm:$0xff]  ;;  %v714_v26 = vmul.f32 %v8400_v6, %v678_v20  ;;  %v8425_v31 = vand.u32 4294901760, %v2043_v22  ;;  %v715_v33 = vmul.f32 %v8400_v6, %v679_v28  ;;  %v486_v35 = vld [vmem:[%s8390_s17 + $0x38] sm:$0xff] }
  0x18   : > { %361 = vst.msk [vmem:[#allocation2 + $0xd0] sm:$0xff] %vm333_vm1, %v8010_v2  ;;  %363 = vst.msk [vmem:[#allocation2 + $0xe0] sm:$0xff] %vm333_vm1, %v8010_v2  ;;  %v578_v27 = vld [vmem:[#allocation2 + $0xf] sm:$0xff]  ;;  %v815_v30 = vmul.f32 %v8405_v7, %v779_v21  ;;  %v487_v36 = vld [vmem:[%s8390_s17 + $0x40] sm:$0xff]  ;;  %v518_v39 = vmax.f32 %v486_v35, 0.0 }
  0x19   : > { %364 = vst.msk [vmem:[#allocation2 + $0xe8] sm:$0xff] %vm333_vm1, %v8010_v2  ;;  %365 = vst.msk [vmem:[#allocation2 + $0xf0] sm:$0xff] %vm333_vm1, %v8010_v2  ;;  %v614_v32 = vmul.f32 %v8395_v5, %v578_v27  ;;  %v485_v34 = vld [vmem:[%s8390_s17 + $0x30] sm:$0xff]  ;;  %v746_v37 = vadd.f32 %v714_v26, %v613_v25  ;;  %v488_v40 = vld [vmem:[%s8390_s17 + $0x48] sm:$0xff]  ;;  %v519_v41 = vmax.f32 %v487_v36, 0.0  ;;  %7103 = vmatprep.subr.mxu0 %v8425_v31 }
  0x1a   : > { %367 = vst.msk [vmem:[#allocation2 + $0x100] sm:$0xff] %vm333_vm1, %v8010_v2  ;;  %368 = vst.msk [vmem:[#allocation2 + $0x108] sm:$0xff] %vm333_vm1, %v8010_v2  ;;  %v517_v38 = vmax.f32 %v485_v34, 0.0  ;;  %v489_v42 = vld [vmem:[%s8390_s17 + $0x50] sm:$0xff]  ;;  %v490_v43 = vld [vmem:[%s8390_s17 + $0x58] sm:$0xff]  ;;  %v520_v47 = vmax.f32 %v488_v40, 0.0 }
  0x1b   : > { %369 = vst.msk [vmem:[#allocation2 + $0x110] sm:$0xff] %vm333_vm1, %v8010_v2  ;;  %371 = vst.msk [vmem:[#allocation2 + $0x120] sm:$0xff] %vm333_vm1, %v8010_v2  ;;  %v521_v48 = vmax.f32 %v489_v42, 0.0  ;;  %v522_v49 = vmax.f32 %v490_v43, 0.0  ;;  %v491_v50 = vld [vmem:[%s8390_s17 + $0x60] sm:$0xff]  ;;  %v492_v51 = vld [vmem:[%s8390_s17 + $0x68] sm:$0xff]  ;;  %v747_v56 = vadd.f32 %v715_v33, %v614_v32  ;;  %v847_v12 = vadd.f32 %v815_v30, %v746_v37 }
  0x1c   : > { %372 = vst.msk [vmem:[#allocation2 + $0x128] sm:$0xff] %vm333_vm1, %v8010_v2  ;;  %373 = vst.msk [vmem:[#allocation2 + $0x130] sm:$0xff] %vm333_vm1, %v8010_v2  ;;  %v493_v52 = vld [vmem:[%s8390_s17 + $0x70] sm:$0xff]  ;;  %v8455_v53 = vld [vmem:[%s11337_s1 + $0x6] ss:$0 sm:$0xff]  ;;  %v523_v57 = vmax.f32 %v491_v50, 0.0 }
  0x1d   : > { %375 = vst.msk [vmem:[#allocation2 + $0x140] sm:$0xff] %vm333_vm1, %v8010_v2  ;;  %376 = vst.msk [vmem:[#allocation2 + $0x148] sm:$0xff] %vm333_vm1, %v8010_v2  ;;  %v8460_v54 = vld [vmem:[%s11337_s1 + $0x8] ss:$0 sm:$0xff]  ;;  %v8465_v55 = vld [vmem:[%s11337_s1 + $0x9] ss:$0 sm:$0xff] }
  0x1e   : > { %377 = vst.msk [vmem:[#allocation2 + $0x150] sm:$0xff] %vm333_vm1, %v8010_v2  ;;  %379 = vst.msk [vmem:[#allocation2 + $0x160] sm:$0xff] %vm333_vm1, %v8010_v2  ;;  %v524_v58 = vmax.f32 %v492_v51, 0.0  ;;  %v494_v59 = vld [vmem:[%s8390_s17 + $0x78] sm:$0xff]  ;;  %v525_v60 = vmax.f32 %v493_v52, 0.0  ;;  %v495_v61 = vld [vmem:[%s8390_s17 + $0x80] sm:$0xff] }
  0x1f   : > { %380 = vst.msk [vmem:[#allocation2 + $0x168] sm:$0xff] %vm333_vm1, %v8010_v2  ;;  %381 = vst.msk [vmem:[#allocation2 + $0x170] sm:$0xff] %vm333_vm1, %v8010_v2  ;;  %v496_v62 = vld [vmem:[%s8390_s17 + $0x88] sm:$0xff]  ;;  %v526_v0 = vmax.f32 %v494_v59, 0.0  ;;  %v527_v1 = vmax.f32 %v495_v61, 0.0  ;;  %v497_v8 = vld [vmem:[%s8390_s17 + $0x90] sm:$0xff] }
  0x20   : > { %383 = vst.msk [vmem:[#allocation2 + $0x180] sm:$0xff] %vm333_vm1, %v8010_v2  ;;  %384 = vst.msk [vmem:[#allocation2 + $0x188] sm:$0xff] %vm333_vm1, %v8010_v2  ;;  %v8476_v63 = vld [vmem:[%s11337_s1 + $0xa] ss:$0 sm:$0xff]  ;;  %v498_v9 = vld [vmem:[%s8390_s17 + $0x98] sm:$0xff] }
  0x21   : > { %385 = vst.msk [vmem:[#allocation2 + $0x190] sm:$0xff] %vm333_vm1, %v8010_v2  ;;  %387 = vst.msk [vmem:[#allocation2 + $0x1a0] sm:$0xff] %vm333_vm1, %v8010_v2  ;;  %v499_v10 = vld [vmem:[%s8390_s17 + $0xa0] sm:$0xff]  ;;  %v501_v17 = vld [vmem:[%s8390_s17 + $0xb0] sm:$0xff] }
  0x22   : > { %388 = vst.msk [vmem:[#allocation2 + $0x1a8] sm:$0xff] %vm333_vm1, %v8010_v2  ;;  %389 = vst.msk [vmem:[#allocation2 + $0x1b0] sm:$0xff] %vm333_vm1, %v8010_v2  ;;  %v531_v16 = vmax.f32 %v499_v10, 0.0  ;;  %v533_v22 = vmax.f32 %v501_v17, 0.0 }
  0x23   : > { %391 = vst.msk [vmem:[#allocation2 + $0x1c0] sm:$0xff] %vm333_vm1, %v8010_v2  ;;  %392 = vst.msk [vmem:[#allocation2 + $0x1c8] sm:$0xff] %vm333_vm1, %v8010_v2 }
  0x24   : > { %393 = vst.msk [vmem:[#allocation2 + $0x1d0] sm:$0xff] %vm333_vm1, %v8010_v2  ;;  %395 = vst.msk [vmem:[#allocation2 + $0x1e0] sm:$0xff] %vm333_vm1, %v8010_v2 }
  0x25   : > { %396 = vst.msk [vmem:[#allocation2 + $0x1e8] sm:$0xff] %vm333_vm1, %v8010_v2  ;;  %397 = vst.msk [vmem:[#allocation2 + $0x1f0] sm:$0xff] %vm333_vm1, %v8010_v2 }
  0x26   : > { %399 = vst.msk [vmem:[#allocation2 + $0x200] sm:$0xff] %vm333_vm1, %v8010_v2  ;;  %400 = vst.msk [vmem:[#allocation2 + $0x208] sm:$0xff] %vm333_vm1, %v8010_v2 }
  0x27   : > { %401 = vst.msk [vmem:[#allocation2 + $0x210] sm:$0xff] %vm333_vm1, %v8010_v2  ;;  %403 = vst.msk [vmem:[#allocation2 + $0x220] sm:$0xff] %vm333_vm1, %v8010_v2 }
  0x28   : > { %404 = vst.msk [vmem:[#allocation2 + $0x228] sm:$0xff] %vm333_vm1, %v8010_v2  ;;  %405 = vst.msk [vmem:[#allocation2 + $0x230] sm:$0xff] %vm333_vm1, %v8010_v2 }
  0x29   : > { %407 = vst.msk [vmem:[#allocation3] sm:$0xff] %vm333_vm1, %v8010_v2  ;;  %408 = vst.msk [vmem:[#allocation3 + $0x8] sm:$0xff] %vm333_vm1, %v8010_v2 }
  0x2a   : > { %409 = vst.msk [vmem:[#allocation3 + $0x10] sm:$0xff] %vm333_vm1, %v8010_v2  ;;  %411 = vst.msk [vmem:[#allocation3 + $0x20] sm:$0xff] %vm333_vm1, %v8010_v2 }
  0x2b   : > { %412 = vst.msk [vmem:[#allocation3 + $0x28] sm:$0xff] %vm333_vm1, %v8010_v2  ;;  %413 = vst.msk [vmem:[#allocation3 + $0x30] sm:$0xff] %vm333_vm1, %v8010_v2 }
  0x2c   : > { %415 = vst.msk [vmem:[#allocation3 + $0x40] sm:$0xff] %vm333_vm1, %v8010_v2  ;;  %416 = vst.msk [vmem:[#allocation3 + $0x48] sm:$0xff] %vm333_vm1, %v8010_v2 }
  0x2d   : > { %417 = vst.msk [vmem:[#allocation3 + $0x50] sm:$0xff] %vm333_vm1, %v8010_v2  ;;  %419 = vst.msk [vmem:[#allocation3 + $0x60] sm:$0xff] %vm333_vm1, %v8010_v2 }
  0x2e   : > { %420 = vst.msk [vmem:[#allocation3 + $0x68] sm:$0xff] %vm333_vm1, %v8010_v2  ;;  %421 = vst.msk [vmem:[#allocation3 + $0x70] sm:$0xff] %vm333_vm1, %v8010_v2 }
  0x2f   : > { %423 = vst.msk [vmem:[#allocation3 + $0x80] sm:$0xff] %vm333_vm1, %v8010_v2  ;;  %424 = vst.msk [vmem:[#allocation3 + $0x88] sm:$0xff] %vm333_vm1, %v8010_v2 }
  0x30   : > { %425 = vst.msk [vmem:[#allocation3 + $0x90] sm:$0xff] %vm333_vm1, %v8010_v2  ;;  %427 = vst.msk [vmem:[#allocation3 + $0xa0] sm:$0xff] %vm333_vm1, %v8010_v2 }
  0x31   : > { %428 = vst.msk [vmem:[#allocation3 + $0xa8] sm:$0xff] %vm333_vm1, %v8010_v2  ;;  %429 = vst.msk [vmem:[#allocation3 + $0xb0] sm:$0xff] %vm333_vm1, %v8010_v2 }
  0x32   : > { %431 = vst.msk [vmem:[#allocation3 + $0xc0] sm:$0xff] %vm333_vm1, %v8010_v2  ;;  %432 = vst.msk [vmem:[#allocation3 + $0xc8] sm:$0xff] %vm333_vm1, %v8010_v2 }
  0x33   : > { %433 = vst.msk [vmem:[#allocation3 + $0xd0] sm:$0xff] %vm333_vm1, %v8010_v2  ;;  %435 = vst.msk [vmem:[#allocation3 + $0xe0] sm:$0xff] %vm333_vm1, %v8010_v2 }
  0x34   : > { %436 = vst.msk [vmem:[#allocation3 + $0xe8] sm:$0xff] %vm333_vm1, %v8010_v2  ;;  %437 = vst.msk [vmem:[#allocation3 + $0xf0] sm:$0xff] %vm333_vm1, %v8010_v2 }
  0x35   : > { %439 = vst.msk [vmem:[#allocation3 + $0x100] sm:$0xff] %vm333_vm1, %v8010_v2  ;;  %440 = vst.msk [vmem:[#allocation3 + $0x108] sm:$0xff] %vm333_vm1, %v8010_v2 }
  0x36   : > { %441 = vst.msk [vmem:[#allocation3 + $0x110] sm:$0xff] %vm333_vm1, %v8010_v2  ;;  %443 = vst.msk [vmem:[#allocation3 + $0x120] sm:$0xff] %vm333_vm1, %v8010_v2 }
  0x37   : > { %444 = vst.msk [vmem:[#allocation3 + $0x128] sm:$0xff] %vm333_vm1, %v8010_v2  ;;  %445 = vst.msk [vmem:[#allocation3 + $0x130] sm:$0xff] %vm333_vm1, %v8010_v2 }
  0x38   : > { %447 = vst.msk [vmem:[#allocation3 + $0x140] sm:$0xff] %vm333_vm1, %v8010_v2  ;;  %448 = vst.msk [vmem:[#allocation3 + $0x148] sm:$0xff] %vm333_vm1, %v8010_v2 }
  0x39   : > { %449 = vst.msk [vmem:[#allocation3 + $0x150] sm:$0xff] %vm333_vm1, %v8010_v2  ;;  %451 = vst.msk [vmem:[#allocation3 + $0x160] sm:$0xff] %vm333_vm1, %v8010_v2 }
  0x3a   : > { %452 = vst.msk [vmem:[#allocation3 + $0x168] sm:$0xff] %vm333_vm1, %v8010_v2  ;;  %453 = vst.msk [vmem:[#allocation3 + $0x170] sm:$0xff] %vm333_vm1, %v8010_v2 }
  0x3b   : > { %455 = vst.msk [vmem:[#allocation3 + $0x180] sm:$0xff] %vm333_vm1, %v8010_v2  ;;  %456 = vst.msk [vmem:[#allocation3 + $0x188] sm:$0xff] %vm333_vm1, %v8010_v2 }
  0x3c   : > { %457 = vst.msk [vmem:[#allocation3 + $0x190] sm:$0xff] %vm333_vm1, %v8010_v2  ;;  %459 = vst.msk [vmem:[#allocation3 + $0x1a0] sm:$0xff] %vm333_vm1, %v8010_v2 }
  0x3d   : > { %460 = vst.msk [vmem:[#allocation3 + $0x1a8] sm:$0xff] %vm333_vm1, %v8010_v2  ;;  %461 = vst.msk [vmem:[#allocation3 + $0x1b0] sm:$0xff] %vm333_vm1, %v8010_v2 }
  0x3e   : > { %463 = vst.msk [vmem:[#allocation3 + $0x1c0] sm:$0xff] %vm333_vm1, %v8010_v2  ;;  %464 = vst.msk [vmem:[#allocation3 + $0x1c8] sm:$0xff] %vm333_vm1, %v8010_v2 }
  0x3f   : > { %465 = vst.msk [vmem:[#allocation3 + $0x1d0] sm:$0xff] %vm333_vm1, %v8010_v2  ;;  %467 = vst.msk [vmem:[#allocation3 + $0x1e0] sm:$0xff] %vm333_vm1, %v8010_v2 }
  0x40   : > { %468 = vst.msk [vmem:[#allocation3 + $0x1e8] sm:$0xff] %vm333_vm1, %v8010_v2  ;;  %469 = vst.msk [vmem:[#allocation3 + $0x1f0] sm:$0xff] %vm333_vm1, %v8010_v2 }
  0x41   : > { %471 = vst.msk [vmem:[#allocation3 + $0x200] sm:$0xff] %vm333_vm1, %v8010_v2  ;;  %472 = vst.msk [vmem:[#allocation3 + $0x208] sm:$0xff] %vm333_vm1, %v8010_v2 }
  0x42   : > { %473 = vst.msk [vmem:[#allocation3 + $0x210] sm:$0xff] %vm333_vm1, %v8010_v2  ;;  %475 = vst.msk [vmem:[#allocation3 + $0x220] sm:$0xff] %vm333_vm1, %v8010_v2 }
  0x43   : > { %476 = vst.msk [vmem:[#allocation3 + $0x228] sm:$0xff] %vm333_vm1, %v8010_v2  ;;  %477 = vst.msk [vmem:[#allocation3 + $0x230] sm:$0xff] %vm333_vm1, %v8010_v2 }
  0x44   : > { %338 = vst.msk [vmem:[#allocation2 + $0x18] sm:$0x1] %vm337_vm2, %v8010_v2  ;;  %342 = vst.msk [vmem:[#allocation2 + $0x38] sm:$0x1] %vm337_vm2, %v8010_v2 }
  0x45   : > { %346 = vst.msk [vmem:[#allocation2 + $0x58] sm:$0x1] %vm337_vm2, %v8010_v2  ;;  %350 = vst.msk [vmem:[#allocation2 + $0x78] sm:$0x1] %vm337_vm2, %v8010_v2 }
  0x46   : > { %354 = vst.msk [vmem:[#allocation2 + $0x98] sm:$0x1] %vm337_vm2, %v8010_v2  ;;  %358 = vst.msk [vmem:[#allocation2 + $0xb8] sm:$0x1] %vm337_vm2, %v8010_v2 }
  0x47   : > { %362 = vst.msk [vmem:[#allocation2 + $0xd8] sm:$0x1] %vm337_vm2, %v8010_v2  ;;  %366 = vst.msk [vmem:[#allocation2 + $0xf8] sm:$0x1] %vm337_vm2, %v8010_v2 }
  0x48   : > { %370 = vst.msk [vmem:[#allocation2 + $0x118] sm:$0x1] %vm337_vm2, %v8010_v2  ;;  %374 = vst.msk [vmem:[#allocation2 + $0x138] sm:$0x1] %vm337_vm2, %v8010_v2 }
  0x49   : > { %378 = vst.msk [vmem:[#allocation2 + $0x158] sm:$0x1] %vm337_vm2, %v8010_v2  ;;  %382 = vst.msk [vmem:[#allocation2 + $0x178] sm:$0x1] %vm337_vm2, %v8010_v2 }
  0x4a   : > { %386 = vst.msk [vmem:[#allocation2 + $0x198] sm:$0x1] %vm337_vm2, %v8010_v2  ;;  %390 = vst.msk [vmem:[#allocation2 + $0x1b8] sm:$0x1] %vm337_vm2, %v8010_v2 }
  0x4b   : > { %394 = vst.msk [vmem:[#allocation2 + $0x1d8] sm:$0x1] %vm337_vm2, %v8010_v2  ;;  %398 = vst.msk [vmem:[#allocation2 + $0x1f8] sm:$0x1] %vm337_vm2, %v8010_v2  ;;  %v780_v29 = vld [vmem:[#allocation2 + $0x11] sm:$0xff] }
  0x4c   : > { %402 = vst.msk [vmem:[#allocation2 + $0x218] sm:$0x1] %vm337_vm2, %v8010_v2  ;;  %406 = vst.msk [vmem:[#allocation2 + $0x238] sm:$0x1] %vm337_vm2, %v8010_v2  ;;  %v816_v46 = vmul.f32 %v8405_v7, %v780_v29 }
  0x4d   : > { %410 = vst.msk [vmem:[#allocation3 + $0x18] sm:$0x1] %vm337_vm2, %v8010_v2  ;;  %414 = vst.msk [vmem:[#allocation3 + $0x38] sm:$0x1] %vm337_vm2, %v8010_v2 }
  0x4e   : > { %418 = vst.msk [vmem:[#allocation3 + $0x58] sm:$0x1] %vm337_vm2, %v8010_v2  ;;  %422 = vst.msk [vmem:[#allocation3 + $0x78] sm:$0x1] %vm337_vm2, %v8010_v2  ;;  %v848_v29 = vadd.f32 %v816_v46, %v747_v56 }
  0x4f   : > { %426 = vst.msk [vmem:[#allocation3 + $0x98] sm:$0x1] %vm337_vm2, %v8010_v2  ;;  %430 = vst.msk [vmem:[#allocation3 + $0xb8] sm:$0x1] %vm337_vm2, %v8010_v2 }
  0x50   : > { %434 = vst.msk [vmem:[#allocation3 + $0xd8] sm:$0x1] %vm337_vm2, %v8010_v2  ;;  %438 = vst.msk [vmem:[#allocation3 + $0xf8] sm:$0x1] %vm337_vm2, %v8010_v2 }
  0x51   : > { %442 = vst.msk [vmem:[#allocation3 + $0x118] sm:$0x1] %vm337_vm2, %v8010_v2  ;;  %446 = vst.msk [vmem:[#allocation3 + $0x138] sm:$0x1] %vm337_vm2, %v8010_v2 }
  0x52   : > { %450 = vst.msk [vmem:[#allocation3 + $0x158] sm:$0x1] %vm337_vm2, %v8010_v2  ;;  %454 = vst.msk [vmem:[#allocation3 + $0x178] sm:$0x1] %vm337_vm2, %v8010_v2 }
  0x53   : > { %458 = vst.msk [vmem:[#allocation3 + $0x198] sm:$0x1] %vm337_vm2, %v8010_v2  ;;  %462 = vst.msk [vmem:[#allocation3 + $0x1b8] sm:$0x1] %vm337_vm2, %v8010_v2 }
  0x54   : > { %466 = vst.msk [vmem:[#allocation3 + $0x1d8] sm:$0x1] %vm337_vm2, %v8010_v2  ;;  %470 = vst.msk [vmem:[#allocation3 + $0x1f8] sm:$0x1] %vm337_vm2, %v8010_v2 }
  0x55   : > { %474 = vst.msk [vmem:[#allocation3 + $0x218] sm:$0x1] %vm337_vm2, %v8010_v2  ;;  %478 = vst.msk [vmem:[#allocation3 + $0x238] sm:$0x1] %vm337_vm2, %v8010_v2  ;;  %v528_v2 = vmax.f32 %v496_v62, 0.0 }
  0x56   : > { %11536 = vst [vmem:[#allocation6_spill] sm:$0xff] %v8411_v11  ;;  %544 = vst.msk [vmem:[#allocation2 + $0x28] sm:$0xff] %vm333_vm1, %v511_v13  ;;  %v529_v13 = vmax.f32 %v497_v8, 0.0 }
  0x57   : > { %545 = vst.msk [vmem:[#allocation2 + $0x30] sm:$0xff] %vm333_vm1, %v512_v14  ;;  %546 = vst.msk [vmem:[#allocation2 + $0x48] sm:$0xff] %vm333_vm1, %v513_v15  ;;  %v530_v14 = vmax.f32 %v498_v9, 0.0  ;;  %v500_v15 = vld [vmem:[%s8390_s17 + $0xa8] sm:$0xff] }
  0x58   : > { %547 = vst.msk [vmem:[#allocation2 + $0x50] sm:$0xff] %vm333_vm1, %v514_v18  ;;  %548 = vst.msk [vmem:[#allocation2 + $0x68] sm:$0xff] %vm333_vm1, %v515_v23  ;;  %v502_v18 = vld [vmem:[%s8390_s17 + $0xb8] sm:$0xff]  ;;  %v532_v21 = vmax.f32 %v500_v15, 0.0 }
  0x59   : > { %549 = vst.msk [vmem:[#allocation2 + $0x70] sm:$0xff] %vm333_vm1, %v516_v24  ;;  %550 = vst.msk [vmem:[#allocation2 + $0x88] sm:$0xff] %vm333_vm1, %v517_v38  ;;  %v534_v23 = vmax.f32 %v502_v18, 0.0 }
  0x5a   : > { %551 = vst.msk [vmem:[#allocation2 + $0x90] sm:$0xff] %vm333_vm1, %v518_v39  ;;  %552 = vst.msk [vmem:[#allocation2 + $0xa8] sm:$0xff] %vm333_vm1, %v519_v41 }
  0x5b   : > { %553 = vst.msk [vmem:[#allocation2 + $0xb0] sm:$0xff] %vm333_vm1, %v520_v47  ;;  %554 = vst.msk [vmem:[#allocation2 + $0xc8] sm:$0xff] %vm333_vm1, %v521_v48 }
  0x5c   : > { %555 = vst.msk [vmem:[#allocation2 + $0xd0] sm:$0xff] %vm333_vm1, %v522_v49  ;;  %556 = vst.msk [vmem:[#allocation2 + $0xe8] sm:$0xff] %vm333_vm1, %v523_v57 }
  0x5d   : > { %557 = vst.msk [vmem:[#allocation2 + $0xf0] sm:$0xff] %vm333_vm1, %v524_v58  ;;  %558 = vst.msk [vmem:[#allocation2 + $0x108] sm:$0xff] %vm333_vm1, %v525_v60  ;;  %v881_v19 = vld [vmem:[#allocation2 + $0x27] sm:$0xff] }
  0x5e   : > { %v982_v20 = vld [vmem:[#allocation2 + $0x28] sm:$0xff]  ;;  %559 = vst.msk [vmem:[#allocation2 + $0x110] sm:$0xff] %vm333_vm1, %v526_v0  ;;  %560 = vst.msk [vmem:[#allocation2 + $0x128] sm:$0xff] %vm333_vm1, %v527_v1  ;;  %v917_v24 = vmul.f32 %v8440_v44, %v881_v19  ;;  %v615_v30 = vmul.f32 %v8395_v5, %v881_v19  ;;  %v983_v37 = vld [vmem:[#allocation2 + $0x30] sm:$0xff] }
  0x5f   : > { %561 = vst.msk [vmem:[#allocation2 + $0x130] sm:$0xff] %vm333_vm1, %v528_v2  ;;  %v1018_v25 = vmul.f32 %v8445_v45, %v982_v20  ;;  %v1083_v26 = vld [vmem:[#allocation2 + $0x29] sm:$0xff]  ;;  %562 = vst.msk [vmem:[#allocation2 + $0x148] sm:$0xff] %vm333_vm1, %v529_v13  ;;  %v716_v38 = vmul.f32 %v8400_v6, %v982_v20  ;;  %v1019_v42 = vmul.f32 %v8445_v45, %v983_v37  ;;  %v1084_v43 = vld [vmem:[#allocation2 + $0x31] sm:$0xff] }
  0x60   : > { %v8495_v27 = vld [vmem:[#allocation2 + $0x47] sm:$0xff]  ;;  %563 = vst.msk [vmem:[#allocation2 + $0x150] sm:$0xff] %vm333_vm1, %v530_v14  ;;  %564 = vst.msk [vmem:[#allocation2 + $0x168] sm:$0xff] %vm333_vm1, %v531_v16  ;;  %v1119_v32 = vmul.f32 %v8455_v53, %v1083_v26  ;;  %v882_v36 = vld [vmem:[#allocation2 + $0x2f] sm:$0xff]  ;;  %v949_v39 = vadd.f32 %v917_v24, %v847_v12  ;;  %v1120_v48 = vmul.f32 %v8455_v53, %v1084_v43 }
  0x61   : > { %v8497_v28 = vld [vmem:[#allocation2 + $0x48] sm:$0xff]  ;;  %v1222_v33 = vmul.f32 %v8460_v54, %v8495_v27  ;;  %565 = vst.msk [vmem:[#allocation2 + $0x170] sm:$0xff] %vm333_vm1, %v532_v21  ;;  %566 = vst.msk [vmem:[#allocation2 + $0x188] sm:$0xff] %vm333_vm1, %v533_v22  ;;  %v918_v41 = vmul.f32 %v8440_v44, %v882_v36  ;;  %v8517_v47 = vld [vmem:[#allocation2 + $0x50] sm:$0xff]  ;;  %v748_v51 = vadd.f32 %v716_v38, %v615_v30 }
  0x62   : > { %v1323_v34 = vmul.f32 %v8465_v55, %v8497_v28  ;;  %v1388_v35 = vld [vmem:[#allocation2 + $0x49] sm:$0xff]  ;;  %567 = vst.msk [vmem:[#allocation2 + $0x190] sm:$0xff] %vm333_vm1, %v534_v23  ;;  %v1324_v50 = vmul.f32 %v8465_v55, %v8517_v47  ;;  %v1050_v52 = vadd.f32 %v1018_v25, %v949_v39  ;;  %v1389_v57 = vld [vmem:[#allocation2 + $0x51] sm:$0xff]  ;;  %v817_v58 = vmul.f32 %v8405_v7, %v1083_v26 }
  0x63   : > { %v1424_v40 = vmul.f32 %v8476_v63, %v1388_v35  ;;  %v8515_v46 = vld [vmem:[#allocation2 + $0x4f] sm:$0xff]  ;;  %v950_v56 = vadd.f32 %v918_v41, %v848_v29  ;;  %v919_v59 = vmul.f32 %v8440_v44, %v8495_v27  ;;  %v8527_v60 = vld [vmem:[#allocation2 + $0x67] sm:$0xff]  ;;  %v1425_v61 = vmul.f32 %v8476_v63, %v1389_v57 }
  0x64   : > { %v1223_v49 = vmul.f32 %v8460_v54, %v8515_v46  ;;  %v1020_v62 = vmul.f32 %v8445_v45, %v8497_v28  ;;  %v1121_v0 = vmul.f32 %v8455_v53, %v1388_v35  ;;  %v1224_v1 = vmul.f32 %v8460_v54, %v8527_v60  ;;  %v8535_v2 = vld [vmem:[#allocation2 + $0x68] sm:$0xff]  ;;  %v8555_v29 = vld [vmem:[#allocation2 + $0x70] sm:$0xff] }
  0x65   : > { %v1151_v8 = vadd.f32 %v1119_v32, %v1050_v52  ;;  %v1051_v9 = vadd.f32 %v1019_v42, %v950_v56  ;;  %v849_v10 = vadd.f32 %v817_v58, %v748_v51  ;;  %v1325_v12 = vmul.f32 %v8465_v55, %v8535_v2  ;;  %v8539_v13 = vld [vmem:[#allocation2 + $0x69] sm:$0xff]  ;;  %v8559_v38 = vld [vmem:[#allocation2 + $0x71] sm:$0xff] }
  0x66   : > { %v1426_v14 = vmul.f32 %v8476_v63, %v8539_v13  ;;  %v616_v15 = vmul.f32 %v8395_v5, %v882_v36  ;;  %v717_v16 = vmul.f32 %v8400_v6, %v983_v37  ;;  %v818_v17 = vmul.f32 %v8405_v7, %v1084_v43  ;;  %v8548_v22 = vld [vmem:[#allocation2 + $0x6f] sm:$0xff] }
  0x67   : > { %v1254_v18 = vadd.f32 %v1222_v33, %v1151_v8  ;;  %v1152_v19 = vadd.f32 %v1120_v48, %v1051_v9  ;;  %v951_v20 = vadd.f32 %v919_v59, %v849_v10  ;;  %v920_v21 = vmul.f32 %v8440_v44, %v8515_v46  ;;  %v8579_v59 = vld [vmem:[#allocation2 + $0x88] sm:$0xff] }
  0x68   : > { %v749_v23 = vadd.f32 %v717_v16, %v616_v15  ;;  %v1021_v24 = vmul.f32 %v8445_v45, %v8517_v47  ;;  %v1122_v25 = vmul.f32 %v8455_v53, %v1389_v57  ;;  %v1225_v26 = vmul.f32 %v8460_v54, %v8548_v22  ;;  %v8583_v9 = vld [vmem:[#allocation2 + $0x89] sm:$0xff] }
  0x69   : > { %v1355_v30 = vadd.f32 %v1323_v34, %v1254_v18  ;;  %v1255_v32 = vadd.f32 %v1223_v49, %v1152_v19  ;;  %v1052_v33 = vadd.f32 %v1020_v62, %v951_v20  ;;  %v1326_v36 = vmul.f32 %v8465_v55, %v8555_v29 }
  0x6a   : > { %v850_v37 = vadd.f32 %v818_v17, %v749_v23  ;;  %v617_v39 = vmul.f32 %v8395_v5, %v8495_v27  ;;  %v718_v41 = vmul.f32 %v8400_v6, %v8497_v28  ;;  %v819_v42 = vmul.f32 %v8405_v7, %v1388_v35  ;;  %v8572_v27 = vld [vmem:[#allocation2 + $0x87] sm:$0xff] }
  0x6b   : > { %v1456_v43 = vadd.f32 %v1424_v40, %v1355_v30  ;;  %v1356_v48 = vadd.f32 %v1324_v50, %v1255_v32  ;;  %v1153_v51 = vadd.f32 %v1121_v0, %v1052_v33  ;;  %v1427_v34 = vmul.f32 %v8476_v63, %v8559_v38  ;;  %v8607_v32 = vld [vmem:[#allocation2 + $0x91] sm:$0xff] }
  0x6c   : > { %v952_v49 = vadd.f32 %v920_v21, %v850_v37  ;;  %v750_v52 = vadd.f32 %v718_v41, %v617_v39  ;;  %v921_v56 = vmul.f32 %v8440_v44, %v8527_v60  ;;  %v1022_v58 = vmul.f32 %v8445_v45, %v8535_v2 }
  0x6d   : > { %1488 = vst.msk [vmem:[#allocation4] sm:$0xff] %vm333_vm1, %v1456_v43  ;;  %v1457_v28 = vadd.f32 %v1425_v61, %v1356_v48  ;;  %v1256_v35 = vadd.f32 %v1224_v1, %v1153_v51  ;;  %v1123_v40 = vmul.f32 %v8455_v53, %v8539_v13  ;;  %v1226_v50 = vmul.f32 %v8460_v54, %v8572_v27 }
  0x6e   : > { %v1053_v62 = vadd.f32 %v1021_v24, %v952_v49  ;;  %v851_v0 = vadd.f32 %v819_v42, %v750_v52  ;;  %v1327_v8 = vmul.f32 %v8465_v55, %v8579_v59  ;;  %v618_v10 = vmul.f32 %v8395_v5, %v8515_v46  ;;  %v8597_v46 = vld [vmem:[#allocation2 + $0x8f] sm:$0xff] }
  0x6f   : > { %1489 = vst.msk [vmem:[#allocation4 + $0x8] sm:$0xff] %vm333_vm1, %v1457_v28  ;;  %v1357_v61 = vadd.f32 %v1325_v12, %v1256_v35  ;;  %v1428_v1 = vmul.f32 %v8476_v63, %v8583_v9  ;;  %v719_v15 = vmul.f32 %v8400_v6, %v8517_v47  ;;  %v820_v16 = vmul.f32 %v8405_v7, %v1389_v57  ;;  %v8603_v24 = vld [vmem:[#allocation2 + $0x90] sm:$0xff] }
  0x70   : > { %v1154_v17 = vadd.f32 %v1122_v25, %v1053_v62  ;;  %v953_v18 = vadd.f32 %v921_v56, %v851_v0  ;;  %v922_v19 = vmul.f32 %v8440_v44, %v8548_v22  ;;  %v1023_v20 = vmul.f32 %v8445_v45, %v8555_v29 }
  0x71   : > { %v1458_v21 = vadd.f32 %v1426_v14, %v1357_v61  ;;  %v751_v12 = vadd.f32 %v719_v15, %v618_v10  ;;  %v1124_v23 = vmul.f32 %v8455_v53, %v8559_v38  ;;  %v1227_v47 = vmul.f32 %v8460_v54, %v8597_v46 }
  0x72   : > { %v1257_v57 = vadd.f32 %v1225_v26, %v1154_v17  ;;  %v1054_v25 = vadd.f32 %v1022_v58, %v953_v18  ;;  %v1328_v30 = vmul.f32 %v8465_v55, %v8603_v24  ;;  %v619_v33 = vmul.f32 %v8395_v5, %v8527_v60 }
  0x73   : > { %1490 = vst.msk [vmem:[#allocation4 + $0x10] sm:$0xff] %vm333_vm1, %v1458_v21  ;;  %v852_v14 = vadd.f32 %v820_v16, %v751_v12  ;;  %v1429_v37 = vmul.f32 %v8476_v63, %v8607_v32  ;;  %v720_v39 = vmul.f32 %v8400_v6, %v8535_v2  ;;  %v821_v26 = vmul.f32 %v8405_v7, %v8539_v13  ;;  %v8625_v2 = vld [vmem:[#allocation2 + $0xa7] sm:$0xff] }
  0x74   : > { %v1520_v41 = vld [vmem:[#allocation4] sm:$0xff]  ;;  %v1358_v42 = vadd.f32 %v1326_v36, %v1257_v57  ;;  %v1155_v43 = vadd.f32 %v1123_v40, %v1054_v25  ;;  %v923_v48 = vmul.f32 %v8440_v44, %v8572_v27  ;;  %v1024_v60 = vmul.f32 %v8445_v45, %v8579_v59  ;;  %v8631_v40 = vld [vmem:[#allocation2 + $0xa8] sm:$0xff] }
  0x75   : > { %v1554_v51 = vsel %vm333_vm1, %v1520_v41, 0  ;;  %v954_v49 = vadd.f32 %v922_v19, %v852_v14  ;;  %v752_v52 = vadd.f32 %v720_v39, %v619_v33  ;;  %v1125_v56 = vmul.f32 %v8455_v53, %v8583_v9  ;;  %v8655_v14 = vld [vmem:[#allocation2 + $0xa9] sm:$0xff] }
  0x76   : > { %v8627_v58 = vand.u32 4294901760, %v1554_v51  ;;  %v1521_v13 = vld [vmem:[#allocation4 + $0x8] sm:$0xff]  ;;  %v1459_v36 = vadd.f32 %v1427_v34, %v1358_v42  ;;  %v1258_v28 = vadd.f32 %v1226_v50, %v1155_v43  ;;  %v1228_v35 = vmul.f32 %v8460_v54, %v8625_v2 }
  0x77   : > { %v1557_v62 = vsel %vm333_vm1, %v1521_v13, 0  ;;  %v1055_v0 = vadd.f32 %v1023_v20, %v954_v49  ;;  %v853_v10 = vadd.f32 %v821_v26, %v752_v52  ;;  %v1329_v61 = vmul.f32 %v8465_v55, %v8631_v40  ;;  %v8676_v52 = vld [vmem:[#allocation2 + $0xaf] sm:$0xff] }
  0x78   : > { %v8637_v15 = vsub.f32 %v1554_v51, %v8627_v58  ;;  %v8639_v16 = vand.u32 4294901760, %v1557_v62  ;;  %1491 = vst.msk [vmem:[#allocation4 + $0x18] sm:$0xff] %vm333_vm1, %v1459_v36  ;;  %v1359_v34 = vadd.f32 %v1327_v8, %v1258_v28  ;;  %v620_v50 = vmul.f32 %v8395_v5, %v8548_v22 }
  0x79   : > { %v1156_v17 = vadd.f32 %v1124_v23, %v1055_v0  ;;  %v955_v18 = vadd.f32 %v923_v48, %v853_v10  ;;  %v721_v19 = vmul.f32 %v8400_v6, %v8555_v29  ;;  %v822_v20 = vmul.f32 %v8405_v7, %v8559_v38 }
  0x7a   : > { %11537 = vst [vmem:[#allocation7_spill] sm:$0xff] %v8637_v15  ;;  %v11353_v21 = vand.u32 4294901760, %v8637_v15  ;;  %v8650_v12 = vsub.f32 %v1557_v62, %v8639_v16  ;;  %v1522_v57 = vld [vmem:[#allocation4 + $0x10] sm:$0xff]  ;;  %v1460_v25 = vadd.f32 %v1428_v1, %v1359_v34  ;;  %v924_v8 = vmul.f32 %v8440_v44, %v8597_v46 }
  0x7b   : > { %v1560_v22 = vsel %vm333_vm1, %v1522_v57, 0  ;;  %v1259_v23 = vadd.f32 %v1227_v47, %v1156_v17  ;;  %v1056_v33 = vadd.f32 %v1024_v60, %v955_v18  ;;  %v753_v29 = vadd.f32 %v721_v19, %v620_v50  ;;  %v8680_v62 = vld [vmem:[#allocation2 + $0xb0] sm:$0xff] }
  0x7c   : > { %11538 = vst [vmem:[#allocation8_spill] sm:$0xff] %v8650_v12  ;;  %v1722_v38 = vsub.f32 %v8637_v15, %v11353_v21  ;;  %v11352_v39 = vand.u32 4294901760, %v8650_v12  ;;  %v8661_v26 = vand.u32 4294901760, %v1560_v22  ;;  %1492 = vst.msk [vmem:[#allocation4 + $0x20] sm:$0xff] %vm333_vm1, %v1460_v25  ;;  %v1430_v1 = vmul.f32 %v8476_v63, %v8655_v14  ;;  %v8689_v18 = vld [vmem:[#allocation2 + $0xb1] sm:$0xff] }
  0x7d   : > { %v1360_v41 = vadd.f32 %v1328_v30, %v1259_v23  ;;  %v1157_v42 = vadd.f32 %v1125_v56, %v1056_v33  ;;  %v854_v47 = vadd.f32 %v822_v20, %v753_v29  ;;  %v1025_v43 = vmul.f32 %v8445_v45, %v8603_v24 }
  0x7e   : > { %v1723_v48 = vand.u32 4294901760, %v1722_v38  ;;  %v1732_v60 = vsub.f32 %v8650_v12, %v11352_v39  ;;  %v8672_v51 = vsub.f32 %v1560_v22, %v8661_v26  ;;  %v1126_v49 = vmul.f32 %v8455_v53, %v8607_v32 }
  0x7f   : > { %v1523_v13 = vld [vmem:[#allocation4 + $0x18] sm:$0xff]  ;;  %v1461_v30 = vadd.f32 %v1429_v37, %v1360_v41  ;;  %v1260_v56 = vadd.f32 %v1228_v35, %v1157_v42  ;;  %v956_v36 = vadd.f32 %v924_v8, %v854_v47  ;;  %v1229_v28 = vmul.f32 %v8460_v54, %v8676_v52  ;;  %v8718_v47 = vld [vmem:[#allocation2 + $0xc7] sm:$0xff] }
  0x80   : > { %11539 = vst [vmem:[#allocation9_spill] sm:$0xff] %v8672_v51  ;;  %7055 = vmatprep.mubr.f32.mxu0 %v1723_v48  ;;  %v1733_v0 = vand.u32 4294901760, %v1732_v60  ;;  %v11351_v10 = vand.u32 4294901760, %v8672_v51  ;;  %v1563_v34 = vsel %vm333_vm1, %v1523_v13, 0  ;;  %v1330_v50 = vmul.f32 %v8465_v55, %v8680_v62 }
  0x81   : > { %v8686_v17 = vand.u32 4294901760, %v1563_v34  ;;  %1493 = vst.msk [vmem:[#allocation4 + $0x28] sm:$0xff] %vm333_vm1, %v1461_v30  ;;  %v1361_v37 = vadd.f32 %v1329_v61, %v1260_v56  ;;  %v1057_v35 = vadd.f32 %v1025_v43, %v956_v36  ;;  %v621_v19 = vmul.f32 %v8395_v5, %v8572_v27  ;;  %v8720_v43 = vld [vmem:[#allocation2 + $0xc8] sm:$0xff] }
  0x82   : > { %7056 = vmatmul.mubr.f32.vlgmr.msra.gmra.mrb[0].mxu0 %v1733_v0  ;;  %v1742_v20 = vsub.f32 %v8672_v51, %v11351_v10  ;;  %v1431_v57 = vmul.f32 %v8476_v63, %v8689_v18  ;;  %v722_v25 = vmul.f32 %v8400_v6, %v8579_v59  ;;  %v823_v61 = vmul.f32 %v8405_v7, %v8583_v9 }
  0x83   : > { %7104 = vmatpush3.msra.mxu0 %v8425_v31  ;;  %v8704_v8 = vsub.f32 %v1563_v34, %v8686_v17  ;;  %v1524_v27 = vld [vmem:[#allocation4 + $0x20] sm:$0xff]  ;;  %v1462_v22 = vadd.f32 %v1430_v1, %v1361_v37  ;;  %v1158_v23 = vadd.f32 %v1126_v49, %v1057_v35  ;;  %v925_v33 = vmul.f32 %v8440_v44, %v8625_v2 }
  0x84   : > { %v1743_v29 = vand.u32 4294901760, %v1742_v20  ;;  %v1566_v38 = vsel %vm333_vm1, %v1524_v27, 0  ;;  %v754_v41 = vadd.f32 %v722_v25, %v621_v19  ;;  %v1026_v59 = vmul.f32 %v8445_v45, %v8631_v40  ;;  %7153 = vmatprep.subr.mxu0 %v8382_v4 }
  0x85   : > { %11540 = vst [vmem:[#allocation10_spill] sm:$0xff] %v8704_v8  ;;  %v11348_v31 = vand.u32 4294901760, %v8704_v8  ;;  %v8713_v9 = vand.u32 4294901760, %v1566_v38  ;;  %1494 = vst.msk [vmem:[#allocation4 + $0x30] sm:$0xff] %vm333_vm1, %v1462_v22  ;;  %v1261_v1 = vadd.f32 %v1229_v28, %v1158_v23  ;;  %v1127_v42 = vmul.f32 %v8455_v53, %v8655_v14  ;;  %v8734_v28 = vld [vmem:[#allocation2 + $0xc9] sm:$0xff] }
  0x86   : > { %7058 = vmatprep.mubr.f32.mxu0 %v1743_v29  ;;  %v855_v48 = vadd.f32 %v823_v61, %v754_v41  ;;  %v1230_v60 = vmul.f32 %v8460_v54, %v8718_v47  ;;  %v1331_v49 = vmul.f32 %v8465_v55, %v8720_v43  ;;  %v622_v13 = vmul.f32 %v8395_v5, %v8597_v46  ;;  %v8752_v29 = vld [vmem:[#allocation2 + $0xd0] sm:$0xff] }
  0x87   : > { %v1752_v30 = vsub.f32 %v8704_v8, %v11348_v31  ;;  %v8732_v56 = vsub.f32 %v1566_v38, %v8713_v9  ;;  %v1362_v36 = vadd.f32 %v1330_v50, %v1261_v1  ;;  %v723_v0 = vmul.f32 %v8400_v6, %v8603_v24  ;;  %v9150_v8 = vld [vmem:[#allocation2 + $0x16f] sm:$0xff] }
  0x88   : > { %v1525_v34 = vld [vmem:[#allocation4 + $0x28] sm:$0xff]  ;;  %v957_v37 = vadd.f32 %v925_v33, %v855_v48  ;;  %v1432_v35 = vmul.f32 %v8476_v63, %v8734_v28  ;;  %v824_v46 = vmul.f32 %v8405_v7, %v8607_v32  ;;  %v926_v19 = vmul.f32 %v8440_v44, %v8676_v52 }
  0x89   : > { %11541 = vst [vmem:[#allocation11_spill] sm:$0xff] %v8732_v56  ;;  %v1753_v20 = vand.u32 4294901760, %v1752_v30  ;;  %v11346_v25 = vand.u32 4294901760, %v8732_v56  ;;  %v1569_v50 = vsel %vm333_vm1, %v1525_v34, 0  ;;  %v1463_v61 = vadd.f32 %v1431_v57, %v1362_v36  ;;  %v8750_v33 = vld [vmem:[#allocation2 + $0xcf] sm:$0xff] }
  0x8a   : > { %v8746_v27 = vand.u32 4294901760, %v1569_v50  ;;  %v1058_v24 = vadd.f32 %v1026_v59, %v957_v37  ;;  %v755_v22 = vadd.f32 %v723_v0, %v622_v13  ;;  %v1027_v23 = vmul.f32 %v8445_v45, %v8680_v62 }
  0x8b   : > { %7059 = vmatmul.mubr.f32.gmra.mrb[2].mxu0 %v1753_v20  ;;  %v1762_v32 = vsub.f32 %v8732_v56, %v11346_v25  ;;  %1495 = vst.msk [vmem:[#allocation4 + $0x38] sm:$0xff] %vm333_vm1, %v1463_v61  ;;  %v1128_v57 = vmul.f32 %v8455_v53, %v8689_v18  ;;  %v1231_v38 = vmul.f32 %v8460_v54, %v8750_v33 }
  0x8c   : > { %v1332_v41 = vmul.f32 %v8465_v55, %v8752_v29  ;;  %v8765_v59 = vsub.f32 %v1569_v50, %v8746_v27  ;;  %v1526_v1 = vld [vmem:[#allocation4 + $0x30] sm:$0xff]  ;;  %v1159_v48 = vadd.f32 %v1127_v42, %v1058_v24  ;;  %v856_v13 = vadd.f32 %v824_v46, %v755_v22 }
  0x8d   : > { %v623_v30 = vmul.f32 %v8395_v5, %v8625_v2  ;;  %v1763_v36 = vand.u32 4294901760, %v1762_v32  ;;  %v1572_v0 = vsel %vm333_vm1, %v1526_v1, 0  ;;  %v724_v34 = vmul.f32 %v8400_v6, %v8631_v40  ;;  %v8777_v42 = vld [vmem:[#allocation2 + $0xd1] sm:$0xff]  ;;  %v8791_v32 = vld [vmem:[#allocation2 + $0xe7] sm:$0xff] }
  0x8e   : > { %11542 = vst [vmem:[#allocation12_spill] sm:$0xff] %v8765_v59  ;;  %v825_v37 = vmul.f32 %v8405_v7, %v8655_v14  ;;  %v11347_v20 = vand.u32 4294901760, %v8765_v59  ;;  %v8775_v61 = vand.u32 4294901760, %v1572_v0  ;;  %v1262_v50 = vadd.f32 %v1230_v60, %v1159_v48  ;;  %v8793_v1 = vld [vmem:[#allocation2 + $0xe8] sm:$0xff] }
  0x8f   : > { %v958_v25 = vadd.f32 %v926_v19, %v856_v13  ;;  %7061 = vmatprep.mubr.f32.mxu0 %v1763_v36  ;;  %v1433_v2 = vmul.f32 %v8476_v63, %v8777_v42  ;;  %v756_v46 = vadd.f32 %v724_v34, %v623_v30  ;;  %v927_v24 = vmul.f32 %v8440_v44, %v8718_v47 }
  0x90   : > { %v1028_v40 = vmul.f32 %v8445_v45, %v8720_v43  ;;  %v1772_v14 = vsub.f32 %v8765_v59, %v11347_v20  ;;  %v8789_v60 = vsub.f32 %v1572_v0, %v8775_v61  ;;  %v1363_v19 = vadd.f32 %v1331_v49, %v1262_v50 }
  0x91   : > { %v1059_v22 = vadd.f32 %v1027_v23, %v958_v25  ;;  %v857_v48 = vadd.f32 %v825_v37, %v756_v46  ;;  %v1129_v13 = vmul.f32 %v8455_v53, %v8734_v28  ;;  %v1232_v30 = vmul.f32 %v8460_v54, %v8791_v32 }
  0x92   : > { %11543 = vst [vmem:[#allocation13_spill] sm:$0xff] %v8789_v60  ;;  %v1333_v36 = vmul.f32 %v8465_v55, %v8793_v1  ;;  %v1773_v34 = vand.u32 4294901760, %v1772_v14  ;;  %v11350_v0 = vand.u32 4294901760, %v8789_v60  ;;  %v1527_v20 = vld [vmem:[#allocation4 + $0x38] sm:$0xff]  ;;  %v1464_v49 = vadd.f32 %v1432_v35, %v1363_v19 }
  0x93   : > { %v1160_v25 = vadd.f32 %v1128_v57, %v1059_v22  ;;  %v1575_v23 = vsel %vm333_vm1, %v1527_v20, 0  ;;  %v959_v50 = vadd.f32 %v927_v24, %v857_v48  ;;  %v624_v37 = vmul.f32 %v8395_v5, %v8676_v52  ;;  %v8813_v57 = vld [vmem:[#allocation2 + $0xe9] sm:$0xff] }
  0x94   : > { %v725_v46 = vmul.f32 %v8400_v6, %v8680_v62  ;;  %7062 = vmatmul.mubr.f32.gmra.mrb[4].mxu0 %v1773_v34  ;;  %v1782_v31 = vsub.f32 %v8789_v60, %v11350_v0  ;;  %v8810_v14 = vand.u32 4294901760, %v1575_v23  ;;  %1496 = vst.msk [vmem:[#allocation4 + $0x40] sm:$0xff] %vm333_vm1, %v1464_v49  ;;  %v826_v20 = vmul.f32 %v8405_v7, %v8689_v18  ;;  %v8826_v49 = vld [vmem:[#allocation2 + $0xef] sm:$0xff] }
  0x95   : > { %v1263_v35 = vadd.f32 %v1231_v38, %v1160_v25  ;;  %v1060_v24 = vadd.f32 %v1028_v40, %v959_v50  ;;  %v1434_v52 = vmul.f32 %v8476_v63, %v8813_v57  ;;  %v928_v19 = vmul.f32 %v8440_v44, %v8750_v33 }
  0x96   : > { %v757_v62 = vadd.f32 %v725_v46, %v624_v37  ;;  %v1783_v22 = vand.u32 4294901760, %v1782_v31  ;;  %v8822_v48 = vsub.f32 %v1575_v23, %v8810_v14  ;;  %v1029_v38 = vmul.f32 %v8445_v45, %v8752_v29  ;;  %v8832_v37 = vld [vmem:[#allocation2 + $0xf0] sm:$0xff] }
  0x97   : > { %v1364_v34 = vadd.f32 %v1332_v41, %v1263_v35  ;;  %v1161_v25 = vadd.f32 %v1129_v13, %v1060_v24  ;;  %v1130_v40 = vmul.f32 %v8455_v53, %v8777_v42  ;;  %v1233_v50 = vmul.f32 %v8460_v54, %v8826_v49 }
  0x98   : > { %11544 = vst [vmem:[#allocation14_spill] sm:$0xff] %v8822_v48  ;;  %v858_v18 = vadd.f32 %v826_v20, %v757_v62  ;;  %7064 = vmatprep.mubr.f32.mxu0 %v1783_v22  ;;  %v11349_v31 = vand.u32 4294901760, %v8822_v48  ;;  %v1334_v41 = vmul.f32 %v8465_v55, %v8832_v37  ;;  %v625_v46 = vmul.f32 %v8395_v5, %v8718_v47  ;;  %v8839_v20 = vld [vmem:[#allocation2 + $0xf1] sm:$0xff] }
  0x99   : > { %v1465_v23 = vadd.f32 %v1433_v2, %v1364_v34  ;;  %v1264_v13 = vadd.f32 %v1232_v30, %v1161_v25  ;;  %v726_v24 = vmul.f32 %v8400_v6, %v8720_v43  ;;  %v827_v62 = vmul.f32 %v8405_v7, %v8734_v28 }
  0x9a   : > { %v960_v35 = vadd.f32 %v928_v19, %v858_v18  ;;  %v1792_v2 = vsub.f32 %v8822_v48, %v11349_v31  ;;  %v1435_v22 = vmul.f32 %v8476_v63, %v8839_v20  ;;  %v929_v47 = vmul.f32 %v8440_v44, %v8791_v32  ;;  %v8857_v18 = vld [vmem:[#allocation2 + $0x107] sm:$0xff] }
  0x9b   : > { %1497 = vst.msk [vmem:[#allocation4 + $0x48] sm:$0xff] %vm333_vm1, %v1465_v23  ;;  %v1030_v30 = vmul.f32 %v8445_v45, %v8793_v1  ;;  %v1528_v19 = vld [vmem:[#allocation4 + $0x40] sm:$0xff]  ;;  %v1365_v43 = vadd.f32 %v1333_v36, %v1264_v13  ;;  %v758_v25 = vadd.f32 %v726_v24, %v625_v46  ;;  %v1131_v28 = vmul.f32 %v8455_v53, %v8813_v57  ;;  %v8859_v31 = vld [vmem:[#allocation2 + $0x108] sm:$0xff] }
  0x9c   : > { %v1061_v34 = vadd.f32 %v1029_v38, %v960_v35  ;;  %v1793_v23 = vand.u32 4294901760, %v1792_v2  ;;  %v1578_v0 = vsel %vm333_vm1, %v1528_v19, 0  ;;  %v1234_v10 = vmul.f32 %v8460_v54, %v8857_v18  ;;  %v8868_v13 = vld [vmem:[#allocation2 + $0x109] sm:$0xff] }
  0x9d   : > { %v1335_v39 = vmul.f32 %v8465_v55, %v8859_v31  ;;  %v8866_v21 = vand.u32 4294901760, %v1578_v0  ;;  %v1466_v36 = vadd.f32 %v1434_v52, %v1365_v43  ;;  %v859_v46 = vadd.f32 %v827_v62, %v758_v25  ;;  %v8884_v43 = vld [vmem:[#allocation2 + $0x10f] sm:$0xff] }
  0x9e   : > { %v1162_v38 = vadd.f32 %v1130_v40, %v1061_v34  ;;  %7065 = vmatmul.mubr.f32.gmra.mrb[6].mxu0 %v1793_v23  ;;  %v1436_v35 = vmul.f32 %v8476_v63, %v8868_v13  ;;  %v626_v24 = vmul.f32 %v8395_v5, %v8750_v33  ;;  %v727_v2 = vmul.f32 %v8400_v6, %v8752_v29 }
  0x9f   : > { %v828_v19 = vmul.f32 %v8405_v7, %v8777_v42  ;;  %v8879_v48 = vsub.f32 %v1578_v0, %v8866_v21  ;;  %1498 = vst.msk [vmem:[#allocation4 + $0x50] sm:$0xff] %vm333_vm1, %v1466_v36  ;;  %v961_v40 = vadd.f32 %v929_v47, %v859_v46  ;;  %v930_v62 = vmul.f32 %v8440_v44, %v8826_v49  ;;  %v8892_v0 = vld [vmem:[#allocation2 + $0x110] sm:$0xff] }
  0xa0   : > { %v1265_v52 = vadd.f32 %v1233_v50, %v1162_v38  ;;  %v759_v34 = vadd.f32 %v727_v2, %v626_v24  ;;  %v1031_v33 = vmul.f32 %v8445_v45, %v8832_v37  ;;  %v1132_v29 = vmul.f32 %v8455_v53, %v8839_v20 }
  0xa1   : > { %11545 = vst [vmem:[#allocation15_spill] sm:$0xff] %v8879_v48  ;;  %v1235_v42 = vmul.f32 %v8460_v54, %v8884_v43  ;;  %v11365_v50 = vand.u32 4294901760, %v8879_v48  ;;  %v1062_v23 = vadd.f32 %v1030_v30, %v961_v40  ;;  %v1336_v36 = vmul.f32 %v8465_v55, %v8892_v0  ;;  %v8907_v40 = vld [vmem:[#allocation2 + $0x111] sm:$0xff] }
  0xa2   : > { %v1529_v47 = vld [vmem:[#allocation4 + $0x48] sm:$0xff]  ;;  %v1366_v25 = vadd.f32 %v1334_v41, %v1265_v52  ;;  %v860_v46 = vadd.f32 %v828_v19, %v759_v34  ;;  %v627_v24 = vmul.f32 %v8395_v5, %v8791_v32  ;;  %v728_v2 = vmul.f32 %v8400_v6, %v8793_v1 }
  0xa3   : > { %v1581_v38 = vsel %vm333_vm1, %v1529_v47, 0  ;;  %v1802_v60 = vsub.f32 %v8879_v48, %v11365_v50  ;;  %v1163_v30 = vadd.f32 %v1131_v28, %v1062_v23  ;;  %v829_v19 = vmul.f32 %v8405_v7, %v8813_v57 }
  0xa4   : > { %v8905_v59 = vand.u32 4294901760, %v1581_v38  ;;  %v1467_v41 = vadd.f32 %v1435_v22, %v1366_v25  ;;  %v962_v52 = vadd.f32 %v930_v62, %v860_v46  ;;  %v760_v56 = vadd.f32 %v728_v2, %v627_v24  ;;  %v8923_v46 = vld [vmem:[#allocation2 + $0x127] sm:$0xff] }
  0xa5   : > { %v931_v32 = vmul.f32 %v8440_v44, %v8857_v18  ;;  %v1803_v34 = vand.u32 4294901760, %v1802_v60  ;;  %v1266_v47 = vadd.f32 %v1234_v10, %v1163_v30  ;;  %v1437_v22 = vmul.f32 %v8476_v63, %v8907_v40  ;;  %v8929_v2 = vld [vmem:[#allocation2 + $0x128] sm:$0xff] }
  0xa6   : > { %v8914_v1 = vsub.f32 %v1581_v38, %v8905_v59  ;;  %1499 = vst.msk [vmem:[#allocation4 + $0x58] sm:$0xff] %vm333_vm1, %v1467_v41  ;;  %v1530_v28 = vld [vmem:[#allocation4 + $0x50] sm:$0xff]  ;;  %v1063_v62 = vadd.f32 %v1031_v33, %v962_v52  ;;  %v861_v25 = vadd.f32 %v829_v19, %v760_v56  ;;  %v1032_v23 = vmul.f32 %v8445_v45, %v8859_v31 }
  0xa7   : > { %v1133_v57 = vmul.f32 %v8455_v53, %v8868_v13  ;;  %7067 = vmatprep.mubr.f32.mxu0 %v1803_v34  ;;  %v1584_v38 = vsel %vm333_vm1, %v1530_v28, 0  ;;  %v1367_v10 = vadd.f32 %v1335_v39, %v1266_v47  ;;  %v1236_v24 = vmul.f32 %v8460_v54, %v8923_v46 }
  0xa8   : > { %11546 = vst [vmem:[#allocation16_spill] sm:$0xff] %v8914_v1  ;;  %v11363_v60 = vand.u32 4294901760, %v8914_v1  ;;  %v8931_v56 = vand.u32 4294901760, %v1584_v38  ;;  %v1164_v33 = vadd.f32 %v1132_v29, %v1063_v62  ;;  %v963_v41 = vadd.f32 %v931_v32, %v861_v25  ;;  %v8945_v32 = vld [vmem:[#allocation2 + $0x129] sm:$0xff] }
  0xa9   : > { %v1337_v30 = vmul.f32 %v8465_v55, %v8929_v2  ;;  %v1468_v19 = vadd.f32 %v1436_v35, %v1367_v10  ;;  %v628_v39 = vmul.f32 %v8395_v5, %v8826_v49  ;;  %v729_v34 = vmul.f32 %v8400_v6, %v8832_v37  ;;  %v8957_v10 = vld [vmem:[#allocation2 + $0x12f] sm:$0xff] }
  0xaa   : > { %v1812_v52 = vsub.f32 %v8914_v1, %v11363_v60  ;;  %v8943_v47 = vsub.f32 %v1584_v38, %v8931_v56  ;;  %v1267_v28 = vadd.f32 %v1235_v42, %v1164_v33  ;;  %v1064_v29 = vadd.f32 %v1032_v23, %v963_v41 }
  0xab   : > { %v830_v62 = vmul.f32 %v8405_v7, %v8839_v20  ;;  %1500 = vst.msk [vmem:[#allocation4 + $0x60] sm:$0xff] %vm333_vm1, %v1468_v19  ;;  %v1438_v35 = vmul.f32 %v8476_v63, %v8945_v32  ;;  %v761_v5 = vadd.f32 %v729_v34, %v628_v39  ;;  %v932_v6 = vmul.f32 %v8440_v44, %v8884_v43  ;;  %v8969_v39 = vld [vmem:[#allocation2 + $0x130] sm:$0xff] }
  0xac   : > { %11547 = vst [vmem:[#allocation17_spill] sm:$0xff] %v8943_v47  ;;  %v1813_v25 = vand.u32 4294901760, %v1812_v52  ;;  %v11362_v49 = vand.u32 4294901760, %v8943_v47  ;;  %v1368_v42 = vadd.f32 %v1336_v36, %v1267_v28  ;;  %v1165_v23 = vadd.f32 %v1133_v57, %v1064_v29  ;;  %v8976_v29 = vld [vmem:[%s11337_s1] ss:$0 sm:$0xff] }
  0xad   : > { %v1531_v37 = vld [vmem:[#allocation4 + $0x58] sm:$0xff]  ;;  %v1033_v38 = vmul.f32 %v8445_v45, %v8892_v0  ;;  %v862_v20 = vadd.f32 %v830_v62, %v761_v5  ;;  %v1134_v33 = vmul.f32 %v8455_v53, %v8907_v40  ;;  %v1237_v41 = vmul.f32 %v8460_v54, %v8957_v10 }
  0xae   : > { %7068 = vmatmul.mubr.f32.gmra.mrb[8].mxu0 %v1813_v25  ;;  %v1587_v7 = vsel %vm333_vm1, %v1531_v37, 0  ;;  %v1822_v36 = vsub.f32 %v8943_v47, %v11362_v49  ;;  %v1469_v52 = vadd.f32 %v1437_v22, %v1368_v42  ;;  %v1268_v19 = vadd.f32 %v1236_v24, %v1165_v23  ;;  %v8983_v25 = vld [vmem:[%s11337_s1 + $0x1] ss:$0 sm:$0xff]  ;;  %v8991_v37 = vld [vmem:[#allocation2 + $0x131] sm:$0xff] }
  0xaf   : > { %v8967_v57 = vand.u32 4294901760, %v1587_v7  ;;  %v964_v34 = vadd.f32 %v932_v6, %v862_v20  ;;  %v1338_v28 = vmul.f32 %v8465_v55, %v8969_v39  ;;  %v629_v62 = vmul.f32 %v8976_v29, %v8857_v18  ;;  %v8996_v18 = vld [vmem:[%s11337_s1 + $0x2] ss:$0 sm:$0xff]  ;;  %v9041_v47 = vld [vmem:[#allocation2 + $0x14f] sm:$0xff] }
  0xb0   : > { %v730_v22 = vmul.f32 %v8983_v25, %v8859_v31  ;;  %v1823_v24 = vand.u32 4294901760, %v1822_v36  ;;  %1501 = vst.msk [vmem:[#allocation4 + $0x68] sm:$0xff] %vm333_vm1, %v1469_v52  ;;  %v1369_v6 = vadd.f32 %v1337_v30, %v1268_v19  ;;  %v831_v42 = vmul.f32 %v8996_v18, %v8868_v13  ;;  %v9009_v13 = vld [vmem:[#allocation2 + $0x147] sm:$0xff] }
  0xb1   : > { %v8988_v5 = vsub.f32 %v1587_v7, %v8967_v57  ;;  %v1065_v23 = vadd.f32 %v1033_v38, %v964_v34  ;;  %v1439_v31 = vmul.f32 %v8476_v63, %v8991_v37  ;;  %v933_v7 = vmul.f32 %v8440_v44, %v8923_v46 }
  0xb2   : > { %v762_v20 = vadd.f32 %v730_v22, %v629_v62  ;;  %7070 = vmatprep.mubr.f32.mxu0 %v1823_v24  ;;  %v1532_v36 = vld [vmem:[#allocation4 + $0x60] sm:$0xff]  ;;  %v1470_v52 = vadd.f32 %v1438_v35, %v1369_v6  ;;  %v1034_v19 = vmul.f32 %v8445_v45, %v8929_v2  ;;  %v1135_v49 = vmul.f32 %v8455_v53, %v8945_v32  ;;  %v9014_v24 = vld [vmem:[#allocation2 + $0x148] sm:$0xff] }
  0xb3   : > { %11548 = vst [vmem:[#allocation18_spill] sm:$0xff] %v8988_v5  ;;  %v11364_v30 = vand.u32 4294901760, %v8988_v5  ;;  %v1590_v38 = vsel %vm333_vm1, %v1532_v36, 0  ;;  %v1166_v34 = vadd.f32 %v1134_v33, %v1065_v23  ;;  %v1238_v22 = vmul.f32 %v8460_v54, %v9009_v13 }
  0xb4   : > { %v863_v62 = vadd.f32 %v831_v42, %v762_v20  ;;  %v9019_v6 = vand.u32 4294901760, %v1590_v38  ;;  %1502 = vst.msk [vmem:[#allocation4 + $0x70] sm:$0xff] %vm333_vm1, %v1470_v52  ;;  %v1339_v60 = vmul.f32 %v8465_v55, %v9014_v24  ;;  %v630_v33 = vmul.f32 %v8976_v29, %v8884_v43  ;;  %v9026_v20 = vld [vmem:[#allocation2 + $0x149] sm:$0xff] }
  0xb5   : > { %v1832_v35 = vsub.f32 %v8988_v5, %v11364_v30  ;;  %v1269_v42 = vadd.f32 %v1237_v41, %v1166_v34  ;;  %v731_v36 = vmul.f32 %v8983_v25, %v8892_v0  ;;  %v832_v30 = vmul.f32 %v8996_v18, %v8907_v40 }
  0xb6   : > { %11549 = vst [vmem:[#allocation19_spill] sm:$0xff] %v9019_v6  ;;  %v965_v23 = vadd.f32 %v933_v7, %v863_v62  ;;  %v9033_v5 = vsub.f32 %v1590_v38, %v9019_v6  ;;  %v1440_v52 = vmul.f32 %v8476_v63, %v9026_v20  ;;  %v934_v43 = vmul.f32 %v8440_v44, %v8957_v10  ;;  %v9233_v6 = vld [vmem:[#allocation2 + $0x191] sm:$0xff] }
  0xb7   : > { %v1833_v50 = vand.u32 4294901760, %v1832_v35  ;;  %v1533_v41 = vld [vmem:[#allocation4 + $0x68] sm:$0xff]  ;;  %v1370_v7 = vadd.f32 %v1338_v28, %v1269_v42  ;;  %v763_v62 = vadd.f32 %v731_v36, %v630_v33  ;;  %v1035_v0 = vmul.f32 %v8445_v45, %v8969_v39  ;;  %v9051_v42 = vld [vmem:[#allocation2 + $0x150] sm:$0xff] }
  0xb8   : > { %11550 = vst [vmem:[#allocation20_spill] sm:$0xff] %v9033_v5  ;;  %v1066_v34 = vadd.f32 %v1034_v19, %v965_v23  ;;  %v11370_v40 = vand.u32 4294901760, %v9033_v5  ;;  %v1593_v38 = vsel %vm333_vm1, %v1533_v41, 0  ;;  %v1136_v63 = vmul.f32 %v8455_v53, %v8991_v37 }
  0xb9   : > { %7071 = vmatmul.mubr.f32.gmra.mrb[10].mxu0 %v1833_v50  ;;  %v1239_v44 = vmul.f32 %v8460_v54, %v9041_v47  ;;  %v9049_v35 = vand.u32 4294901760, %v1593_v38  ;;  %v1471_v28 = vadd.f32 %v1439_v31, %v1370_v7  ;;  %v864_v33 = vadd.f32 %v832_v30, %v763_v62 }
  0xba   : > { %v1167_v19 = vadd.f32 %v1135_v49, %v1066_v34  ;;  %v1842_v45 = vsub.f32 %v9033_v5, %v11370_v40  ;;  %v1340_v50 = vmul.f32 %v8465_v55, %v9051_v42  ;;  %v631_v53 = vmul.f32 %v8976_v29, %v8923_v46  ;;  %v9072_v46 = vld [vmem:[%s11337_s1 + $0x4] ss:$0 sm:$0xff] }
  0xbb   : > { %11551 = vst [vmem:[#allocation21_spill] sm:$0xff] %v9049_v35  ;;  %v732_v54 = vmul.f32 %v8983_v25, %v8929_v2  ;;  %v9063_v23 = vsub.f32 %v1593_v38, %v9049_v35  ;;  %v1534_v49 = vld [vmem:[#allocation4 + $0x70] sm:$0xff]  ;;  %1503 = vst.msk [vmem:[#allocation4 + $0x78] sm:$0xff] %vm333_vm1, %v1471_v28  ;;  %v966_v30 = vadd.f32 %v934_v43, %v864_v33  ;;  %v9091_v33 = vld [vmem:[%s11337_s1 + $0x5] ss:$0 sm:$0xff] }
  0xbc   : > { %v1270_v31 = vadd.f32 %v1238_v22, %v1167_v19  ;;  %v833_v36 = vmul.f32 %v8996_v18, %v8945_v32  ;;  %v1843_v41 = vand.u32 4294901760, %v1842_v45  ;;  %v1596_v55 = vsel %vm333_vm1, %v1534_v49, 0  ;;  %v9079_v38 = vld [vmem:[#allocation2 + $0x151] sm:$0xff]  ;;  %v9084_v32 = vld [vmem:[%s11337_s1 + $0xa] ss:$0 sm:$0xff] }
  0xbd   : > { %11552 = vst [vmem:[#allocation22_spill] sm:$0xff] %v9063_v23  ;;  %v764_v7 = vadd.f32 %v732_v54, %v631_v53  ;;  %v935_v2 = vmul.f32 %v9072_v46, %v9009_v13  ;;  %v11371_v34 = vand.u32 4294901760, %v9063_v23  ;;  %v9077_v62 = vand.u32 4294901760, %v1596_v55 }
  0xbe   : > { %v1371_v22 = vadd.f32 %v1339_v60, %v1270_v31  ;;  %v1067_v43 = vadd.f32 %v1035_v0, %v966_v30  ;;  %7073 = vmatprep.mubr.f32.mxu0 %v1843_v41  ;;  %v1441_v28 = vmul.f32 %v9084_v32, %v9079_v38  ;;  %v1036_v60 = vmul.f32 %v9091_v33, %v9014_v24  ;;  %v9098_v0 = vld [vmem:[%s11337_s1 + $0x6] ss:$0 sm:$0xff]  ;;  %v9108_v30 = vld [vmem:[#allocation2 + $0x167] sm:$0xff] }
  0xbf   : > { %11553 = vst [vmem:[#allocation23_spill] sm:$0xff] %v9077_v62  ;;  %v865_v19 = vadd.f32 %v833_v36, %v764_v7  ;;  %v1137_v45 = vmul.f32 %v9098_v0, %v9026_v20  ;;  %v1852_v53 = vsub.f32 %v9063_v23, %v11371_v34  ;;  %v9106_v54 = vsub.f32 %v1596_v55, %v9077_v62  ;;  %v9110_v36 = vld [vmem:[#allocation2 + $0x168] sm:$0xff] }
  0xc0   : > { %v1472_v49 = vadd.f32 %v1440_v52, %v1371_v22  ;;  %v1168_v31 = vadd.f32 %v1136_v63, %v1067_v43  ;;  %v9115_v7 = vld [vmem:[%s11337_s1 + $0x8] ss:$0 sm:$0xff]  ;;  %v9122_v55 = vld [vmem:[%s11337_s1 + $0x9] ss:$0 sm:$0xff]  ;;  %v632_v63 = vmul.f32 %v8976_v29, %v8957_v10  ;;  %v733_v34 = vmul.f32 %v8983_v25, %v8969_v39 }
  0xc1   : > { %11554 = vst [vmem:[#allocation24_spill] sm:$0xff] %v9106_v54  ;;  %v967_v41 = vadd.f32 %v935_v2, %v865_v19  ;;  %v1240_v40 = vmul.f32 %v9115_v7, %v9108_v30  ;;  %v1341_v52 = vmul.f32 %v9122_v55, %v9110_v36  ;;  %v1853_v2 = vand.u32 4294901760, %v1852_v53  ;;  %v9130_v19 = vld [vmem:[#allocation2 + $0x169] sm:$0xff] }
  0xc2   : > { %v11386_v22 = vand.u32 4294901760, %v9106_v54  ;;  %1504 = vst.msk [vmem:[#allocation4 + $0x80] sm:$0xff] %vm333_vm1, %v1472_v49  ;;  %v1271_v43 = vadd.f32 %v1239_v44, %v1168_v31  ;;  %v1535_v23 = vld [vmem:[#allocation4 + $0x78] sm:$0xff]  ;;  %v1442_v1 = vmul.f32 %v9084_v32, %v9130_v19  ;;  %v834_v48 = vmul.f32 %v8996_v18, %v8991_v37 }
  0xc3   : > { %v1068_v5 = vadd.f32 %v1036_v60, %v967_v41  ;;  %v936_v10 = vmul.f32 %v9072_v46, %v9041_v47  ;;  %7074 = vmatmul.mubr.f32.gmra.mrb[12].mxu0 %v1853_v2  ;;  %v1599_v53 = vsel %vm333_vm1, %v1535_v23, 0  ;;  %v765_v39 = vadd.f32 %v733_v34, %v632_v63  ;;  %v9154_v23 = vld [vmem:[#allocation2 + $0x170] sm:$0xff] }
  0xc4   : > { %v1862_v44 = vsub.f32 %v9106_v54, %v11386_v22  ;;  %v1372_v49 = vadd.f32 %v1340_v50, %v1271_v43  ;;  %v9144_v31 = vand.u32 4294901760, %v1599_v53  ;;  %v1037_v41 = vmul.f32 %v9091_v33, %v9051_v42  ;;  %v9189_v54 = vld [vmem:[#allocation2 + $0x188] sm:$0xff] }
  0xc5   : > { %v1169_v60 = vadd.f32 %v1137_v45, %v1068_v5  ;;  %v1138_v37 = vmul.f32 %v9098_v0, %v9079_v38  ;;  %v866_v51 = vadd.f32 %v834_v48, %v765_v39  ;;  %v1241_v22 = vmul.f32 %v9115_v7, %v9150_v8  ;;  %v9161_v45 = vld [vmem:[#allocation2 + $0x171] sm:$0xff] }
  0xc6   : > { %11555 = vst [vmem:[#allocation25_spill] sm:$0xff] %v9144_v31  ;;  %v1863_v2 = vand.u32 4294901760, %v1862_v44  ;;  %v1473_v11 = vadd.f32 %v1441_v28, %v1372_v49  ;;  %v9157_v50 = vsub.f32 %v1599_v53, %v9144_v31  ;;  %v1342_v34 = vmul.f32 %v9122_v55, %v9154_v23 }
  0xc7   : > { %v1272_v5 = vadd.f32 %v1240_v40, %v1169_v60  ;;  %v633_v63 = vmul.f32 %v8976_v29, %v9009_v13  ;;  %v968_v48 = vadd.f32 %v936_v10, %v866_v51  ;;  %v1443_v28 = vmul.f32 %v9084_v32, %v9161_v45  ;;  %v9180_v60 = vld [vmem:[#allocation2 + $0x187] sm:$0xff] }
  0xc8   : > { %11556 = vst [vmem:[#allocation26_spill] sm:$0xff] %v9157_v50  ;;  %7076 = vmatprep.mubr.f32.mxu0 %v1863_v2  ;;  %1505 = vst.msk [vmem:[#allocation4 + $0x88] sm:$0xff] %vm333_vm1, %v1473_v11  ;;  %v734_v43 = vmul.f32 %v8983_v25, %v9014_v24  ;;  %v835_v40 = vmul.f32 %v8996_v18, %v9026_v20  ;;  %v11391_v44 = vand.u32 4294901760, %v9157_v50 }
  0xc9   : > { %v1536_v53 = vld [vmem:[#allocation4 + $0x80] sm:$0xff]  ;;  %v1373_v49 = vadd.f32 %v1341_v52, %v1272_v5  ;;  %v937_v13 = vmul.f32 %v9072_v46, %v9108_v30  ;;  %v1038_v11 = vmul.f32 %v9091_v33, %v9110_v36  ;;  %v1069_v10 = vadd.f32 %v1037_v41, %v968_v48 }
  0xca   : > { %v1602_v51 = vsel %vm333_vm1, %v1536_v53, 0  ;;  %v766_v39 = vadd.f32 %v734_v43, %v633_v63  ;;  %v1139_v24 = vmul.f32 %v9098_v0, %v9130_v19  ;;  %v1872_v20 = vsub.f32 %v9157_v50, %v11391_v44 }
  0xcb   : > { %v9185_v52 = vand.u32 4294901760, %v1602_v51  ;;  %v1474_v2 = vadd.f32 %v1442_v1, %v1373_v49  ;;  %v1242_v5 = vmul.f32 %v9115_v7, %v9180_v60  ;;  %v1170_v53 = vadd.f32 %v1138_v37, %v1069_v10  ;;  %v9199_v1 = vld [vmem:[#allocation2 + $0x189] sm:$0xff] }
  0xcc   : > { %v867_v41 = vadd.f32 %v835_v40, %v766_v39  ;;  %v1343_v63 = vmul.f32 %v9122_v55, %v9189_v54  ;;  %v634_v48 = vmul.f32 %v8976_v29, %v9041_v47  ;;  %v1873_v43 = vand.u32 4294901760, %v1872_v20  ;;  %v9209_v39 = vld [vmem:[#allocation2 + $0x18f] sm:$0xff] }
  0xcd   : > { %11557 = vst [vmem:[#allocation27_spill] sm:$0xff] %v9185_v52  ;;  %v9196_v12 = vsub.f32 %v1602_v51, %v9185_v52  ;;  %1506 = vst.msk [vmem:[#allocation4 + $0x90] sm:$0xff] %vm333_vm1, %v1474_v2  ;;  %v735_v37 = vmul.f32 %v8983_v25, %v9051_v42  ;;  %v836_v40 = vmul.f32 %v8996_v18, %v9079_v38 }
  0xce   : > { %v1273_v49 = vadd.f32 %v1241_v22, %v1170_v53  ;;  %v969_v10 = vadd.f32 %v937_v13, %v867_v41  ;;  %v1444_v47 = vmul.f32 %v9084_v32, %v9199_v1  ;;  %v938_v51 = vmul.f32 %v9072_v46, %v9150_v8  ;;  %7077 = vmatmul.mubr.f32.gmra.mrb[14].mxu0 %v1873_v43  ;;  %v503_v22 = vld [vmem:[%s8390_s17 + $0xc0] sm:$0xff]  ;;  %v504_v13 = vld [vmem:[%s8390_s17 + $0xc8] sm:$0xff]  ;;  %v9221_v43 = vld [vmem:[#allocation2 + $0x190] sm:$0xff] }
  0xcf   : > { %11558 = vst [vmem:[#allocation28_spill] sm:$0xff] %v9196_v12  ;;  %v11406_v20 = vand.u32 4294901760, %v9196_v12  ;;  %v1537_v2 = vld [vmem:[#allocation4 + $0x88] sm:$0xff]  ;;  %v767_v44 = vadd.f32 %v735_v37, %v634_v48  ;;  %v1039_v42 = vmul.f32 %v9091_v33, %v9154_v23  ;;  %v1140_v38 = vmul.f32 %v9098_v0, %v9161_v45 }
  0xd0   : > { %v1605_v53 = vsel %vm333_vm1, %v1537_v2, 0  ;;  %v1374_v41 = vadd.f32 %v1342_v34, %v1273_v49  ;;  %v1070_v50 = vadd.f32 %v1038_v11, %v969_v10  ;;  %v1243_v15 = vmul.f32 %v9115_v7, %v9209_v39 }
  0xd1   : > { %v1882_v48 = vsub.f32 %v9196_v12, %v11406_v20  ;;  %v9226_v37 = vand.u32 4294901760, %v1605_v53  ;;  %v868_v52 = vadd.f32 %v836_v40, %v767_v44  ;;  %v1344_v31 = vmul.f32 %v9122_v55, %v9221_v43 }
  0xd2   : > { %v1475_v62 = vadd.f32 %v1443_v28, %v1374_v41  ;;  %v1171_v35 = vadd.f32 %v1139_v24, %v1070_v50  ;;  %v535_v2 = vmax.f32 %v503_v22, 0.0  ;;  %v536_v34 = vmax.f32 %v504_v13, 0.0  ;;  %v505_v41 = vld [vmem:[%s8390_s17 + $0xd0] sm:$0xff] }
  0xd3   : > { %v1883_v11 = vand.u32 4294901760, %v1882_v48  ;;  %v9231_v49 = vsub.f32 %v1605_v53, %v9226_v37  ;;  %v970_v10 = vadd.f32 %v938_v51, %v868_v52  ;;  %v635_v20 = vmul.f32 %v8976_v29, %v9108_v30  ;;  %v506_v48 = vld [vmem:[%s8390_s17 + $0xd8] sm:$0xff] }
  0xd4   : > { %v1538_v12 = vld [vmem:[#allocation4 + $0x90] sm:$0xff]  ;;  %1507 = vst.msk [vmem:[#allocation4 + $0x98] sm:$0xff] %vm333_vm1, %v1475_v62  ;;  %v1274_v44 = vadd.f32 %v1242_v5, %v1171_v35  ;;  %v1445_v28 = vmul.f32 %v9084_v32, %v9233_v6  ;;  %568 = vst.msk [vmem:[#allocation2 + $0x1a8] sm:$0xff] %vm333_vm1, %v535_v2  ;;  %v736_v50 = vmul.f32 %v8983_v25, %v9110_v36 }
  0xd5   : > { %11559 = vst [vmem:[#allocation29_spill] sm:$0xff] %v9231_v49  ;;  %569 = vst.msk [vmem:[#allocation2 + $0x1b0] sm:$0xff] %vm333_vm1, %v536_v34  ;;  %v837_v24 = vmul.f32 %v8996_v18, %v9130_v19  ;;  %7079 = vmatprep.mubr.f32.mxu0 %v1883_v11  ;;  %v11410_v30 = vand.u32 4294901760, %v9231_v49  ;;  %v1608_v62 = vsel %vm333_vm1, %v1538_v12, 0  ;;  %v1071_v35 = vadd.f32 %v1039_v42, %v970_v10 }
  0xd6   : > { %v939_v52 = vmul.f32 %v9072_v46, %v9180_v60  ;;  %v9250_v5 = vand.u32 4294901760, %v1608_v62  ;;  %v1375_v40 = vadd.f32 %v1343_v63, %v1274_v44  ;;  %v768_v51 = vadd.f32 %v736_v50, %v635_v20 }
  0xd7   : > { %v1040_v36 = vmul.f32 %v9091_v33, %v9189_v54  ;;  %v1892_v19 = vsub.f32 %v9231_v49, %v11410_v30  ;;  %v1172_v22 = vadd.f32 %v1140_v38, %v1071_v35  ;;  %v636_v12 = vmul.f32 %v8976_v29, %v9150_v8 }
  0xd8   : > { %v737_v42 = vmul.f32 %v8983_v25, %v9154_v23  ;;  %v9262_v13 = vsub.f32 %v1608_v62, %v9250_v5  ;;  %v1476_v53 = vadd.f32 %v1444_v47, %v1375_v40  ;;  %v869_v63 = vadd.f32 %v837_v24, %v768_v51 }
  0xd9   : > { %v838_v20 = vmul.f32 %v8996_v18, %v9161_v45  ;;  %v1893_v2 = vand.u32 4294901760, %v1892_v19  ;;  %v1275_v34 = vadd.f32 %v1243_v15, %v1172_v22  ;;  %v1141_v38 = vmul.f32 %v9098_v0, %v9199_v1 }
  0xda   : > { %11560 = vst [vmem:[#allocation30_spill] sm:$0xff] %v9262_v13  ;;  %v769_v11 = vadd.f32 %v737_v42, %v636_v12  ;;  %v11409_v8 = vand.u32 4294901760, %v9262_v13  ;;  %1508 = vst.msk [vmem:[#allocation4 + $0xa0] sm:$0xff] %vm333_vm1, %v1476_v53  ;;  %v971_v23 = vadd.f32 %v939_v52, %v869_v63  ;;  %v940_v47 = vmul.f32 %v9072_v46, %v9209_v39 }
  0xdb   : > { %v1041_v10 = vmul.f32 %v9091_v33, %v9221_v43  ;;  %7080 = vmatmul.mubr.f32.gmra.mrb[16].mxu0 %v1893_v2  ;;  %v1539_v45 = vld [vmem:[#allocation4 + $0x98] sm:$0xff]  ;;  %v1376_v44 = vadd.f32 %v1344_v31, %v1275_v34  ;;  %v9276_v50 = vld [vmem:[#allocation2 + $0x1a7] sm:$0xff]  ;;  %v537_v24 = vmax.f32 %v505_v41, 0.0  ;;  %v538_v62 = vmax.f32 %v506_v48, 0.0 }
  0xdc   : > { %v870_v15 = vadd.f32 %v838_v20, %v769_v11  ;;  %v1902_v35 = vsub.f32 %v9262_v13, %v11409_v8  ;;  %v1611_v52 = vsel %vm333_vm1, %v1539_v45, 0  ;;  %v1072_v40 = vadd.f32 %v1040_v36, %v971_v23  ;;  %v9284_v19 = vld [vmem:[#allocation2 + $0x1a8] sm:$0xff]  ;;  %v9312_v45 = vld [vmem:[#allocation2 + $0x1b1] sm:$0xff] }
  0xdd   : > { %v1244_v51 = vmul.f32 %v9115_v7, %v9276_v50  ;;  %v9286_v22 = vand.u32 4294901760, %v1611_v52  ;;  %v1477_v31 = vadd.f32 %v1445_v28, %v1376_v44  ;;  %v1345_v12 = vmul.f32 %v9122_v55, %v9284_v19  ;;  %v9290_v42 = vld [vmem:[#allocation2 + $0x1a9] sm:$0xff]  ;;  %570 = vst.msk [vmem:[#allocation2 + $0x1c8] sm:$0xff] %vm333_vm1, %v537_v24  ;;  %571 = vst.msk [vmem:[#allocation2 + $0x1d0] sm:$0xff] %vm333_vm1, %v538_v62 }
  0xde   : > { %v1142_v53 = vmul.f32 %v9098_v0, %v9233_v6  ;;  %v1903_v36 = vand.u32 4294901760, %v1902_v35  ;;  %v1173_v63 = vadd.f32 %v1141_v38, %v1072_v40  ;;  %v1446_v20 = vmul.f32 %v9084_v32, %v9290_v42  ;;  %v9298_v48 = vld [vmem:[#allocation2 + $0x1af] sm:$0xff] }
  0xdf   : > { %v972_v41 = vadd.f32 %v940_v47, %v870_v15  ;;  %v9300_v28 = vld [vmem:[#allocation2 + $0x1b0] sm:$0xff]  ;;  %v9303_v2 = vsub.f32 %v1611_v52, %v9286_v22  ;;  %1509 = vst.msk [vmem:[#allocation4 + $0xa8] sm:$0xff] %vm333_vm1, %v1477_v31  ;;  %v1245_v34 = vmul.f32 %v9115_v7, %v9298_v48  ;;  %v637_v38 = vmul.f32 %v8976_v29, %v9180_v60 }
  0xe0   : > { %v1346_v11 = vmul.f32 %v9122_v55, %v9300_v28  ;;  %7082 = vmatprep.mubr.f32.mxu0 %v1903_v36  ;;  %v1276_v23 = vadd.f32 %v1244_v51, %v1173_v63  ;;  %v738_v44 = vmul.f32 %v8983_v25, %v9189_v54  ;;  %v839_v15 = vmul.f32 %v8996_v18, %v9199_v1 }
  0xe1   : > { %11561 = vst [vmem:[#allocation31_spill] sm:$0xff] %v9303_v2  ;;  %v1073_v47 = vadd.f32 %v1041_v10, %v972_v41  ;;  %v11412_v24 = vand.u32 4294901760, %v9303_v2  ;;  %v1540_v62 = vld [vmem:[#allocation4 + $0xa0] sm:$0xff]  ;;  %v1447_v35 = vmul.f32 %v9084_v32, %v9312_v45  ;;  %v941_v60 = vmul.f32 %v9072_v46, %v9276_v50 }
  0xe2   : > { %v1042_v10 = vmul.f32 %v9091_v33, %v9284_v19  ;;  %v1614_v52 = vsel %vm333_vm1, %v1540_v62, 0  ;;  %v1377_v40 = vadd.f32 %v1345_v12, %v1276_v23  ;;  %v770_v54 = vadd.f32 %v738_v44, %v637_v38 }
  0xe3   : > { %v1174_v51 = vadd.f32 %v1142_v53, %v1073_v47  ;;  %v1912_v1 = vsub.f32 %v9303_v2, %v11412_v24  ;;  %v9329_v31 = vand.u32 4294901760, %v1614_v52  ;;  %v638_v36 = vmul.f32 %v8976_v29, %v9209_v39 }
  0xe4   : > { %v739_v63 = vmul.f32 %v8983_v25, %v9221_v43  ;;  %v1478_v41 = vadd.f32 %v1446_v20, %v1377_v40  ;;  %v871_v30 = vadd.f32 %v839_v15, %v770_v54  ;;  %v840_v12 = vmul.f32 %v8996_v18, %v9233_v6  ;;  %v9342_v47 = vld [vmem:[#allocation2 + $0x1c7] sm:$0xff]  ;;  %v9381_v49 = vld [vmem:[#allocation2 + $0x1d0] sm:$0xff] }
  0xe5   : > { %v1277_v8 = vadd.f32 %v1245_v34, %v1174_v51  ;;  %v1913_v53 = vand.u32 4294901760, %v1912_v1  ;;  %v9338_v38 = vsub.f32 %v1614_v52, %v9329_v31  ;;  %v1143_v23 = vmul.f32 %v9098_v0, %v9290_v42  ;;  %v507_v40 = vld [vmem:[%s8390_s17 + $0xe0] sm:$0xff]  ;;  %v508_v1 = vld [vmem:[%s8390_s17 + $0xe8] sm:$0xff] }
  0xe6   : > { %v1541_v39 = vld [vmem:[#allocation4 + $0xa8] sm:$0xff]  ;;  %1510 = vst.msk [vmem:[#allocation4 + $0xb0] sm:$0xff] %vm333_vm1, %v1478_v41  ;;  %v973_v20 = vadd.f32 %v941_v60, %v871_v30  ;;  %v1246_v34 = vmul.f32 %v9115_v7, %v9342_v47  ;;  %v771_v6 = vadd.f32 %v739_v63, %v638_v36  ;;  %v942_v62 = vmul.f32 %v9072_v46, %v9298_v48 }
  0xe7   : > { %11562 = vst [vmem:[#allocation32_spill] sm:$0xff] %v9338_v38  ;;  %v1378_v43 = vadd.f32 %v1346_v11, %v1277_v8  ;;  %7083 = vmatmul.mubr.f32.gmra.mrb[18].mxu0 %v1913_v53  ;;  %v11411_v44 = vand.u32 4294901760, %v9338_v38  ;;  %v1617_v15 = vsel %vm333_vm1, %v1541_v39, 0  ;;  %v1043_v52 = vmul.f32 %v9091_v33, %v9300_v28  ;;  %v9356_v11 = vld [vmem:[#allocation2 + $0x1c8] sm:$0xff] }
  0xe8   : > { %v9354_v51 = vand.u32 4294901760, %v1617_v15  ;;  %v1074_v30 = vadd.f32 %v1042_v10, %v973_v20  ;;  %v9358_v60 = vld [vmem:[#allocation2 + $0x1c9] sm:$0xff]  ;;  %v872_v54 = vadd.f32 %v840_v12, %v771_v6  ;;  %v1347_v63 = vmul.f32 %v9122_v55, %v9356_v11 }
  0xe9   : > { %v1479_v8 = vadd.f32 %v1447_v35, %v1378_v43  ;;  %v1922_v36 = vsub.f32 %v9338_v38, %v11411_v44  ;;  %v1448_v41 = vmul.f32 %v9084_v32, %v9358_v60  ;;  %v1144_v35 = vmul.f32 %v9098_v0, %v9312_v45  ;;  %v9370_v10 = vld [vmem:[#allocation2 + $0x1cf] sm:$0xff] }
  0xea   : > { %v9373_v53 = vsub.f32 %v1617_v15, %v9354_v51  ;;  %v1175_v12 = vadd.f32 %v1143_v23, %v1074_v30  ;;  %v974_v39 = vadd.f32 %v942_v62, %v872_v54  ;;  %v1247_v43 = vmul.f32 %v9115_v7, %v9370_v10  ;;  %v9383_v15 = vld [vmem:[#allocation2 + $0x1d1] sm:$0xff] }
  0xeb   : > { %1511 = vst.msk [vmem:[#allocation4 + $0xb8] sm:$0xff] %vm333_vm1, %v1479_v8  ;;  %v1923_v20 = vand.u32 4294901760, %v1922_v36  ;;  %v539_v6 = vmax.f32 %v507_v40, 0.0  ;;  %v540_v44 = vmax.f32 %v508_v1, 0.0  ;;  %v639_v24 = vmul.f32 %v8976_v29, %v9276_v50 }
  0xec   : > { %11563 = vst [vmem:[#allocation33_spill] sm:$0xff] %v9373_v53  ;;  %v11422_v38 = vand.u32 4294901760, %v9373_v53  ;;  %v1278_v2 = vadd.f32 %v1246_v34, %v1175_v12  ;;  %v1075_v13 = vadd.f32 %v1043_v52, %v974_v39  ;;  %v740_v23 = vmul.f32 %v8983_v25, %v9284_v19 }
  0xed   : > { %7085 = vmatprep.mubr.f32.mxu0 %v1923_v20  ;;  %v1542_v62 = vld [vmem:[#allocation4 + $0xb0] sm:$0xff]  ;;  %v1348_v40 = vmul.f32 %v9122_v55, %v9381_v49  ;;  %v1449_v8 = vmul.f32 %v9084_v32, %v9383_v15  ;;  %572 = vst.msk [vmem:[#allocation2 + $0x1e8] sm:$0xff] %vm333_vm1, %v539_v6  ;;  %573 = vst.msk [vmem:[#allocation2 + $0x1f0] sm:$0xff] %vm333_vm1, %v540_v44  ;;  %v841_v50 = vmul.f32 %v8996_v18, %v9290_v42 }
  0xee   : > { %v943_v34 = vmul.f32 %v9072_v46, %v9342_v47  ;;  %v1932_v19 = vsub.f32 %v9373_v53, %v11422_v38  ;;  %v1620_v52 = vsel %vm333_vm1, %v1542_v62, 0  ;;  %v1379_v30 = vadd.f32 %v1347_v63, %v1278_v2 }
  0xef   : > { %v1176_v54 = vadd.f32 %v1144_v35, %v1075_v13  ;;  %v9401_v1 = vand.u32 4294901760, %v1620_v52  ;;  %v772_v36 = vadd.f32 %v740_v23, %v639_v24  ;;  %v640_v44 = vmul.f32 %v8976_v29, %v9298_v48  ;;  %v509_v35 = vld [vmem:[%s8390_s17 + $0xf0] sm:$0xff]  ;;  %v510_v48 = vld [vmem:[%s8390_s17 + $0xf8] sm:$0xff] }
  0xf0   : > { %v741_v42 = vmul.f32 %v8983_v25, %v9300_v28  ;;  %v1933_v12 = vand.u32 4294901760, %v1932_v19  ;;  %v1480_v39 = vadd.f32 %v1448_v41, %v1379_v30  ;;  %v842_v6 = vmul.f32 %v8996_v18, %v9312_v45 }
  0xf1   : > { %v1279_v20 = vadd.f32 %v1247_v43, %v1176_v54  ;;  %v9410_v62 = vsub.f32 %v1620_v52, %v9401_v1  ;;  %v873_v13 = vadd.f32 %v841_v50, %v772_v36  ;;  %v1044_v24 = vmul.f32 %v9091_v33, %v9356_v11 }
  0xf2   : > { %v1543_v2 = vld [vmem:[#allocation4 + $0xb8] sm:$0xff]  ;;  %v773_v63 = vadd.f32 %v741_v42, %v640_v44  ;;  %7086 = vmatmul.mubr.f32.gmra.mrb[20].mxu0 %v1933_v12  ;;  %1512 = vst.msk [vmem:[#allocation4 + $0xc0] sm:$0xff] %vm333_vm1, %v1480_v39  ;;  %v1145_v45 = vmul.f32 %v9098_v0, %v9358_v60  ;;  %v944_v43 = vmul.f32 %v9072_v46, %v9370_v10  ;;  %v541_v44 = vmax.f32 %v509_v35, 0.0 }
  0xf3   : > { %11564 = vst [vmem:[#allocation34_spill] sm:$0xff] %v9410_v62  ;;  %v1623_v28 = vsel %vm333_vm1, %v1543_v2, 0  ;;  %v1380_v41 = vadd.f32 %v1348_v40, %v1279_v20  ;;  %v11421_v23 = vand.u32 4294901760, %v9410_v62  ;;  %v975_v19 = vadd.f32 %v943_v34, %v873_v13 }
  0xf4   : > { %v9423_v50 = vand.u32 4294901760, %v1623_v28  ;;  %v874_v52 = vadd.f32 %v842_v6, %v773_v63  ;;  %v9425_v54 = vld [vmem:[#allocation2 + $0x1e7] sm:$0xff]  ;;  %v1045_v36 = vmul.f32 %v9091_v33, %v9381_v49  ;;  %v542_v40 = vmax.f32 %v510_v48, 0.0  ;;  %574 = vst.msk [vmem:[#allocation2 + $0x208] sm:$0xff] %vm333_vm1, %v541_v44 }
  0xf5   : > { %v1481_v30 = vadd.f32 %v1449_v8, %v1380_v41  ;;  %v1942_v42 = vsub.f32 %v9410_v62, %v11421_v23  ;;  %v1076_v39 = vadd.f32 %v1044_v24, %v975_v19  ;;  %v1248_v34 = vmul.f32 %v9115_v7, %v9425_v54  ;;  %v9437_v20 = vld [vmem:[#allocation2 + $0x1e8] sm:$0xff] }
  0xf6   : > { %v9433_v12 = vsub.f32 %v1623_v28, %v9423_v50  ;;  %v1349_v8 = vmul.f32 %v9122_v55, %v9437_v20  ;;  %v9442_v6 = vld [vmem:[#allocation2 + $0x1e9] sm:$0xff]  ;;  %v976_v2 = vadd.f32 %v944_v43, %v874_v52  ;;  %v1146_v13 = vmul.f32 %v9098_v0, %v9383_v15  ;;  %575 = vst.msk [vmem:[#allocation2 + $0x210] sm:$0xff] %vm333_vm1, %v542_v40 }
  0xf7   : > { %1513 = vst.msk [vmem:[#allocation4 + $0xc8] sm:$0xff] %vm333_vm1, %v1481_v30  ;;  %v641_v24 = vmul.f32 %v8976_v29, %v9342_v47  ;;  %v1943_v63 = vand.u32 4294901760, %v1942_v42  ;;  %v1177_v48 = vadd.f32 %v1145_v45, %v1076_v39  ;;  %v1450_v28 = vmul.f32 %v9084_v32, %v9442_v6  ;;  %v9453_v41 = vld [vmem:[#allocation2 + $0x1ef] sm:$0xff] }
  0xf8   : > { %11565 = vst [vmem:[#allocation35_spill] sm:$0xff] %v9433_v12  ;;  %v11425_v35 = vand.u32 4294901760, %v9433_v12  ;;  %v1077_v43 = vadd.f32 %v1045_v36, %v976_v2  ;;  %v1249_v19 = vmul.f32 %v9115_v7, %v9453_v41  ;;  %v9457_v52 = vld [vmem:[#allocation2 + $0x1f0] sm:$0xff]  ;;  %v742_v47 = vmul.f32 %v8983_v25, %v9356_v11 }
  0xf9   : > { %v9459_v30 = vld [vmem:[#allocation2 + $0x1f1] sm:$0xff]  ;;  %v843_v44 = vmul.f32 %v8996_v18, %v9358_v60  ;;  %7088 = vmatprep.mubr.f32.mxu0 %v1943_v63  ;;  %v1544_v40 = vld [vmem:[#allocation4 + $0xc0] sm:$0xff]  ;;  %v1280_v36 = vadd.f32 %v1248_v34, %v1177_v48  ;;  %v1350_v42 = vmul.f32 %v9122_v55, %v9457_v52  ;;  %v945_v60 = vmul.f32 %v9072_v46, %v9425_v54 }
  0xfa   : > { %v1952_v45 = vsub.f32 %v9433_v12, %v11425_v35  ;;  %v1451_v39 = vmul.f32 %v9084_v32, %v9459_v30  ;;  %v1626_v2 = vsel %vm333_vm1, %v1544_v40, 0  ;;  %v1178_v23 = vadd.f32 %v1146_v13, %v1077_v43 }
  0xfb   : > { %v774_v11 = vadd.f32 %v742_v47, %v641_v24  ;;  %v9475_v38 = vand.u32 4294901760, %v1626_v2  ;;  %v1381_v62 = vadd.f32 %v1349_v8, %v1280_v36  ;;  %v1046_v34 = vmul.f32 %v9091_v33, %v9437_v20 }
  0xfc   : > { %v1953_v63 = vand.u32 4294901760, %v1952_v45  ;;  %v1281_v48 = vadd.f32 %v1249_v19, %v1178_v23  ;;  %v642_v12 = vmul.f32 %v8976_v29, %v9370_v10  ;;  %v743_v40 = vmul.f32 %v8983_v25, %v9381_v49  ;;  %v1214_v49 = vld [vmem:[#allocation2 + $0x207] sm:$0xff] }
  0xfd   : > { %11566 = vst [vmem:[#allocation36_spill] sm:$0xff] %v9475_v38  ;;  %v875_v35 = vadd.f32 %v843_v44, %v774_v11  ;;  %v9484_v13 = vsub.f32 %v1626_v2, %v9475_v38  ;;  %v1482_v43 = vadd.f32 %v1450_v28, %v1381_v62  ;;  %v1147_v8 = vmul.f32 %v9098_v0, %v9442_v6  ;;  %v1315_v11 = vld [vmem:[#allocation2 + $0x208] sm:$0xff] }
  0xfe   : > { %7089 = vmatmul.mubr.f32.gmra.mrb[22].mxu0 %v1953_v63  ;;  %v1545_v24 = vld [vmem:[#allocation4 + $0xc8] sm:$0xff]  ;;  %v1382_v45 = vadd.f32 %v1350_v42, %v1281_v48  ;;  %v844_v19 = vmul.f32 %v8996_v18, %v9383_v15  ;;  %v946_v62 = vmul.f32 %v9072_v46, %v9453_v41  ;;  %v1250_v2 = vmul.f32 %v9115_v7, %v1214_v49 }
  0xff   : > { %11567 = vst [vmem:[#allocation37_spill] sm:$0xff] %v9484_v13  ;;  %v1629_v47 = vsel %vm333_vm1, %v1545_v24, 0  ;;  %v977_v23 = vadd.f32 %v945_v60, %v875_v35  ;;  %v11428_v10 = vand.u32 4294901760, %v9484_v13  ;;  %1514 = vst.msk [vmem:[#allocation4 + $0xd0] sm:$0xff] %vm333_vm1, %v1482_v43  ;;  %v775_v42 = vadd.f32 %v743_v40, %v642_v12  ;;  %v1416_v63 = vld [vmem:[#allocation2 + $0x209] sm:$0xff] }
 0x100   : > { %v9492_v44 = vand.u32 4294901760, %v1629_v47  ;;  %v1483_v28 = vadd.f32 %v1451_v39, %v1382_v45  ;;  %v1351_v60 = vmul.f32 %v9122_v55, %v1315_v11  ;;  %v1047_v48 = vmul.f32 %v9091_v33, %v9457_v52 }
 0x101   : > { %v1078_v36 = vadd.f32 %v1046_v34, %v977_v23  ;;  %v1962_v15 = vsub.f32 %v9484_v13, %v11428_v10  ;;  %v1452_v34 = vmul.f32 %v9084_v32, %v1416_v63  ;;  %v876_v24 = vadd.f32 %v844_v19, %v775_v42  ;;  %v1417_v42 = vld [vmem:[#allocation2 + $0x211] sm:$0xff] }
 0x102   : > { %11568 = vst [vmem:[#allocation38_spill] sm:$0xff] %v9492_v44  ;;  %v9502_v35 = vsub.f32 %v1629_v47, %v9492_v44  ;;  %1515 = vst.msk [vmem:[#allocation4 + $0xd8] sm:$0xff] %vm333_vm1, %v1483_v28  ;;  %v643_v12 = vmul.f32 %v8976_v29, %v9425_v54  ;;  %v1215_v47 = vld [vmem:[#allocation2 + $0x20f] sm:$0xff]  ;;  %v744_v45 = vmul.f32 %v8983_v25, %v9437_v20 }
 0x103   : > { %v1179_v39 = vadd.f32 %v1147_v8, %v1078_v36  ;;  %v1963_v40 = vand.u32 4294901760, %v1962_v15  ;;  %v845_v23 = vmul.f32 %v8996_v18, %v9442_v6  ;;  %v978_v13 = vadd.f32 %v946_v62, %v876_v24  ;;  %v1316_v28 = vld [vmem:[#allocation2 + $0x210] sm:$0xff] }
 0x104   : > { %11569 = vst [vmem:[#allocation39_spill] sm:$0xff] %v9502_v35  ;;  %v11435_v43 = vand.u32 4294901760, %v9502_v35  ;;  %v1148_v8 = vmul.f32 %v9098_v0, %v9459_v30  ;;  %v1251_v19 = vmul.f32 %v9115_v7, %v1215_v47  ;;  %v1352_v36 = vmul.f32 %v9122_v55, %v1316_v28 }
 0x105   : > { %v1282_v10 = vadd.f32 %v1250_v2, %v1179_v39  ;;  %7091 = vmatprep.mubr.f32.mxu0 %v1963_v40  ;;  %v776_v20 = vadd.f32 %v744_v45, %v643_v12  ;;  %v947_v15 = vmul.f32 %v9072_v46, %v1214_v49  ;;  %v1079_v62 = vadd.f32 %v1047_v48, %v978_v13  ;;  %v1216_v45 = vld [vmem:[#allocation2 + $0x227] sm:$0xff] }
 0x106   : > { %v1972_v54 = vsub.f32 %v9502_v35, %v11435_v43  ;;  %v1546_v6 = vld [vmem:[#allocation4 + $0xd0] sm:$0xff]  ;;  %v1453_v39 = vmul.f32 %v9084_v32, %v1417_v42  ;;  %v1048_v24 = vmul.f32 %v9091_v33, %v1315_v11  ;;  %v644_v43 = vmul.f32 %v8976_v29, %v9453_v41 }
 0x107   : > { %v1383_v2 = vadd.f32 %v1351_v60, %v1282_v10  ;;  %v1632_v40 = vsel %vm333_vm1, %v1546_v6, 0  ;;  %v877_v44 = vadd.f32 %v845_v23, %v776_v20  ;;  %v1180_v12 = vadd.f32 %v1148_v8, %v1079_v62  ;;  %v1317_v23 = vld [vmem:[#allocation2 + $0x228] sm:$0xff] }
 0x108   : > { %v1973_v53 = vand.u32 4294901760, %v1972_v54  ;;  %v9529_v35 = vand.u32 4294901760, %v1632_v40  ;;  %v745_v10 = vmul.f32 %v8983_v25, %v9457_v52  ;;  %v1149_v11 = vmul.f32 %v9098_v0, %v1416_v63 }
 0x109   : > { %v1484_v38 = vadd.f32 %v1452_v34, %v1383_v2  ;;  %v1547_v13 = vld [vmem:[#allocation4 + $0xd8] sm:$0xff]  ;;  %v979_v49 = vadd.f32 %v947_v15, %v877_v44  ;;  %v846_v60 = vmul.f32 %v8996_v18, %v9459_v30  ;;  %v948_v48 = vmul.f32 %v9072_v46, %v1215_v47  ;;  %v1418_v30 = vld [vmem:[#allocation2 + $0x229] sm:$0xff] }
 0x10a   : > { %11570 = vst [vmem:[#allocation40_spill] sm:$0xff] %v9529_v35  ;;  %7092 = vmatmul.mubr.f32.gmra.mrb[24].mxu0 %v1973_v53  ;;  %v9538_v29 = vsub.f32 %v1632_v40, %v9529_v35  ;;  %v1635_v41 = vsel %vm333_vm1, %v1547_v13, 0  ;;  %v1283_v34 = vadd.f32 %v1251_v19, %v1180_v12  ;;  %v777_v25 = vadd.f32 %v745_v10, %v644_v43  ;;  %v1217_v19 = vld [vmem:[#allocation2 + $0x22f] sm:$0xff] }
 0x10b   : > { %1516 = vst.msk [vmem:[#allocation4 + $0xe0] sm:$0xff] %vm333_vm1, %v1484_v38  ;;  %v9542_v53 = vand.u32 4294901760, %v1635_v41  ;;  %v1080_v52 = vadd.f32 %v1048_v24, %v979_v49  ;;  %v1252_v44 = vmul.f32 %v9115_v7, %v1216_v45  ;;  %v1049_v47 = vmul.f32 %v9091_v33, %v1316_v28  ;;  %v1318_v28 = vld [vmem:[#allocation2 + $0x230] sm:$0xff] }
 0x10c   : > { %v11445_v63 = vand.u32 4294901760, %v9538_v29  ;;  %v1384_v18 = vadd.f32 %v1352_v36, %v1283_v34  ;;  %v878_v46 = vadd.f32 %v846_v60, %v777_v25  ;;  %v1353_v38 = vmul.f32 %v9122_v55, %v1317_v23  ;;  %v1419_v10 = vld [vmem:[#allocation2 + $0x231] sm:$0xff] }
 0x10d   : > { %11571 = vst [vmem:[#allocation41_spill] sm:$0xff] %v9542_v53  ;;  %v9548_v8 = vsub.f32 %v1635_v41, %v9542_v53  ;;  %v1181_v54 = vadd.f32 %v1149_v11, %v1080_v52  ;;  %v1150_v6 = vmul.f32 %v9098_v0, %v1417_v42  ;;  %v1454_v33 = vmul.f32 %v9084_v32, %v1418_v30 }
 0x10e   : > { %v1982_v43 = vsub.f32 %v9538_v29, %v11445_v63  ;;  %v1485_v20 = vadd.f32 %v1453_v39, %v1384_v18  ;;  %v980_v15 = vadd.f32 %v948_v48, %v878_v46  ;;  %v1253_v40 = vmul.f32 %v9115_v7, %v1217_v19  ;;  %v11607_v63 = vld [vmem:[#allocation35_spill] sm:$0xff] }
 0x10f   : > { %v11444_v36 = vand.u32 4294901760, %v9548_v8  ;;  %v1284_v2 = vadd.f32 %v1252_v44, %v1181_v54  ;;  %v1354_v13 = vmul.f32 %v9122_v55, %v1318_v28  ;;  %v1455_v7 = vmul.f32 %v9084_v32, %v1419_v10  ;;  %v11578_v10 = vld [vmem:[#allocation23_spill] sm:$0xff] }
 0x110   : > { %v1983_v62 = vand.u32 4294901760, %v1982_v43  ;;  %1517 = vst.msk [vmem:[#allocation4 + $0xe8] sm:$0xff] %vm333_vm1, %v1485_v20  ;;  %v1081_v24 = vadd.f32 %v1049_v47, %v980_v15 }
 0x111   : > { %v1992_v12 = vsub.f32 %v9548_v8, %v11444_v36  ;;  %v1385_v45 = vadd.f32 %v1353_v38, %v1284_v2  ;;  %v11606_v36 = vld [vmem:[#allocation34_spill] sm:$0xff] }
 0x112   : > { %v1548_v39 = vld [vmem:[#allocation4 + $0xe0] sm:$0xff]  ;;  %7094 = vmatprep.mubr.f32.mxu0 %v1983_v62  ;;  %v1182_v42 = vadd.f32 %v1150_v6, %v1081_v24 }
 0x113   : > { %v1638_v0 = vsel %vm333_vm1, %v1548_v39, 0  ;;  %v1993_v49 = vand.u32 4294901760, %v1992_v12  ;;  %v1486_v60 = vadd.f32 %v1454_v33, %v1385_v45  ;;  %v11577_v45 = vld [vmem:[#allocation21_spill] sm:$0xff] }
 0x114   : > { %v9564_v11 = vand.u32 4294901760, %v1638_v0  ;;  %v1285_v48 = vadd.f32 %v1253_v40, %v1182_v42  ;;  %v11580_v42 = vld [vmem:[#allocation27_spill] sm:$0xff] }
 0x115   : > { %7095 = vmatmul.mubr.f32.gmra.mrb[26].mxu0 %v1993_v49  ;;  %1518 = vst.msk [vmem:[#allocation4 + $0xf0] sm:$0xff] %vm333_vm1, %v1486_v60  ;;  %v11582_v49 = vld [vmem:[#allocation38_spill] sm:$0xff]  ;;  %v11583_v60 = vld [vmem:[#allocation7_spill] sm:$0xff] }
 0x116   : > { %11572 = vst [vmem:[#allocation42_spill] sm:$0xff] %v9564_v11  ;;  %v9568_v41 = vsub.f32 %v1638_v0, %v9564_v11  ;;  %v1386_v34 = vadd.f32 %v1354_v13, %v1285_v48  ;;  %v11579_v0 = vld [vmem:[#allocation25_spill] sm:$0xff]  ;;  %v11581_v13 = vld [vmem:[#allocation36_spill] sm:$0xff] }
 0x117   : > { %v1549_v25 = vld [vmem:[#allocation4 + $0xe8] sm:$0xff]  ;;  %v11584_v48 = vld [vmem:[#allocation8_spill] sm:$0xff] }
 0x118   : > { %v11443_v23 = vand.u32 4294901760, %v9568_v41  ;;  %v1641_v52 = vsel %vm333_vm1, %v1549_v25, 0  ;;  %v1487_v55 = vadd.f32 %v1455_v7, %v1386_v34  ;;  %v11585_v7 = vld [vmem:[#allocation9_spill] sm:$0xff]  ;;  %v11586_v34 = vld [vmem:[#allocation6_spill] sm:$0xff] }
 0x119   : > { %v9576_v18 = vand.u32 4294901760, %v1641_v52  ;;  %v11587_v25 = vld [vmem:[#allocation10_spill] sm:$0xff] }
 0x11a   : > { %v2002_v44 = vsub.f32 %v9568_v41, %v11443_v23  ;;  %1519 = vst.msk [vmem:[#allocation4 + $0xf8] sm:$0xff] %vm333_vm1, %v1487_v55  ;;  %v11589_v55 = vld [vmem:[#allocation12_spill] sm:$0xff]  ;;  %v11605_v23 = vld [vmem:[#allocation33_spill] sm:$0xff] }
 0x11b   : > { %11573 = vst [vmem:[#allocation43_spill] sm:$0xff] %v9576_v18  ;;  %v9580_v30 = vsub.f32 %v1641_v52, %v9576_v18  ;;  %v11588_v52 = vld [vmem:[#allocation11_spill] sm:$0xff] }
 0x11c   : > { %v2003_v32 = vand.u32 4294901760, %v2002_v44  ;;  %v1550_v46 = vld [vmem:[#allocation4 + $0xf0] sm:$0xff]  ;;  %v11590_v44 = vld [vmem:[#allocation13_spill] sm:$0xff] }
 0x11d   : > { %v11442_v47 = vand.u32 4294901760, %v9580_v30  ;;  %v1644_v54 = vsel %vm333_vm1, %v1550_v46, 0  ;;  %v11592_v46 = vld [vmem:[#allocation15_spill] sm:$0xff] }
 0x11e   : > { %7097 = vmatprep.mubr.f32.mxu0 %v2003_v32  ;;  %v9584_v38 = vand.u32 4294901760, %v1644_v54  ;;  %v11591_v32 = vld [vmem:[#allocation14_spill] sm:$0xff] }
 0x11f   : > { %v2012_v19 = vsub.f32 %v9580_v30, %v11442_v47  ;;  %v11604_v47 = vld [vmem:[#allocation32_spill] sm:$0xff] }
 0x120   : > { %11574 = vst [vmem:[#allocation44_spill] sm:$0xff] %v9584_v38  ;;  %v9590_v43 = vsub.f32 %v1644_v54, %v9584_v38  ;;  %v11593_v54 = vld [vmem:[#allocation16_spill] sm:$0xff] }
 0x121   : > { %v2013_v20 = vand.u32 4294901760, %v2012_v19  ;;  %v1551_v15 = vld [vmem:[#allocation4 + $0xf8] sm:$0xff] }
 0x122   : > { %v11441_v6 = vand.u32 4294901760, %v9590_v43  ;;  %v1647_v2 = vsel %vm333_vm1, %v1551_v15, 0  ;;  %v11594_v19 = vld [vmem:[#allocation17_spill] sm:$0xff]  ;;  %v11596_v15 = vld [vmem:[#allocation20_spill] sm:$0xff] }
 0x123   : > { %7098 = vmatmul.mubr.f32.gmra.mrb[28].mxu0 %v2013_v20  ;;  %v9594_v33 = vand.u32 4294901760, %v1647_v2  ;;  %v11595_v20 = vld [vmem:[#allocation18_spill] sm:$0xff] }
 0x124   : > { %v2022_v28 = vsub.f32 %v9590_v43, %v11441_v6  ;;  %v11603_v6 = vld [vmem:[#allocation31_spill] sm:$0xff] }
 0x125   : > { %11575 = vst [vmem:[#allocation45_spill] sm:$0xff] %v9594_v33  ;;  %v9600_v62 = vsub.f32 %v1647_v2, %v9594_v33  ;;  %v11597_v2 = vld [vmem:[#allocation22_spill] sm:$0xff] }
 0x126   : > { %v2023_v24 = vand.u32 4294901760, %v2022_v28  ;;  %v11598_v28 = vld [vmem:[#allocation24_spill] sm:$0xff] }
 0x127   : > { %v11440_v40 = vand.u32 4294901760, %v9600_v62 }
 0x128   : > { %7100 = vmatprep.mubr.f32.mxu0 %v2023_v24  ;;  %v11599_v24 = vld [vmem:[#allocation26_spill] sm:$0xff] }
 0x129   : > { %v2032_v12 = vsub.f32 %v9600_v62, %v11440_v40  ;;  %v11602_v40 = vld [vmem:[#allocation30_spill] sm:$0xff] }
 0x12b   : > { %v2033_v39 = vand.u32 4294901760, %v2032_v12  ;;  %v11600_v12 = vld [vmem:[#allocation28_spill] sm:$0xff] }
 0x12d   : > { %7101 = vmatmul.mubr.f32.gmra.mrb[30].mxu0 %v2033_v39  ;;  %v11601_v39 = vld [vmem:[#allocation29_spill] sm:$0xff] }
 0x12e   : > { %7105 = vmatprep.mubr.f32.mxu0 %v8627_v58 }
 0x131   : > { %7106 = vmatmul.mubr.f32.vlgmr.msra.gmra.mrb[0].mxu0 %v8639_v16 }
 0x132   : > { %7154 = vmatpush3.msra.mxu0 %v8382_v4  ;;  %7108 = vmatprep.mubr.f32.mxu0 %v8661_v26  ;;  %v11576_v4 = vld [vmem:[#allocation19_spill] sm:$0xff] }
 0x133   : > { %7203 = vmatprep.subr.mxu0 %v8298_v3 }
 0x135   : > { %7109 = vmatmul.mubr.f32.gmra.mrb[2].mxu0 %v8686_v17 }
 0x136   : > { %7111 = vmatprep.mubr.f32.mxu0 %v8713_v9 }
 0x139   : > { %7112 = vmatmul.mubr.f32.gmra.mrb[4].mxu0 %v8746_v27 }
 0x13a   : > { %7114 = vmatprep.mubr.f32.mxu0 %v8775_v61 }
 0x13d   : > { %7115 = vmatmul.mubr.f32.gmra.mrb[6].mxu0 %v8810_v14 }
 0x13e   : > { %7117 = vmatprep.mubr.f32.mxu0 %v8866_v21 }
 0x141   : > { %7118 = vmatmul.mubr.f32.gmra.mrb[8].mxu0 %v8905_v59 }
 0x142   : > { %7120 = vmatprep.mubr.f32.mxu0 %v8931_v56 }
 0x145   : > { %7121 = vmatmul.mubr.f32.gmra.mrb[10].mxu0 %v8967_v57 }
 0x146   : > { %7123 = vmatprep.mubr.f32.mxu0 %v11576_v4 }
 0x149   : > { %7124 = vmatmul.mubr.f32.gmra.mrb[12].mxu0 %v11577_v45 }
 0x14a   : > { %7126 = vmatprep.mubr.f32.mxu0 %v11578_v10 }
 0x14d   : > { %7127 = vmatmul.mubr.f32.gmra.mrb[14].mxu0 %v11579_v0 }
 0x14e   : > { %7129 = vmatprep.mubr.f32.mxu0 %v11580_v42 }
 0x151   : > { %7130 = vmatmul.mubr.f32.gmra.mrb[16].mxu0 %v9226_v37 }
 0x152   : > { %7132 = vmatprep.mubr.f32.mxu0 %v9250_v5 }
 0x155   : > { %7133 = vmatmul.mubr.f32.gmra.mrb[18].mxu0 %v9286_v22 }
 0x156   : > { %7135 = vmatprep.mubr.f32.mxu0 %v9329_v31 }
 0x159   : > { %7136 = vmatmul.mubr.f32.gmra.mrb[20].mxu0 %v9354_v51 }
 0x15a   : > { %7138 = vmatprep.mubr.f32.mxu0 %v9401_v1 }
 0x15d   : > { %7139 = vmatmul.mubr.f32.gmra.mrb[22].mxu0 %v9423_v50 }
 0x15e   : > { %7141 = vmatprep.mubr.f32.mxu0 %v11581_v13  ;;  %v11615_v13 = vand.u32 4294901760, %v11589_v55 }
 0x161   : > { %7142 = vmatmul.mubr.f32.gmra.mrb[24].mxu0 %v11582_v49  ;;  %v11614_v49 = vand.u32 4294901760, %v11588_v52 }
 0x162   : > { %7144 = vmatprep.mubr.f32.mxu0 %v9529_v35  ;;  %v11613_v35 = vand.u32 4294901760, %v11587_v25 }
 0x165   : > { %7145 = vmatmul.mubr.f32.gmra.mrb[26].mxu0 %v9542_v53  ;;  %v11612_v53 = vand.u32 4294901760, %v11585_v7 }
 0x166   : > { %7147 = vmatprep.mubr.f32.mxu0 %v9564_v11  ;;  %v11611_v11 = vand.u32 4294901760, %v11584_v48 }
 0x169   : > { %7148 = vmatmul.mubr.f32.gmra.mrb[28].mxu0 %v9576_v18  ;;  %v11610_v18 = vand.u32 4294901760, %v11583_v60 }
 0x16a   : > { %7150 = vmatprep.mubr.f32.mxu0 %v9584_v38  ;;  %v11609_v38 = vld [vmem:[#allocation39_spill] sm:$0xff] }
 0x16d   : > { %7151 = vmatmul.mubr.f32.gmra.mrb[30].mxu0 %v9594_v33  ;;  %v11608_v33 = vld [vmem:[#allocation37_spill] sm:$0xff] }
 0x16e   : > { %7155 = vmatprep.mubr.f32.mxu0 %v11583_v60  ;;  %v11618_v60 = vand.u32 4294901760, %v11592_v46 }
 0x171   : > { %7156 = vmatmul.mubr.f32.vlgmr.msra.gmra.mrb[0].mxu0 %v11584_v48  ;;  %v11623_v48 = vand.u32 4294901760, %v11597_v2 }
 0x172   : > { %7204 = vmatpush3.msra.mxu0 %v8298_v3  ;;  %7158 = vmatprep.mubr.f32.mxu0 %v11585_v7  ;;  %v11624_v7 = vand.u32 4294901760, %v11598_v28 }
 0x173   : > { %7253 = vmatprep.subr.mxu0 %v11586_v34 }
 0x175   : > { %7159 = vmatmul.mubr.f32.gmra.mrb[2].mxu0 %v11587_v25  ;;  %v11626_v25 = vand.u32 4294901760, %v11600_v12 }
 0x176   : > { %7161 = vmatprep.mubr.f32.mxu0 %v11588_v52  ;;  %v11627_v52 = vand.u32 4294901760, %v11601_v39 }
 0x179   : > { %7162 = vmatmul.mubr.f32.gmra.mrb[4].mxu0 %v11589_v55  ;;  %v11628_v55 = vand.u32 4294901760, %v11602_v40 }
 0x17a   : > { %7164 = vmatprep.mubr.f32.mxu0 %v11590_v44 }
 0x17d   : > { %7165 = vmatmul.mubr.f32.gmra.mrb[6].mxu0 %v11591_v32 }
 0x17e   : > { %7167 = vmatprep.mubr.f32.mxu0 %v11592_v46  ;;  %v11631_v46 = vand.u32 4294901760, %v11605_v23 }
 0x181   : > { %7168 = vmatmul.mubr.f32.gmra.mrb[8].mxu0 %v11593_v54 }
 0x182   : > { %7170 = vmatprep.mubr.f32.mxu0 %v11594_v19 }
 0x185   : > { %7171 = vmatmul.mubr.f32.gmra.mrb[10].mxu0 %v11595_v20 }
 0x186   : > { %7173 = vmatprep.mubr.f32.mxu0 %v11596_v15 }
 0x189   : > { %7174 = vmatmul.mubr.f32.gmra.mrb[12].mxu0 %v11597_v2  ;;  %v9848_v2 = vld [vmem:[%s11341_s5 + $0x2] ss:$0 sm:$0xff] }
 0x18a   : > { %7176 = vmatprep.mubr.f32.mxu0 %v11598_v28 }
 0x18d   : > { %7177 = vmatmul.mubr.f32.gmra.mrb[14].mxu0 %v11599_v24 }
 0x18e   : > { %7179 = vmatprep.mubr.f32.mxu0 %v11600_v12  ;;  %v3793_v12 = vld [vmem:[#allocation3 + $0x9] sm:$0xff] }
 0x191   : > { %7180 = vmatmul.mubr.f32.gmra.mrb[16].mxu0 %v11601_v39 }
 0x192   : > { %7182 = vmatprep.mubr.f32.mxu0 %v11602_v40  ;;  %v11635_v40 = vand.u32 4294901760, %v11609_v38 }
 0x195   : > { %7183 = vmatmul.mubr.f32.gmra.mrb[18].mxu0 %v11603_v6 }
 0x196   : > { %7185 = vmatprep.mubr.f32.mxu0 %v11604_v47 }
 0x199   : > { %7186 = vmatmul.mubr.f32.gmra.mrb[20].mxu0 %v11605_v23  ;;  %v11638_v23 = vand.u32 4294901760, %v9568_v41 }
 0x19a   : > { %7188 = vmatprep.mubr.f32.mxu0 %v11606_v36 }
 0x19d   : > { %7189 = vmatmul.mubr.f32.gmra.mrb[22].mxu0 %v11607_v63 }
 0x19e   : > { %7191 = vmatprep.mubr.f32.mxu0 %v11608_v33 }
 0x1a1   : > { %7192 = vmatmul.mubr.f32.gmra.mrb[24].mxu0 %v11609_v38  ;;  %v11647_v38 = vld [vmem:[#allocation43_spill] sm:$0xff] }
 0x1a2   : > { %7194 = vmatprep.mubr.f32.mxu0 %v9538_v29 }
 0x1a5   : > { %7195 = vmatmul.mubr.f32.gmra.mrb[26].mxu0 %v9548_v8 }
 0x1a6   : > { %7197 = vmatprep.mubr.f32.mxu0 %v9568_v41  ;;  %v11645_v41 = vld [vmem:[#allocation41_spill] sm:$0xff] }
 0x1a9   : > { %7198 = vmatmul.mubr.f32.gmra.mrb[28].mxu0 %v9580_v30 }
 0x1aa   : > { %7200 = vmatprep.mubr.f32.mxu0 %v9590_v43 }
 0x1ad   : > { %7201 = vmatmul.mubr.f32.gmra.mrb[30].mxu0 %v9600_v62 }
 0x1ae   : > { %7205 = vmatprep.mubr.f32.mxu0 %v11610_v18  ;;  %v11616_v18 = vand.u32 4294901760, %v11590_v44  ;;  %v11629_v44 = vand.u32 4294901760, %v11603_v6  ;;  %v11636_v6 = vand.u32 4294901760, %v9538_v29  ;;  %v11643_v29 = vld [vmem:[#allocation38_spill] sm:$0xff] }
 0x1b1   : > { %7206 = vmatmul.mubr.f32.vlgmr.msra.gmra.mrb[0].mxu0 %v11611_v11  ;;  %v11617_v11 = vand.u32 4294901760, %v11591_v32  ;;  %v11630_v32 = vand.u32 4294901760, %v11604_v47  ;;  %v11637_v47 = vand.u32 4294901760, %v9548_v8  ;;  %v11644_v8 = vld [vmem:[#allocation40_spill] sm:$0xff] }
 0x1b2   : > { %7254 = vmatpush3.msra.mxu0 %v11586_v34  ;;  %7208 = vmatprep.mubr.f32.mxu0 %v11612_v53  ;;  %v11619_v53 = vand.u32 4294901760, %v11593_v54  ;;  %v11625_v34 = vand.u32 4294901760, %v11599_v24  ;;  %v11632_v54 = vand.u32 4294901760, %v11606_v36  ;;  %v11639_v36 = vand.u32 4294901760, %v9580_v30  ;;  %v11646_v30 = vld [vmem:[#allocation42_spill] sm:$0xff] }
 0x1b3   : > { %7303 = vmatprep.subr.mxu0 %v8298_v3 }
 0x1b5   : > { %7209 = vmatmul.mubr.f32.gmra.mrb[2].mxu0 %v11613_v35  ;;  %v11620_v35 = vand.u32 4294901760, %v11594_v19  ;;  %v11633_v19 = vand.u32 4294901760, %v11607_v63  ;;  %v11640_v63 = vand.u32 4294901760, %v9590_v43  ;;  %v11648_v43 = vld [vmem:[#allocation44_spill] sm:$0xff] }
 0x1b6   : > { %7211 = vmatprep.mubr.f32.mxu0 %v11614_v49  ;;  %v11621_v49 = vand.u32 4294901760, %v11595_v20  ;;  %v11634_v20 = vand.u32 4294901760, %v11608_v33  ;;  %v11641_v33 = vand.u32 4294901760, %v9600_v62  ;;  %v11649_v62 = vld [vmem:[#allocation45_spill] sm:$0xff] }
 0x1b9   : > { %7212 = vmatmul.mubr.f32.gmra.mrb[4].mxu0 %v11615_v13  ;;  %v11622_v13 = vand.u32 4294901760, %v11596_v15 }
 0x1ba   : > { %7214 = vmatprep.mubr.f32.mxu0 %v11616_v18  ;;  %v3794_v18 = vld [vmem:[#allocation3 + $0x11] sm:$0xff] }
 0x1bd   : > { %7215 = vmatmul.mubr.f32.gmra.mrb[6].mxu0 %v11617_v11 }
 0x1be   : > { %7217 = vmatprep.mubr.f32.mxu0 %v11618_v60 }
 0x1c1   : > { %7218 = vmatmul.mubr.f32.gmra.mrb[8].mxu0 %v11619_v53 }
 0x1c2   : > { %7220 = vmatprep.mubr.f32.mxu0 %v11620_v35 }
 0x1c5   : > { %7221 = vmatmul.mubr.f32.gmra.mrb[10].mxu0 %v11621_v49 }
 0x1c6   : > { %7223 = vmatprep.mubr.f32.mxu0 %v11622_v13 }
 0x1c9   : > { %7224 = vmatmul.mubr.f32.gmra.mrb[12].mxu0 %v11623_v48  ;;  %v3829_v48 = vmul.f32 %v9848_v2, %v3793_v12 }
 0x1ca   : > { %7226 = vmatprep.mubr.f32.mxu0 %v11624_v7 }
 0x1cd   : > { %7227 = vmatmul.mubr.f32.gmra.mrb[14].mxu0 %v11625_v34 }
 0x1ce   : > { %7229 = vmatprep.mubr.f32.mxu0 %v11626_v25 }
 0x1d1   : > { %7230 = vmatmul.mubr.f32.gmra.mrb[16].mxu0 %v11627_v52  ;;  %v3830_v52 = vmul.f32 %v9848_v2, %v3794_v18 }
 0x1d2   : > { %7232 = vmatprep.mubr.f32.mxu0 %v11628_v55 }
 0x1d5   : > { %7233 = vmatmul.mubr.f32.gmra.mrb[18].mxu0 %v11629_v44 }
 0x1d6   : > { %7235 = vmatprep.mubr.f32.mxu0 %v11630_v32 }
 0x1d9   : > { %7236 = vmatmul.mubr.f32.gmra.mrb[20].mxu0 %v11631_v46  ;;  %v9866_v46 = vld [vmem:[%s11341_s5 + $0x4] ss:$0 sm:$0xff] }
 0x1da   : > { %7238 = vmatprep.mubr.f32.mxu0 %v11632_v54 }
 0x1dd   : > { %7239 = vmatmul.mubr.f32.gmra.mrb[22].mxu0 %v11633_v19 }
 0x1de   : > { %7241 = vmatprep.mubr.f32.mxu0 %v11634_v20 }
 0x1e1   : > { %7242 = vmatmul.mubr.f32.gmra.mrb[24].mxu0 %v11635_v40  ;;  %v9871_v40 = vld [vmem:[%s11341_s5 + $0x5] ss:$0 sm:$0xff] }
 0x1e2   : > { %7244 = vmatprep.mubr.f32.mxu0 %v11636_v6 }
 0x1e5   : > { %7245 = vmatmul.mubr.f32.gmra.mrb[26].mxu0 %v11637_v47 }
 0x1e6   : > { %7247 = vmatprep.mubr.f32.mxu0 %v11638_v23 }
 0x1e9   : > { %7248 = vmatmul.mubr.f32.gmra.mrb[28].mxu0 %v11639_v36 }
 0x1ea   : > { %7250 = vmatprep.mubr.f32.mxu0 %v11640_v63 }
 0x1ed   : > { %7251 = vmatmul.mubr.f32.gmra.mrb[30].mxu0 %v11641_v33 }
 0x1ee   : > { %7255 = vmatprep.mubr.f32.mxu0 %v8627_v58 }
 0x1f1   : > { %7256 = vmatmul.mubr.f32.vlgmr.msra.gmra.mrb[0].mxu0 %v8639_v16 }
 0x1f2   : > { %7304 = vmatpush3.msra.mxu0 %v8298_v3  ;;  %7258 = vmatprep.mubr.f32.mxu0 %v8661_v26  ;;  %v11642_v3 = vld [vmem:[#allocation36_spill] sm:$0xff] }
 0x1f5   : > { %7259 = vmatmul.mubr.f32.gmra.mrb[2].mxu0 %v8686_v17 }
 0x1f6   : > { %7261 = vmatprep.mubr.f32.mxu0 %v8713_v9 }
 0x1f9   : > { %7262 = vmatmul.mubr.f32.gmra.mrb[4].mxu0 %v8746_v27 }
 0x1fa   : > { %7264 = vmatprep.mubr.f32.mxu0 %v8775_v61 }
 0x1fd   : > { %7265 = vmatmul.mubr.f32.gmra.mrb[6].mxu0 %v8810_v14 }
 0x1fe   : > { %7267 = vmatprep.mubr.f32.mxu0 %v8866_v21 }
 0x201   : > { %7268 = vmatmul.mubr.f32.gmra.mrb[8].mxu0 %v8905_v59 }
 0x202   : > { %7270 = vmatprep.mubr.f32.mxu0 %v8931_v56 }
 0x205   : > { %7271 = vmatmul.mubr.f32.gmra.mrb[10].mxu0 %v8967_v57 }
 0x206   : > { %7273 = vmatprep.mubr.f32.mxu0 %v11576_v4 }
 0x209   : > { %7274 = vmatmul.mubr.f32.gmra.mrb[12].mxu0 %v11577_v45 }
 0x20a   : > { %7276 = vmatprep.mubr.f32.mxu0 %v11578_v10 }
 0x20d   : > { %7277 = vmatmul.mubr.f32.gmra.mrb[14].mxu0 %v11579_v0 }
 0x20e   : > { %7279 = vmatprep.mubr.f32.mxu0 %v11580_v42 }
 0x211   : > { %7280 = vmatmul.mubr.f32.gmra.mrb[16].mxu0 %v9226_v37 }
 0x212   : > { %7282 = vmatprep.mubr.f32.mxu0 %v9250_v5 }
 0x215   : > { %7283 = vmatmul.mubr.f32.gmra.mrb[18].mxu0 %v9286_v22 }
 0x216   : > { %7285 = vmatprep.mubr.f32.mxu0 %v9329_v31 }
 0x219   : > { %7286 = vmatmul.mubr.f32.gmra.mrb[20].mxu0 %v9354_v51 }
 0x21a   : > { %7288 = vmatprep.mubr.f32.mxu0 %v9401_v1 }
 0x21d   : > { %7289 = vmatmul.mubr.f32.gmra.mrb[22].mxu0 %v9423_v50 }
 0x21e   : > { %7291 = vmatprep.mubr.f32.mxu0 %v11642_v3 }
 0x221   : > { %7292 = vmatmul.mubr.f32.gmra.mrb[24].mxu0 %v11643_v29 }
 0x222   : > { %7294 = vmatprep.mubr.f32.mxu0 %v11644_v8 }
 0x225   : > { %7295 = vmatmul.mubr.f32.gmra.mrb[26].mxu0 %v11645_v41 }
 0x226   : > { %7297 = vmatprep.mubr.f32.mxu0 %v11646_v30 }
 0x229   : > { %7298 = vmatmul.mubr.f32.gmra.mrb[28].mxu0 %v11647_v38 }
 0x22a   : > { %7300 = vmatprep.mubr.f32.mxu0 %v11648_v43 }
 0x22d   : > { %7301 = vmatmul.mubr.f32.gmra.mrb[30].mxu0 %v11649_v62 }
 0x22e   : > { %7305 = vmatprep.mubr.f32.mxu0 %v8627_v58  ;;  %v4565_v58 = vld [vmem:[%s11342_s6] sm:$0xf] }
 0x231   : > { %7306 = vmatmul.mubr.f32.vlgmr.msra.gmra.mrb[0].mxu0 %v8639_v16  ;;  %v9809_v16 = vsel %vm1649_vm0, %v4565_v58, 0 }
 0x232   : > { %7308 = vmatprep.mubr.f32.mxu0 %v8661_v26  ;;  %v9819_v26 = vld [vmem:[%s11339_s3] ss:$0 sm:$0xff] }
 0x235   : > { %7309 = vmatmul.mubr.f32.gmra.mrb[2].mxu0 %v8686_v17 }
 0x236   : > { %7311 = vmatprep.mubr.f32.mxu0 %v8713_v9  ;;  %v9824_v9 = vld [vmem:[%s11340_s4] ss:$0 sm:$0xff] }
 0x239   : > { %7312 = vmatmul.mubr.f32.gmra.mrb[4].mxu0 %v8746_v27 }
 0x23a   : > { %7314 = vmatprep.mubr.f32.mxu0 %v8775_v61  ;;  %v9830_v61 = vld [vmem:[%s11341_s5 + $0x1] ss:$0 sm:$0xff] }
 0x23d   : > { %7315 = vmatmul.mubr.f32.gmra.mrb[6].mxu0 %v8810_v14 }
 0x23e   : > { %7317 = vmatprep.mubr.f32.mxu0 %v8866_v21  ;;  %v9812_v21 = vand.u32 4294901760, %v9809_v16 }
 0x240   : > { %11650 = vst [vmem:[#allocation19_spill] sm:$0xff] %v9812_v21  ;;  %7353 = vmatprep.subr.mxu1 %v9812_v21 }
 0x241   : > { %7318 = vmatmul.mubr.f32.gmra.mrb[8].mxu0 %v8905_v59  ;;  %7354 = vmatpush3.msra.mxu1 %v9812_v21 }
 0x242   : > { %7320 = vmatprep.mubr.f32.mxu0 %v8931_v56 }
 0x245   : > { %7321 = vmatmul.mubr.f32.gmra.mrb[10].mxu0 %v8967_v57  ;;  %v9837_v57 = vld [vmem:[%s11341_s5] ss:$0 sm:$0xff] }
 0x246   : > { %7323 = vmatprep.mubr.f32.mxu0 %v11576_v4 }
 0x249   : > { %7324 = vmatmul.mubr.f32.gmra.mrb[12].mxu0 %v11577_v45 }
 0x24a   : > { %7326 = vmatprep.mubr.f32.mxu0 %v11578_v10 }
 0x24d   : > { %7327 = vmatmul.mubr.f32.gmra.mrb[14].mxu0 %v11579_v0 }
 0x24e   : > { %7329 = vmatprep.mubr.f32.mxu0 %v11580_v42 }
 0x251   : > { %7330 = vmatmul.mubr.f32.gmra.mrb[16].mxu0 %v9226_v37  ;;  %v3591_v37 = vld [vmem:[#allocation3 + $0x7] sm:$0xff] }
 0x252   : > { %7332 = vmatprep.mubr.f32.mxu0 %v9250_v5  ;;  %v3692_v5 = vld [vmem:[#allocation3 + $0x8] sm:$0xff]  ;;  %v3627_v0 = vmul.f32 %v9837_v57, %v3591_v37  ;;  %v9889_v37 = vld [vmem:[%s11341_s5 + $0x6] ss:$0 sm:$0xff] }
 0x253   : > { %v3728_v42 = vmul.f32 %v9830_v61, %v3692_v5 }
 0x255   : > { %7333 = vmatmul.mubr.f32.gmra.mrb[18].mxu0 %v9286_v22  ;;  %v3760_v13 = vadd.f32 %v3728_v42, %v3627_v0 }
 0x256   : > { %7335 = vmatprep.mubr.f32.mxu0 %v9329_v31  ;;  %v3592_v31 = vld [vmem:[#allocation3 + $0xf] sm:$0xff] }
 0x257   : > { %v3628_v28 = vmul.f32 %v9837_v57, %v3592_v31  ;;  %v3861_v6 = vadd.f32 %v3829_v48, %v3760_v13  ;;  %v9911_v48 = vld [vmem:[%s11341_s5 + $0x8] ss:$0 sm:$0xff] }
 0x259   : > { %7336 = vmatmul.mubr.f32.gmra.mrb[20].mxu0 %v9354_v51  ;;  %v3693_v51 = vld [vmem:[#allocation3 + $0x10] sm:$0xff] }
 0x25a   : > { %7338 = vmatprep.mubr.f32.mxu0 %v9401_v1  ;;  %v3729_v24 = vmul.f32 %v9830_v61, %v3693_v51 }
 0x25c   : > { %v3761_v25 = vadd.f32 %v3729_v24, %v3628_v28 }
 0x25d   : > { %7339 = vmatmul.mubr.f32.gmra.mrb[22].mxu0 %v9423_v50 }
 0x25e   : > { %7341 = vmatprep.mubr.f32.mxu0 %v11642_v3  ;;  %v3862_v3 = vadd.f32 %v3830_v52, %v3761_v25 }
 0x261   : > { %7342 = vmatmul.mubr.f32.gmra.mrb[24].mxu0 %v11643_v29 }
 0x262   : > { %7344 = vmatprep.mubr.f32.mxu0 %v11644_v8 }
 0x265   : > { %7345 = vmatmul.mubr.f32.gmra.mrb[26].mxu0 %v11645_v41 }
 0x266   : > { %7347 = vmatprep.mubr.f32.mxu0 %v11646_v30 }
 0x269   : > { %7348 = vmatmul.mubr.f32.gmra.mrb[28].mxu0 %v11647_v38 }
 0x26a   : > { %7350 = vmatprep.mubr.f32.mxu0 %v11648_v43 }
 0x26d   : > { %7351 = vmatmul.mubr.f32.gmra.mrb[30].mxu0 %v11649_v62 }
 0x304   : > { %v7307_v17 = vpop.f32.mrb[0].mxu0 }
 0x305   : > { %v3440_v27 = vmul.f32 %v7307_v17, %v9819_v26  ;;  %v3242_v59 = vpop.f32.mrb[1].mxu0 }
 0x306   : > { %v3439_v14 = vmul.f32 %v9819_v26, %v3242_v59 }
 0x307   : > { %v3479_v56 = vadd.f32 %v9824_v9, %v3440_v27 }
 0x308   : > { %v3478_v22 = vadd.f32 %v9824_v9, %v3439_v14  ;;  %v7310_v1 = vpop.f32.mrb[2].mxu0 }
 0x309   : > { %v3511_v50 = vmax.f32 %v3479_v56, 0.0  ;;  %v3442_v4 = vmul.f32 %v7310_v1, %v9819_v26  ;;  %v3254_v45 = vpop.f32.mrb[3].mxu0 }
 0x30a   : > { %v3510_v10 = vmax.f32 %v3478_v22, 0.0  ;;  %v3441_v15 = vmul.f32 %v9819_v26, %v3254_v45 }
 0x30b   : > { %3544 = vst.msk [vmem:[#allocation3 + $0x30] sm:$0xff] %vm333_vm1, %v3511_v50  ;;  %v3481_v39 = vadd.f32 %v9824_v9, %v3442_v4 }
 0x30c   : > { %3543 = vst.msk [vmem:[#allocation3 + $0x28] sm:$0xff] %vm333_vm1, %v3510_v10  ;;  %v3480_v11 = vadd.f32 %v9824_v9, %v3441_v15  ;;  %v7313_v60 = vpop.f32.mrb[4].mxu0 }
 0x30d   : > { %v3513_v53 = vmax.f32 %v3481_v39, 0.0  ;;  %v3444_v35 = vmul.f32 %v7313_v60, %v9819_v26  ;;  %v3266_v49 = vpop.f32.mrb[5].mxu0 }
 0x30e   : > { %v3512_v7 = vmax.f32 %v3480_v11, 0.0  ;;  %v3443_v34 = vmul.f32 %v9819_v26, %v3266_v49 }
 0x30f   : > { %3547 = vst.msk [vmem:[#allocation3 + $0x50] sm:$0xff] %vm333_vm1, %v3513_v53  ;;  %v3483_v55 = vadd.f32 %v9824_v9, %v3444_v35 }
 0x310   : > { %3546 = vst.msk [vmem:[#allocation3 + $0x48] sm:$0xff] %vm333_vm1, %v3512_v7  ;;  %v3482_v44 = vadd.f32 %v9824_v9, %v3443_v34  ;;  %v7316_v32 = vpop.f32.mrb[6].mxu0 }
 0x311   : > { %v3515_v54 = vmax.f32 %v3483_v55, 0.0  ;;  %v3278_v19 = vpop.f32.mrb[7].mxu0  ;;  %v3446_v1 = vmul.f32 %v7316_v32, %v9819_v26  ;;  %v9921_v55 = vld [vmem:[%s11341_s5 + $0x9] ss:$0 sm:$0xff] }
 0x312   : > { %v3695_v20 = vld [vmem:[#allocation3 + $0x30] sm:$0xff]  ;;  %v3514_v47 = vmax.f32 %v3482_v44, 0.0  ;;  %v9899_v12 = vmul.f32 %v9819_v26, %v3278_v19  ;;  %v9926_v44 = vld [vmem:[%s11341_s5 + $0xa] ss:$0 sm:$0xff] }
 0x313   : > { %v3731_v23 = vmul.f32 %v9830_v61, %v3695_v20  ;;  %v3593_v36 = vld [vmem:[#allocation3 + $0x27] sm:$0xff]  ;;  %v3594_v63 = vld [vmem:[#allocation3 + $0x2f] sm:$0xff]  ;;  %3550 = vst.msk [vmem:[#allocation3 + $0x70] sm:$0xff] %vm333_vm1, %v3515_v54  ;;  %v4033_v4 = vmul.f32 %v9871_v40, %v3695_v20  ;;  %v9914_v7 = vadd.f32 %v9824_v9, %v3446_v1 }
 0x314   : > { %v3694_v33 = vld [vmem:[#allocation3 + $0x28] sm:$0xff]  ;;  %v3629_v29 = vmul.f32 %v9837_v57, %v3593_v36  ;;  %v3630_v8 = vmul.f32 %v9837_v57, %v3594_v63  ;;  %v3931_v38 = vmul.f32 %v9866_v46, %v3593_v36  ;;  %3549 = vst.msk [vmem:[#allocation3 + $0x68] sm:$0xff] %vm333_vm1, %v3514_v47  ;;  %v9880_v43 = vpop.f32.mrb[8].mxu0  ;;  %v3796_v62 = vld [vmem:[#allocation3 + $0x31] sm:$0xff]  ;;  %v3932_v58 = vmul.f32 %v9866_v46, %v3594_v63 }
 0x315   : > { %v3730_v41 = vmul.f32 %v9830_v61, %v3694_v33  ;;  %v3795_v30 = vld [vmem:[#allocation3 + $0x29] sm:$0xff]  ;;  %v9883_v17 = vpop.f32.mrb[9].mxu0  ;;  %v4032_v56 = vmul.f32 %v9871_v40, %v3694_v33  ;;  %v3832_v50 = vmul.f32 %v9848_v2, %v3796_v62  ;;  %v4134_v35 = vmul.f32 %v9889_v37, %v3796_v62 }
 0x316   : > { %v3763_v59 = vadd.f32 %v3731_v23, %v3630_v8  ;;  %v3963_v14 = vadd.f32 %v3931_v38, %v3861_v6  ;;  %v3831_v5 = vmul.f32 %v9848_v2, %v3795_v30  ;;  %v3964_v22 = vadd.f32 %v3932_v58, %v3862_v3  ;;  %v3697_v15 = vld [vmem:[#allocation3 + $0x50] sm:$0xff] }
 0x317   : > { %v3762_v27 = vadd.f32 %v3730_v41, %v3629_v29  ;;  %v3595_v31 = vld [vmem:[#allocation3 + $0x47] sm:$0xff]  ;;  %v3596_v10 = vld [vmem:[#allocation3 + $0x4f] sm:$0xff]  ;;  %v4133_v11 = vmul.f32 %v9889_v37, %v3795_v30  ;;  %v3733_v25 = vmul.f32 %v9830_v61, %v3697_v15  ;;  %v4035_v20 = vmul.f32 %v9871_v40, %v3697_v15 }
 0x318   : > { %v3696_v51 = vld [vmem:[#allocation3 + $0x48] sm:$0xff]  ;;  %v4064_v45 = vadd.f32 %v4032_v56, %v3963_v14  ;;  %v9895_v0 = vpop.f32.mrb[10].mxu0  ;;  %v3798_v28 = vld [vmem:[#allocation3 + $0x51] sm:$0xff]  ;;  %v3631_v24 = vmul.f32 %v9837_v57, %v3595_v31  ;;  %v4065_v18 = vadd.f32 %v4033_v4, %v3964_v22  ;;  %v3864_v53 = vadd.f32 %v3832_v50, %v3763_v59 }
 0x319   : > { %v3863_v42 = vadd.f32 %v3831_v5, %v3762_v27  ;;  %v9901_v39 = vpop.f32.mrb[11].mxu0  ;;  %v3732_v60 = vmul.f32 %v9830_v61, %v3696_v51  ;;  %v3933_v49 = vmul.f32 %v9866_v46, %v3595_v31  ;;  %v3934_v13 = vmul.f32 %v9866_v46, %v3596_v10  ;;  %v3797_v54 = vld [vmem:[#allocation3 + $0x49] sm:$0xff] }
 0x31a   : > { %v4165_v34 = vadd.f32 %v4133_v11, %v4064_v45  ;;  %v3834_v52 = vmul.f32 %v9848_v2, %v3798_v28  ;;  %v3632_v32 = vmul.f32 %v9837_v57, %v3596_v10  ;;  %v4034_v23 = vmul.f32 %v9871_v40, %v3696_v51  ;;  %v9937_v8 = vld [vmem:[#allocation3 + $0x70] sm:$0xff] }
 0x31b   : > { %v3764_v6 = vadd.f32 %v3732_v60, %v3631_v24  ;;  %v3965_v47 = vadd.f32 %v3933_v49, %v3863_v42  ;;  %v4136_v63 = vmul.f32 %v9889_v37, %v3798_v28  ;;  %v3966_v33 = vadd.f32 %v3934_v13, %v3864_v53  ;;  %v9946_v58 = vld [vmem:[#allocation3 + $0x71] sm:$0xff]  ;;  %v3597_v5 = vld [vmem:[#allocation3 + $0x67] sm:$0xff] }
 0x31c   : > { %v9929_v19 = vpop.f32.mrb[12].mxu0  ;;  %v4166_v3 = vadd.f32 %v4134_v35, %v4065_v18  ;;  %v4235_v29 = vmul.f32 %v9911_v48, %v3595_v31  ;;  %v9940_v41 = vmul.f32 %v9921_v55, %v3697_v15  ;;  %v9943_v30 = vmul.f32 %v9926_v44, %v3798_v28  ;;  %v3598_v22 = vld [vmem:[#allocation3 + $0x6f] sm:$0xff] }
 0x31d   : > { %v9933_v36 = vpop.f32.mrb[13].mxu0  ;;  %v3833_v38 = vmul.f32 %v9848_v2, %v3797_v54  ;;  %v4066_v62 = vadd.f32 %v4034_v23, %v3965_v47  ;;  %v3765_v27 = vadd.f32 %v3733_v25, %v3632_v32  ;;  %v4135_v59 = vmul.f32 %v9889_v37, %v3797_v54  ;;  %v3698_v31 = vld [vmem:[#allocation3 + $0x68] sm:$0xff] }
 0x31e   : > { %v4236_v14 = vmul.f32 %v9911_v48, %v3596_v10  ;;  %v4267_v56 = vadd.f32 %v4235_v29, %v4165_v34  ;;  %v4336_v4 = vmul.f32 %v9921_v55, %v3696_v51  ;;  %v9952_v45 = vmul.f32 %v9926_v44, %v3797_v54  ;;  %v3799_v15 = vld [vmem:[#allocation3 + $0x69] sm:$0xff] }
 0x31f   : > { %v3865_v50 = vadd.f32 %v3833_v38, %v3764_v6  ;;  %v3735_v42 = vmul.f32 %v9830_v61, %v9937_v8  ;;  %v4067_v24 = vadd.f32 %v4035_v20, %v3966_v33  ;;  %v4167_v18 = vadd.f32 %v4135_v59, %v4066_v62 }
 0x320   : > { %v7328_v1 = vpop.f32.mrb[14].mxu0  ;;  %v9956_v11 = vadd.f32 %v4236_v14, %v4166_v3  ;;  %v9960_v10 = vmul.f32 %v9848_v2, %v9946_v58  ;;  %v3633_v60 = vmul.f32 %v9837_v57, %v3597_v5  ;;  %v3634_v51 = vmul.f32 %v9837_v57, %v3598_v22 }
 0x321   : > { %v3326_v28 = vpop.f32.mrb[15].mxu0  ;;  %v3734_v53 = vmul.f32 %v9830_v61, %v3698_v31  ;;  %v3935_v35 = vmul.f32 %v9866_v46, %v3597_v5  ;;  %v9966_v49 = vadd.f32 %v4336_v4, %v4267_v56  ;;  %v4037_v13 = vmul.f32 %v9871_v40, %v9937_v8 }
 0x322   : > { %v9971_v34 = vmul.f32 %v9848_v2, %v3799_v15  ;;  %v4237_v25 = vmul.f32 %v9911_v48, %v3597_v5  ;;  %v3866_v54 = vadd.f32 %v3834_v52, %v3765_v27  ;;  %v3936_v20 = vmul.f32 %v9866_v46, %v3598_v22 }
 0x323   : > { %v3967_v6 = vadd.f32 %v3935_v35, %v3865_v50  ;;  %v4036_v47 = vmul.f32 %v9871_v40, %v3698_v31  ;;  %v4137_v33 = vmul.f32 %v9889_v37, %v3799_v15  ;;  %v4338_v29 = vmul.f32 %v9921_v55, %v3698_v31 }
 0x324   : > { %v9974_v32 = vpop.f32.mrb[16].mxu0  ;;  %v4269_v3 = vadd.f32 %v4237_v25, %v4167_v18  ;;  %v3517_v38 = vmax.f32 %v9914_v7, 0.0  ;;  %v3766_v62 = vadd.f32 %v3734_v53, %v3633_v60  ;;  %v3767_v59 = vadd.f32 %v3735_v42, %v3634_v51 }
 0x325   : > { %v9978_v23 = vpop.f32.mrb[17].mxu0  ;;  %v4168_v14 = vadd.f32 %v4136_v63, %v4067_v24  ;;  %v3484_v52 = vadd.f32 %v9824_v9, %v9899_v12  ;;  %v4439_v56 = vmul.f32 %v9926_v44, %v3799_v15  ;;  %v3448_v5 = vmul.f32 %v9880_v43, %v9819_v26 }
 0x326   : > { %v4370_v27 = vadd.f32 %v4338_v29, %v4269_v3  ;;  %3553 = vst.msk [vmem:[#allocation3 + $0x90] sm:$0xff] %vm333_vm1, %v3517_v38  ;;  %v3447_v50 = vmul.f32 %v9819_v26, %v9883_v17  ;;  %v3968_v7 = vadd.f32 %v3936_v20, %v3866_v54  ;;  %v4068_v4 = vadd.f32 %v4036_v47, %v3967_v6 }
 0x327   : > { %v4238_v63 = vmul.f32 %v9911_v48, %v3598_v22  ;;  %v3516_v42 = vmax.f32 %v3484_v52, 0.0  ;;  %v3487_v15 = vadd.f32 %v9824_v9, %v3448_v5  ;;  %v3450_v43 = vmul.f32 %v9895_v0, %v9819_v26 }
 0x328   : > { %v9991_v31 = vpop.f32.mrb[18].mxu0  ;;  %v4471_v12 = vadd.f32 %v4439_v56, %v4370_v27  ;;  %v3486_v18 = vadd.f32 %v9824_v9, %v3447_v50  ;;  %v3449_v17 = vmul.f32 %v9819_v26, %v9901_v39  ;;  %v3452_v60 = vmul.f32 %v9929_v19, %v9819_v26 }
 0x329   : > { %v9994_v24 = vpop.f32.mrb[19].mxu0  ;;  %3552 = vst.msk [vmem:[#allocation3 + $0x88] sm:$0xff] %vm333_vm1, %v3516_v42  ;;  %v3451_v22 = vmul.f32 %v9819_v26, %v9933_v36  ;;  %v3454_v51 = vmul.f32 %v7328_v1, %v9819_v26  ;;  %v3519_v53 = vmax.f32 %v3487_v15, 0.0  ;;  %v3489_v25 = vadd.f32 %v9824_v9, %v3450_v43 }
 0x32a   : > { %4503 = vst.msk [vmem:[#allocation5 + $0x10] sm:$0xff] %vm333_vm1, %v4471_v12  ;;  %v3518_v35 = vmax.f32 %v3486_v18, 0.0  ;;  %v3453_v0 = vmul.f32 %v9819_v26, %v3326_v28  ;;  %v3488_v39 = vadd.f32 %v9824_v9, %v3449_v17  ;;  %v3491_v20 = vadd.f32 %v9824_v9, %v3452_v60 }
 0x32b   : > { %v3490_v19 = vadd.f32 %v9824_v9, %v3451_v22  ;;  %v3493_v36 = vadd.f32 %v9824_v9, %v3454_v51  ;;  %v4069_v1 = vadd.f32 %v4037_v13, %v3968_v7  ;;  %v4270_v47 = vadd.f32 %v4238_v63, %v4168_v14  ;;  %3556 = vst.msk [vmem:[#allocation3 + $0xb0] sm:$0xff] %vm333_vm1, %v3519_v53 }
 0x32c   : > { %v10011_v54 = vpop.f32.mrb[20].mxu0  ;;  %3555 = vst.msk [vmem:[#allocation3 + $0xa8] sm:$0xff] %vm333_vm1, %v3518_v35  ;;  %v3521_v3 = vmax.f32 %v3489_v25, 0.0  ;;  %v3492_v28 = vadd.f32 %v9824_v9, %v3453_v0  ;;  %v3520_v29 = vmax.f32 %v3488_v39, 0.0  ;;  %v3523_v38 = vmax.f32 %v3491_v20, 0.0 }
 0x32d   : > { %v10017_v6 = vpop.f32.mrb[21].mxu0  ;;  %v3522_v52 = vmax.f32 %v3490_v19, 0.0  ;;  %v3525_v27 = vmax.f32 %v3493_v36, 0.0  ;;  %v10024_v56 = vadd.f32 %v9940_v41, %v9956_v11  ;;  %v4138_v5 = vmul.f32 %v9889_v37, %v9946_v58  ;;  %v3701_v50 = vld [vmem:[#allocation3 + $0x90] sm:$0xff] }
 0x32e   : > { %v4339_v13 = vmul.f32 %v9921_v55, %v9937_v8  ;;  %v10032_v14 = vmul.f32 %v9926_v44, %v9946_v58  ;;  %3559 = vst.msk [vmem:[#allocation3 + $0xd0] sm:$0xff] %vm333_vm1, %v3521_v3  ;;  %v3867_v63 = vadd.f32 %v9971_v34, %v3766_v62  ;;  %v4169_v42 = vadd.f32 %v4137_v33, %v4068_v4  ;;  %v3802_v41 = vld [vmem:[#allocation3 + $0x91] sm:$0xff] }
 0x32f   : > { %v3868_v11 = vadd.f32 %v9960_v10, %v3767_v59  ;;  %3558 = vst.msk [vmem:[#allocation3 + $0xc8] sm:$0xff] %vm333_vm1, %v3520_v29  ;;  %3562 = vst.msk [vmem:[#allocation3 + $0xf0] sm:$0xff] %vm333_vm1, %v3523_v38  ;;  %v3524_v8 = vmax.f32 %v3492_v28, 0.0  ;;  %v4170_v33 = vadd.f32 %v4138_v5, %v4069_v1  ;;  %v3456_v10 = vmul.f32 %v9974_v32, %v9819_v26 }
 0x330   : > { %11651 = vst [vmem:[#allocation21_spill] sm:$0xff] %v10032_v14  ;;  %v10035_v7 = vpop.f32.mrb[22].mxu0  ;;  %3561 = vst.msk [vmem:[#allocation3 + $0xe8] sm:$0xff] %vm333_vm1, %v3522_v52  ;;  %v10045_v12 = vadd.f32 %v4339_v13, %v4270_v47  ;;  %v3599_v15 = vld [vmem:[#allocation3 + $0x87] sm:$0xff]  ;;  %v3600_v18 = vld [vmem:[#allocation3 + $0x8f] sm:$0xff]  ;;  %v3455_v62 = vmul.f32 %v9819_v26, %v9978_v23  ;;  %v3737_v59 = vmul.f32 %v9830_v61, %v3701_v50 }
 0x331   : > { %3565 = vst.msk [vmem:[#allocation3 + $0x110] sm:$0xff] %vm333_vm1, %v3525_v27  ;;  %v10043_v58 = vpop.f32.mrb[23].mxu0  ;;  %v3700_v34 = vld [vmem:[#allocation3 + $0x88] sm:$0xff]  ;;  %v3635_v4 = vmul.f32 %v9837_v57, %v3599_v15  ;;  %v3937_v17 = vmul.f32 %v9866_v46, %v3599_v15  ;;  %3564 = vst.msk [vmem:[#allocation3 + $0x108] sm:$0xff] %vm333_vm1, %v3524_v8  ;;  %v3838_v60 = vmul.f32 %v9848_v2, %v3802_v41 }
 0x332   : > { %11652 = vst [vmem:[#allocation23_spill] sm:$0xff] %v10045_v12  ;;  %v3736_v43 = vmul.f32 %v9830_v61, %v3700_v34  ;;  %v4039_v22 = vmul.f32 %v9871_v40, %v3701_v50  ;;  %v3636_v51 = vmul.f32 %v9837_v57, %v3600_v18  ;;  %v3938_v32 = vmul.f32 %v9866_v46, %v3600_v18  ;;  %v3801_v35 = vld [vmem:[#allocation3 + $0x89] sm:$0xff] }
 0x333   : > { %v4140_v23 = vmul.f32 %v9889_v37, %v3802_v41  ;;  %v3969_v25 = vadd.f32 %v3937_v17, %v3867_v63  ;;  %v4038_v0 = vmul.f32 %v9871_v40, %v3700_v34  ;;  %v4239_v39 = vmul.f32 %v9911_v48, %v3599_v15  ;;  %v3601_v52 = vld [vmem:[#allocation3 + $0xa7] sm:$0xff]  ;;  %v3703_v15 = vld [vmem:[#allocation3 + $0xb0] sm:$0xff] }
 0x334   : > { %v10060_v53 = vpop.f32.mrb[24].mxu0  ;;  %v10068_v19 = vmul.f32 %v9921_v55, %v3701_v50  ;;  %v10071_v36 = vmul.f32 %v9926_v44, %v3802_v41  ;;  %v3768_v1 = vadd.f32 %v3736_v43, %v3635_v4  ;;  %v10074_v47 = vadd.f32 %v9824_v9, %v3456_v10  ;;  %v3702_v13 = vld [vmem:[#allocation3 + $0xa8] sm:$0xff] }
 0x335   : > { %v10065_v20 = vpop.f32.mrb[25].mxu0  ;;  %v3970_v3 = vadd.f32 %v3938_v32, %v3868_v11  ;;  %v4070_v28 = vadd.f32 %v4038_v0, %v3969_v25  ;;  %v4271_v29 = vadd.f32 %v4239_v39, %v4169_v42  ;;  %v4340_v38 = vmul.f32 %v9921_v55, %v3700_v34  ;;  %v3602_v34 = vld [vmem:[#allocation3 + $0xaf] sm:$0xff] }
 0x336   : > { %11653 = vst [vmem:[#allocation25_spill] sm:$0xff] %v10071_v36  ;;  %v3769_v27 = vadd.f32 %v3737_v59, %v3636_v51  ;;  %v3837_v5 = vmul.f32 %v9848_v2, %v3801_v35  ;;  %v10079_v50 = vadd.f32 %v9824_v9, %v3455_v62  ;;  %v10083_v63 = vmul.f32 %v9991_v31, %v9819_v26  ;;  %v3804_v31 = vld [vmem:[#allocation3 + $0xb1] sm:$0xff] }
 0x337   : > { %v4139_v11 = vmul.f32 %v9889_v37, %v3801_v35  ;;  %v4372_v8 = vadd.f32 %v4340_v38, %v4271_v29  ;;  %v4441_v42 = vmul.f32 %v9926_v44, %v3801_v35  ;;  %v10091_v10 = vmul.f32 %v9819_v26, %v9994_v24 }
 0x338   : > { %v10085_v41 = vpop.f32.mrb[26].mxu0  ;;  %v3869_v62 = vadd.f32 %v3837_v5, %v3768_v1  ;;  %v4240_v4 = vmul.f32 %v9911_v48, %v3600_v18  ;;  %v3637_v43 = vmul.f32 %v9837_v57, %v3601_v52  ;;  %v10099_v17 = vmul.f32 %v10011_v54, %v9819_v26 }
 0x339   : > { %v10093_v59 = vpop.f32.mrb[27].mxu0  ;;  %v4071_v51 = vadd.f32 %v4039_v22, %v3970_v3  ;;  %v4171_v32 = vadd.f32 %v4139_v11, %v4070_v28  ;;  %v4473_v35 = vadd.f32 %v4441_v42, %v4372_v8  ;;  %v3738_v25 = vmul.f32 %v9830_v61, %v3702_v13  ;;  %v3803_v3 = vld [vmem:[#allocation3 + $0xa9] sm:$0xff] }
 0x33a   : > { %11654 = vst [vmem:[#allocation27_spill] sm:$0xff] %v10093_v59  ;;  %v3739_v24 = vmul.f32 %v9830_v61, %v3703_v15  ;;  %v3870_v0 = vadd.f32 %v3838_v60, %v3769_v27  ;;  %v3939_v39 = vmul.f32 %v9866_v46, %v3601_v52  ;;  %v3940_v1 = vmul.f32 %v9866_v46, %v3602_v34 }
 0x33b   : > { %v4272_v29 = vadd.f32 %v4240_v4, %v4170_v33  ;;  %4505 = vst.msk [vmem:[#allocation5 + $0x20] sm:$0xff] %vm333_vm1, %v4473_v35  ;;  %v3840_v54 = vmul.f32 %v9848_v2, %v3804_v31  ;;  %v3638_v22 = vmul.f32 %v9837_v57, %v3602_v34  ;;  %v4241_v28 = vmul.f32 %v9911_v48, %v3601_v52  ;;  %v3603_v35 = vld [vmem:[#allocation3 + $0xc7] sm:$0xff] }
 0x33c   : > { %v10105_v18 = vpop.f32.mrb[28].mxu0  ;;  %v4041_v60 = vmul.f32 %v9871_v40, %v3703_v15  ;;  %v3770_v27 = vadd.f32 %v3738_v25, %v3637_v43  ;;  %v3971_v5 = vadd.f32 %v3939_v39, %v3869_v62  ;;  %v4040_v11 = vmul.f32 %v9871_v40, %v3702_v13 }
 0x33d   : > { %11655 = vst [vmem:[#allocation7_spill] sm:$0xff] %v10105_v18  ;;  %v10111_v38 = vpop.f32.mrb[29].mxu0  ;;  %v4142_v8 = vmul.f32 %v9889_v37, %v3804_v31  ;;  %v4172_v33 = vadd.f32 %v4140_v23, %v4071_v51  ;;  %v4273_v42 = vadd.f32 %v4241_v28, %v4171_v32  ;;  %v4342_v4 = vmul.f32 %v9921_v55, %v3702_v13  ;;  %v3705_v23 = vld [vmem:[#allocation3 + $0xd0] sm:$0xff] }
 0x33e   : > { %11656 = vst [vmem:[#allocation8_spill] sm:$0xff] %v10111_v38  ;;  %v4343_v36 = vmul.f32 %v9921_v55, %v3703_v15  ;;  %v3839_v18 = vmul.f32 %v9848_v2, %v3803_v3  ;;  %v3972_v52 = vadd.f32 %v3940_v1, %v3870_v0  ;;  %v4072_v14 = vadd.f32 %v4040_v11, %v3971_v5  ;;  %v3704_v38 = vld [vmem:[#allocation3 + $0xc8] sm:$0xff]  ;;  %v3806_v0 = vld [vmem:[#allocation3 + $0xd1] sm:$0xff] }
 0x33f   : > { %v3771_v43 = vadd.f32 %v3739_v24, %v3638_v22  ;;  %v4242_v62 = vmul.f32 %v9911_v48, %v3602_v34  ;;  %v4374_v25 = vadd.f32 %v4342_v4, %v4273_v42  ;;  %v4443_v39 = vmul.f32 %v9926_v44, %v3803_v3  ;;  %v3604_v1 = vld [vmem:[#allocation3 + $0xcf] sm:$0xff] }
 0x340   : > { %v10119_v12 = vpop.f32.mrb[30].mxu0  ;;  %v10126_v13 = vadd.f32 %v10068_v19, %v4272_v29  ;;  %v3871_v15 = vadd.f32 %v3839_v18, %v3770_v27  ;;  %v4141_v32 = vmul.f32 %v9889_v37, %v3803_v3  ;;  %v3639_v28 = vmul.f32 %v9837_v57, %v3603_v35  ;;  %v3805_v3 = vld [vmem:[#allocation3 + $0xc9] sm:$0xff] }
 0x341   : > { %11657 = vst [vmem:[#allocation9_spill] sm:$0xff] %v10119_v12  ;;  %v10123_v51 = vpop.f32.mrb[31].mxu0  ;;  %v10131_v24 = vmul.f32 %v9926_v44, %v3804_v31  ;;  %v4274_v34 = vadd.f32 %v4242_v62, %v4172_v33  ;;  %v4475_v22 = vadd.f32 %v4443_v39, %v4374_v25  ;;  %v3740_v5 = vmul.f32 %v9830_v61, %v3704_v38 }
 0x342   : > { %11658 = vst [vmem:[#allocation6_spill] sm:$0xff] %v10123_v51  ;;  %11659 = vst [vmem:[#allocation10_spill] sm:$0xff] %v10126_v13  ;;  %v4073_v11 = vadd.f32 %v4041_v60, %v3972_v52  ;;  %v4173_v42 = vadd.f32 %v4141_v32, %v4072_v14  ;;  %v3741_v4 = vmul.f32 %v9830_v61, %v3705_v23 }
 0x343   : > { %11660 = vst [vmem:[#allocation11_spill] sm:$0xff] %v10131_v24  ;;  %v3941_v19 = vmul.f32 %v9866_v46, %v3603_v35  ;;  %4507 = vst.msk [vmem:[#allocation5 + $0x30] sm:$0xff] %vm333_vm1, %v4475_v22  ;;  %v3842_v18 = vmul.f32 %v9848_v2, %v3806_v0  ;;  %v3640_v29 = vmul.f32 %v9837_v57, %v3604_v1 }
 0x344   : > { %v3872_v27 = vadd.f32 %v3840_v54, %v3771_v43  ;;  %v3942_v31 = vmul.f32 %v9866_v46, %v3604_v1  ;;  %v3772_v33 = vadd.f32 %v3740_v5, %v3639_v28  ;;  %v4042_v25 = vmul.f32 %v9871_v40, %v3704_v38  ;;  %v3605_v5 = vld [vmem:[#allocation3 + $0xe7] sm:$0xff] }
 0x345   : > { %v3973_v62 = vadd.f32 %v3941_v19, %v3871_v15  ;;  %v4243_v14 = vmul.f32 %v9911_v48, %v3603_v35  ;;  %v10142_v60 = vadd.f32 %v4343_v36, %v4274_v34  ;;  %v4043_v52 = vmul.f32 %v9871_v40, %v3705_v23  ;;  %v3707_v15 = vld [vmem:[#allocation3 + $0xf0] sm:$0xff]  ;;  %v3706_v19 = vld [vmem:[#allocation3 + $0xe8] sm:$0xff] }
 0x346   : > { %v4144_v39 = vmul.f32 %v9889_v37, %v3806_v0  ;;  %v10147_v32 = vmul.f32 %v9921_v55, %v3705_v23  ;;  %v3841_v22 = vmul.f32 %v9848_v2, %v3805_v3  ;;  %v4344_v28 = vmul.f32 %v9921_v55, %v3704_v38 }
 0x347   : > { %11661 = vst [vmem:[#allocation12_spill] sm:$0xff] %v10142_v60  ;;  %v4074_v54 = vadd.f32 %v4042_v25, %v3973_v62  ;;  %v4275_v43 = vadd.f32 %v4243_v14, %v4173_v42  ;;  %v10152_v35 = vmul.f32 %v9926_v44, %v3806_v0  ;;  %v3773_v36 = vadd.f32 %v3741_v4, %v3640_v29  ;;  %v3606_v60 = vld [vmem:[#allocation3 + $0xef] sm:$0xff] }
 0x348   : > { %v3974_v34 = vadd.f32 %v3942_v31, %v3872_v27  ;;  %v4174_v24 = vadd.f32 %v4142_v8, %v4073_v11  ;;  %v3873_v51 = vadd.f32 %v3841_v22, %v3772_v33  ;;  %v4143_v23 = vmul.f32 %v9889_v37, %v3805_v3  ;;  %v3808_v4 = vld [vmem:[#allocation3 + $0xf1] sm:$0xff]  ;;  %v3807_v11 = vld [vmem:[#allocation3 + $0xe9] sm:$0xff] }
 0x349   : > { %11662 = vst [vmem:[#allocation13_spill] sm:$0xff] %v10152_v35  ;;  %v4376_v12 = vadd.f32 %v4344_v28, %v4275_v43  ;;  %v4445_v13 = vmul.f32 %v9926_v44, %v3805_v3  ;;  %v4244_v42 = vmul.f32 %v9911_v48, %v3604_v1  ;;  %v3743_v38 = vmul.f32 %v9830_v61, %v3707_v15 }
 0x34a   : > { %v3641_v62 = vmul.f32 %v9837_v57, %v3605_v5  ;;  %v3742_v25 = vmul.f32 %v9830_v61, %v3706_v19  ;;  %v4175_v0 = vadd.f32 %v4143_v23, %v4074_v54  ;;  %v3642_v8 = vmul.f32 %v9837_v57, %v3606_v60  ;;  %v10171_v23 = vld [vmem:[#allocation3 + $0x110] sm:$0xff] }
 0x34b   : > { %v4477_v14 = vadd.f32 %v4445_v13, %v4376_v12  ;;  %v3943_v29 = vmul.f32 %v9866_v46, %v3605_v5  ;;  %v4075_v27 = vadd.f32 %v4043_v52, %v3974_v34  ;;  %v4276_v31 = vadd.f32 %v4244_v42, %v4174_v24  ;;  %v3708_v42 = vld [vmem:[#allocation3 + $0x108] sm:$0xff] }
 0x34c   : > { %v3874_v33 = vadd.f32 %v3842_v18, %v3773_v36  ;;  %v3944_v3 = vmul.f32 %v9866_v46, %v3606_v60  ;;  %v3774_v1 = vadd.f32 %v3742_v25, %v3641_v62  ;;  %v4044_v43 = vmul.f32 %v9871_v40, %v3706_v19 }
 0x34d   : > { %4509 = vst.msk [vmem:[#allocation5 + $0x40] sm:$0xff] %vm333_vm1, %v4477_v14  ;;  %v3975_v22 = vadd.f32 %v3943_v29, %v3873_v51  ;;  %v4245_v54 = vmul.f32 %v9911_v48, %v3605_v5  ;;  %v3844_v12 = vmul.f32 %v9848_v2, %v3808_v4  ;;  %v4045_v13 = vmul.f32 %v9871_v40, %v3707_v15  ;;  %v3607_v51 = vld [vmem:[#allocation3 + $0x107] sm:$0xff]  ;;  %v3608_v29 = vld [vmem:[#allocation3 + $0x10f] sm:$0xff] }
 0x34e   : > { %v4146_v28 = vmul.f32 %v9889_v37, %v3808_v4  ;;  %v3843_v52 = vmul.f32 %v9848_v2, %v3807_v11  ;;  %v3775_v24 = vadd.f32 %v3743_v38, %v3642_v8  ;;  %v4346_v34 = vmul.f32 %v9921_v55, %v3706_v19 }
 0x34f   : > { %v4076_v18 = vadd.f32 %v4044_v43, %v3975_v22  ;;  %v4277_v36 = vadd.f32 %v4245_v54, %v4175_v0  ;;  %v10174_v62 = vmul.f32 %v9921_v55, %v3707_v15  ;;  %v3976_v5 = vadd.f32 %v3944_v3, %v3874_v33  ;;  %v10181_v22 = vld [vmem:[#allocation3 + $0x111] sm:$0xff] }
 0x350   : > { %v4145_v25 = vmul.f32 %v9889_v37, %v3807_v11  ;;  %v4176_v14 = vadd.f32 %v4144_v39, %v4075_v27  ;;  %v3875_v35 = vadd.f32 %v3843_v52, %v3774_v1  ;;  %v4246_v59 = vmul.f32 %v9911_v48, %v3606_v60 }
 0x351   : > { %v4378_v38 = vadd.f32 %v4346_v34, %v4277_v36  ;;  %v4447_v0 = vmul.f32 %v9926_v44, %v3807_v11  ;;  %v3745_v19 = vmul.f32 %v9830_v61, %v10171_v23  ;;  %v3643_v15 = vmul.f32 %v9837_v57, %v3607_v51 }
 0x352   : > { %v4177_v8 = vadd.f32 %v4145_v25, %v4076_v18  ;;  %v3744_v33 = vmul.f32 %v9830_v61, %v3708_v42  ;;  %v3644_v39 = vmul.f32 %v9837_v57, %v3608_v29  ;;  %v3876_v27 = vadd.f32 %v3844_v12, %v3775_v24 }
 0x353   : > { %v4479_v3 = vadd.f32 %v4447_v0, %v4378_v38  ;;  %v3945_v1 = vmul.f32 %v9866_v46, %v3607_v51  ;;  %v10188_v60 = vadd.f32 %v10147_v32, %v4276_v31  ;;  %v10191_v11 = vmul.f32 %v9926_v44, %v3808_v4  ;;  %v3809_v31 = vld [vmem:[#allocation3 + $0x109] sm:$0xff] }
 0x354   : > { %v4077_v43 = vadd.f32 %v4045_v13, %v3976_v5  ;;  %v3946_v54 = vmul.f32 %v9866_v46, %v3608_v29  ;;  %v4278_v52 = vadd.f32 %v4246_v59, %v4176_v14  ;;  %v10197_v18 = vmul.f32 %v9848_v2, %v10181_v22 }
 0x355   : > { %11663 = vst [vmem:[#allocation14_spill] sm:$0xff] %v10191_v11  ;;  %4511 = vst.msk [vmem:[#allocation5 + $0x50] sm:$0xff] %vm333_vm1, %v4479_v3  ;;  %v4047_v12 = vmul.f32 %v9871_v40, %v10171_v23  ;;  %v4247_v24 = vmul.f32 %v9911_v48, %v3607_v51  ;;  %v10204_v32 = vmul.f32 %v9889_v37, %v10181_v22  ;;  %v3527_v25 = vmax.f32 %v10074_v47, 0.0 }
 0x356   : > { %v3776_v4 = vadd.f32 %v3744_v33, %v3643_v15  ;;  %v3977_v13 = vadd.f32 %v3945_v1, %v3875_v35  ;;  %v3978_v36 = vadd.f32 %v3946_v54, %v3876_v27  ;;  %v3777_v59 = vadd.f32 %v3745_v19, %v3644_v39 }
 0x357   : > { %v4279_v34 = vadd.f32 %v4247_v24, %v4177_v8  ;;  %v4348_v5 = vmul.f32 %v9921_v55, %v3708_v42  ;;  %v4046_v14 = vmul.f32 %v9871_v40, %v3708_v42  ;;  %v4178_v38 = vadd.f32 %v4146_v28, %v4077_v43  ;;  %3568 = vst.msk [vmem:[#allocation3 + $0x130] sm:$0xff] %vm333_vm1, %v3527_v25 }
 0x358   : > { %v4248_v0 = vmul.f32 %v9911_v48, %v3608_v29  ;;  %v3526_v51 = vmax.f32 %v10079_v50, 0.0  ;;  %v4449_v11 = vmul.f32 %v9926_v44, %v3809_v31  ;;  %v3497_v35 = vadd.f32 %v9824_v9, %v10083_v63 }
 0x359   : > { %v4380_v3 = vadd.f32 %v4348_v5, %v4279_v34  ;;  %v3496_v8 = vadd.f32 %v9824_v9, %v10091_v10  ;;  %v4078_v19 = vadd.f32 %v4046_v14, %v3977_v13  ;;  %v4079_v47 = vadd.f32 %v4047_v12, %v3978_v36 }
 0x35a   : > { %3567 = vst.msk [vmem:[#allocation3 + $0x128] sm:$0xff] %vm333_vm1, %v3526_v51  ;;  %v3499_v28 = vadd.f32 %v9824_v9, %v10099_v17  ;;  %v3459_v50 = vmul.f32 %v9819_v26, %v10017_v6  ;;  %v3529_v29 = vmax.f32 %v3497_v35, 0.0  ;;  %v3462_v33 = vmul.f32 %v10035_v7, %v9819_v26  ;;  %v4535_v51 = vld [vmem:[#allocation5 + $0x10] sm:$0xff] }
 0x35b   : > { %v4481_v42 = vadd.f32 %v4449_v11, %v4380_v3  ;;  %v3528_v15 = vmax.f32 %v3496_v8, 0.0  ;;  %v3461_v10 = vmul.f32 %v9819_v26, %v10043_v58  ;;  %v3464_v27 = vmul.f32 %v10060_v53, %v9819_v26 }
 0x35c   : > { %v3531_v63 = vmax.f32 %v3499_v28, 0.0  ;;  %v3498_v39 = vadd.f32 %v9824_v9, %v3459_v50  ;;  %v4280_v1 = vadd.f32 %v4248_v0, %v4178_v38  ;;  %3571 = vst.msk [vmem:[#allocation3 + $0x150] sm:$0xff] %vm333_vm1, %v3529_v29  ;;  %v3501_v6 = vadd.f32 %v9824_v9, %v3462_v33  ;;  %v11666_v50 = vld [vmem:[#allocation27_spill] sm:$0xff] }
 0x35d   : > { %4513 = vst.msk [vmem:[#allocation5 + $0x60] sm:$0xff] %vm333_vm1, %v4481_v42  ;;  %3570 = vst.msk [vmem:[#allocation3 + $0x148] sm:$0xff] %vm333_vm1, %v3528_v15  ;;  %v3463_v7 = vmul.f32 %v9819_v26, %v10065_v20  ;;  %v4469_v17 = vadd.f32 %v9952_v45, %v9966_v49  ;;  %v3500_v53 = vadd.f32 %v9824_v9, %v3461_v10 }
 0x35e   : > { %3574 = vst.msk [vmem:[#allocation3 + $0x170] sm:$0xff] %vm333_vm1, %v3531_v63  ;;  %v3530_v58 = vmax.f32 %v3498_v39, 0.0  ;;  %v3503_v11 = vadd.f32 %v9824_v9, %v3464_v27  ;;  %v4470_v43 = vadd.f32 %v9943_v30, %v10024_v56  ;;  %v4349_v54 = vmul.f32 %v9921_v55, %v10171_v23  ;;  %v3711_v49 = vld [vmem:[#allocation3 + $0x130] sm:$0xff] }
 0x35f   : > { %v3845_v12 = vmul.f32 %v9848_v2, %v3809_v31  ;;  %v4147_v20 = vmul.f32 %v9889_v37, %v3809_v31  ;;  %v3533_v24 = vmax.f32 %v3501_v6, 0.0  ;;  %4501 = vst.msk [vmem:[#allocation5] sm:$0xff] %vm333_vm1, %v4469_v17  ;;  %v10249_v45 = vmul.f32 %v9926_v44, %v10181_v22 }
 0x360   : > { %3573 = vst.msk [vmem:[#allocation3 + $0x168] sm:$0xff] %vm333_vm1, %v3530_v58  ;;  %v3532_v13 = vmax.f32 %v3500_v53, 0.0  ;;  %v3535_v36 = vmax.f32 %v3503_v11, 0.0  ;;  %v10254_v30 = vsub.f32 %v9809_v16, %v9812_v21  ;;  %4502 = vst.msk [vmem:[#allocation5 + $0x8] sm:$0xff] %vm333_vm1, %v4470_v43  ;;  %v10258_v56 = vadd.f32 %v10174_v62, %v4278_v52 }
 0x361   : > { %v3877_v23 = vadd.f32 %v3845_v12, %v3776_v4  ;;  %v4179_v31 = vadd.f32 %v4147_v20, %v4078_v19  ;;  %v3609_v34 = vld [vmem:[#allocation3 + $0x127] sm:$0xff]  ;;  %v3610_v5 = vld [vmem:[#allocation3 + $0x12f] sm:$0xff]  ;;  %v3878_v25 = vadd.f32 %v10197_v18, %v3777_v59  ;;  %3577 = vst.msk [vmem:[#allocation3 + $0x190] sm:$0xff] %vm333_vm1, %v3533_v24  ;;  %v10262_v14 = vadd.f32 %v4349_v54, %v4280_v1 }
 0x362   : > { %11664 = vst [vmem:[#allocation15_spill] sm:$0xff] %v10254_v30  ;;  %v3710_v22 = vld [vmem:[#allocation3 + $0x128] sm:$0xff]  ;;  %v3645_v38 = vmul.f32 %v9837_v57, %v3609_v34  ;;  %v4180_v16 = vadd.f32 %v10204_v32, %v4079_v47  ;;  %3576 = vst.msk [vmem:[#allocation3 + $0x188] sm:$0xff] %vm333_vm1, %v3532_v13  ;;  %v10269_v62 = vadd.f32 %v9824_v9, %v3463_v7  ;;  %v3812_v4 = vld [vmem:[#allocation3 + $0x131] sm:$0xff]  ;;  %v10278_v8 = vand.u32 4294901760, %v10254_v30 }
 0x363   : > { %3580 = vst.msk [vmem:[#allocation3 + $0x1b0] sm:$0xff] %vm333_vm1, %v3535_v36  ;;  %v3747_v52 = vmul.f32 %v9830_v61, %v3711_v49  ;;  %v3646_v18 = vmul.f32 %v9837_v57, %v3610_v5  ;;  %v3746_v59 = vmul.f32 %v9830_v61, %v3710_v22  ;;  %v3947_v0 = vmul.f32 %v9866_v46, %v3609_v34  ;;  %v3811_v3 = vld [vmem:[#allocation3 + $0x129] sm:$0xff] }
 0x364   : > { %v3948_v32 = vmul.f32 %v9866_v46, %v3610_v5  ;;  %v4249_v35 = vmul.f32 %v9911_v48, %v3609_v34  ;;  %11665 = vst [vmem:[#allocation16_spill] sm:$0xff] %v10278_v8  ;;  %v10282_v9 = vmul.f32 %v10085_v41, %v9819_v26  ;;  %v4048_v28 = vmul.f32 %v9871_v40, %v3710_v22  ;;  %v3611_v1 = vld [vmem:[#allocation3 + $0x147] sm:$0xff]  ;;  %v3612_v53 = vld [vmem:[#allocation3 + $0x14f] sm:$0xff] }
 0x365   : > { %v3778_v19 = vadd.f32 %v3746_v59, %v3645_v38  ;;  %v3979_v47 = vadd.f32 %v3947_v0, %v3877_v23  ;;  %v10287_v42 = vmul.f32 %v9819_v26, %v11666_v50  ;;  %v3848_v29 = vmul.f32 %v9848_v2, %v3812_v4  ;;  %v3712_v6 = vld [vmem:[#allocation3 + $0x148] sm:$0xff]  ;;  %v3713_v20 = vld [vmem:[#allocation3 + $0x150] sm:$0xff] }
 0x366   : > { %v4281_v15 = vadd.f32 %v4249_v35, %v4179_v31  ;;  %v4350_v33 = vmul.f32 %v9921_v55, %v3710_v22  ;;  %v10292_v63 = vsel %vm333_vm1, %v4535_v51, 0  ;;  %v4049_v39 = vmul.f32 %v9871_v40, %v3711_v49  ;;  %v3814_v34 = vld [vmem:[#allocation3 + $0x151] sm:$0xff]  ;;  %v3813_v22 = vld [vmem:[#allocation3 + $0x149] sm:$0xff] }
 0x367   : > { %v3779_v41 = vadd.f32 %v3747_v52, %v3646_v18  ;;  %v3847_v10 = vmul.f32 %v9848_v2, %v3811_v3  ;;  %v4080_v27 = vadd.f32 %v4048_v28, %v3979_v47  ;;  %v4150_v7 = vmul.f32 %v9889_v37, %v3812_v4 }
 0x368   : > { %v3980_v26 = vadd.f32 %v3948_v32, %v3878_v25  ;;  %v4382_v17 = vadd.f32 %v4350_v33, %v4281_v15  ;;  %v4451_v58 = vmul.f32 %v9926_v44, %v3811_v3  ;;  %v4351_v11 = vmul.f32 %v9921_v55, %v3711_v49  ;;  %v3714_v15 = vld [vmem:[#allocation3 + $0x168] sm:$0xff] }
 0x369   : > { %v10300_v43 = vmul.f32 %v9926_v44, %v3812_v4  ;;  %v3879_v54 = vadd.f32 %v3847_v10, %v3778_v19  ;;  %v4149_v12 = vmul.f32 %v9889_v37, %v3811_v3  ;;  %v4250_v24 = vmul.f32 %v9911_v48, %v3610_v5  ;;  %v10312_v5 = vld [vmem:[%s11341_s5 + $0x1] ss:$0 sm:$0xff] }
 0x36a   : > { %v4483_v13 = vadd.f32 %v4451_v58, %v4382_v17  ;;  %v3647_v36 = vmul.f32 %v9837_v57, %v3611_v1  ;;  %v3748_v23 = vmul.f32 %v9830_v61, %v3712_v6  ;;  %v3880_v25 = vadd.f32 %v3848_v29, %v3779_v41  ;;  %v10318_v61 = vld [vmem:[%s11341_s5] ss:$0 sm:$0xff]  ;;  %v3613_v29 = vld [vmem:[#allocation3 + $0x167] sm:$0xff]  ;;  %v3614_v17 = vld [vmem:[#allocation3 + $0x16f] sm:$0xff] }
 0x36b   : > { %v4181_v31 = vadd.f32 %v4149_v12, %v4080_v27  ;;  %v3949_v49 = vmul.f32 %v9866_v46, %v3611_v1  ;;  %v3950_v38 = vmul.f32 %v9866_v46, %v3612_v53  ;;  %v4081_v52 = vadd.f32 %v4049_v39, %v3980_v26 }
 0x36c   : > { %v4282_v4 = vadd.f32 %v4250_v24, %v4180_v16  ;;  %4515 = vst.msk [vmem:[#allocation5 + $0x70] sm:$0xff] %vm333_vm1, %v4483_v13  ;;  %v3749_v57 = vmul.f32 %v10312_v5, %v3713_v20  ;;  %v3648_v18 = vmul.f32 %v10318_v61, %v3612_v53  ;;  %v3780_v59 = vadd.f32 %v3748_v23, %v3647_v36  ;;  %v10342_v13 = vld [vmem:[%s11341_s5 + $0x4] ss:$0 sm:$0xff] }
 0x36d   : > { %v3981_v46 = vadd.f32 %v3949_v49, %v3879_v54  ;;  %v4050_v16 = vmul.f32 %v9871_v40, %v3712_v6  ;;  %v4251_v0 = vmul.f32 %v9911_v48, %v3611_v1  ;;  %v3850_v51 = vmul.f32 %v9848_v2, %v3814_v34  ;;  %v3816_v54 = vld [vmem:[#allocation3 + $0x171] sm:$0xff]  ;;  %v3815_v49 = vld [vmem:[#allocation3 + $0x169] sm:$0xff] }
 0x36e   : > { %v4051_v3 = vmul.f32 %v9871_v40, %v3713_v20  ;;  %v4152_v32 = vmul.f32 %v9889_v37, %v3814_v34  ;;  %v3849_v35 = vmul.f32 %v9848_v2, %v3813_v22  ;;  %v3982_v19 = vadd.f32 %v3950_v38, %v3880_v25  ;;  %v3715_v2 = vld [vmem:[#allocation3 + $0x170] sm:$0xff] }
 0x36f   : > { %v4082_v47 = vadd.f32 %v4050_v16, %v3981_v46  ;;  %v4283_v28 = vadd.f32 %v4251_v0, %v4181_v31  ;;  %v4352_v50 = vmul.f32 %v9921_v55, %v3712_v6  ;;  %v10328_v33 = vadd.f32 %v4351_v11, %v4282_v4 }
 0x370   : > { %v4353_v39 = vmul.f32 %v9921_v55, %v3713_v20  ;;  %v3781_v41 = vadd.f32 %v3749_v57, %v3648_v18  ;;  %v4182_v10 = vadd.f32 %v4150_v7, %v4081_v52  ;;  %v3881_v27 = vadd.f32 %v3849_v35, %v3780_v59  ;;  %v10357_v52 = vld [vmem:[%s11341_s5 + $0x5] ss:$0 sm:$0xff] }
 0x371   : > { %v4151_v40 = vmul.f32 %v9889_v37, %v3813_v22  ;;  %v4384_v1 = vadd.f32 %v4352_v50, %v4283_v28  ;;  %v4453_v26 = vmul.f32 %v9926_v44, %v3813_v22  ;;  %v10334_v58 = vmul.f32 %v9926_v44, %v3814_v34  ;;  %v10351_v22 = vld [vmem:[%s11341_s5 + $0x2] ss:$0 sm:$0xff] }
 0x372   : > { %v4252_v6 = vmul.f32 %v9911_v48, %v3612_v53  ;;  %v3649_v11 = vmul.f32 %v10318_v61, %v3613_v29  ;;  %v3750_v12 = vmul.f32 %v10312_v5, %v3714_v15  ;;  %v4083_v20 = vadd.f32 %v4051_v3, %v3982_v19  ;;  %v3615_v19 = vld [vmem:[#allocation3 + $0x187] sm:$0xff] }
 0x373   : > { %v4183_v7 = vadd.f32 %v4151_v40, %v4082_v47  ;;  %v4485_v24 = vadd.f32 %v4453_v26, %v4384_v1  ;;  %v3951_v36 = vmul.f32 %v10342_v13, %v3613_v29  ;;  %v3751_v31 = vmul.f32 %v10312_v5, %v3715_v2  ;;  %v3717_v1 = vld [vmem:[#allocation3 + $0x190] sm:$0xff] }
 0x374   : > { %v4284_v23 = vadd.f32 %v4252_v6, %v4182_v10  ;;  %v3882_v34 = vadd.f32 %v3850_v51, %v3781_v41  ;;  %v3952_v53 = vmul.f32 %v10342_v13, %v3614_v17  ;;  %v3852_v25 = vmul.f32 %v10351_v22, %v3816_v54  ;;  %v3716_v41 = vld [vmem:[#allocation3 + $0x188] sm:$0xff] }
 0x375   : > { %4517 = vst.msk [vmem:[#allocation5 + $0x80] sm:$0xff] %vm333_vm1, %v4485_v24  ;;  %v3983_v38 = vadd.f32 %v3951_v36, %v3881_v27  ;;  %v4052_v4 = vmul.f32 %v10357_v52, %v3714_v15  ;;  %v4253_v57 = vmul.f32 %v9911_v48, %v3613_v29  ;;  %v4053_v18 = vmul.f32 %v10357_v52, %v3715_v2  ;;  %v3616_v26 = vld [vmem:[#allocation3 + $0x18f] sm:$0xff] }
 0x376   : > { %v4154_v59 = vmul.f32 %v9889_v37, %v3816_v54  ;;  %v3650_v46 = vmul.f32 %v10318_v61, %v3614_v17  ;;  %v3782_v16 = vadd.f32 %v3750_v12, %v3649_v11  ;;  %v4184_v51 = vadd.f32 %v4152_v32, %v4083_v20  ;;  %v3818_v11 = vld [vmem:[#allocation3 + $0x191] sm:$0xff] }
 0x377   : > { %v4084_v0 = vadd.f32 %v4052_v4, %v3983_v38  ;;  %v4285_v3 = vadd.f32 %v4253_v57, %v4183_v7  ;;  %v4354_v35 = vmul.f32 %v9921_v55, %v3714_v15  ;;  %v4355_v47 = vmul.f32 %v9921_v55, %v3715_v2 }
 0x378   : > { %v10367_v28 = vmul.f32 %v9926_v44, %v3816_v54  ;;  %v3851_v50 = vmul.f32 %v10351_v22, %v3815_v49  ;;  %v3984_v29 = vadd.f32 %v3952_v53, %v3882_v34  ;;  %v4153_v10 = vmul.f32 %v9889_v37, %v3815_v49  ;;  %v3817_v53 = vld [vmem:[#allocation3 + $0x189] sm:$0xff] }
 0x379   : > { %v4254_v27 = vmul.f32 %v9911_v48, %v3614_v17  ;;  %v4386_v40 = vadd.f32 %v4354_v35, %v4285_v3  ;;  %v4455_v32 = vmul.f32 %v9926_v44, %v3815_v49  ;;  %v10373_v15 = vadd.f32 %v4353_v39, %v4284_v23 }
 0x37a   : > { %v3783_v6 = vadd.f32 %v3751_v31, %v3650_v46  ;;  %v3883_v2 = vadd.f32 %v3851_v50, %v3782_v16  ;;  %v3651_v54 = vmul.f32 %v10318_v61, %v3615_v19  ;;  %v4185_v12 = vadd.f32 %v4153_v10, %v4084_v0  ;;  %v10388_v31 = vld [vmem:[%s11341_s5 + $0x6] ss:$0 sm:$0xff] }
 0x37b   : > { %v4286_v20 = vadd.f32 %v4254_v27, %v4184_v51  ;;  %v4487_v7 = vadd.f32 %v4455_v32, %v4386_v40  ;;  %v3752_v24 = vmul.f32 %v10312_v5, %v3716_v41  ;;  %v4085_v37 = vadd.f32 %v4053_v18, %v3984_v29  ;;  %v10403_v51 = vld [vmem:[%s11341_s5 + $0x9] ss:$0 sm:$0xff]  ;;  %v4533_v50 = vld [vmem:[#allocation5] sm:$0xff] }
 0x37c   : > { %v3753_v17 = vmul.f32 %v10312_v5, %v3717_v1  ;;  %v3652_v36 = vmul.f32 %v10318_v61, %v3616_v26  ;;  %v3953_v44 = vmul.f32 %v10342_v13, %v3615_v19  ;;  %v10382_v39 = vmul.f32 %v10351_v22, %v3818_v11  ;;  %v4534_v32 = vld [vmem:[#allocation5 + $0x8] sm:$0xff] }
 0x37d   : > { %4519 = vst.msk [vmem:[#allocation5 + $0x90] sm:$0xff] %vm333_vm1, %v4487_v7  ;;  %v4055_v23 = vmul.f32 %v10357_v52, %v3717_v1  ;;  %v10391_v34 = vmul.f32 %v10388_v31, %v3818_v11  ;;  %v4255_v49 = vmul.f32 %v9911_v48, %v3615_v19  ;;  %v10395_v38 = vmul.f32 %v9921_v55, %v3717_v1  ;;  %v10409_v48 = vld [vmem:[%s11341_s5 + $0xa] ss:$0 sm:$0xff] }
 0x37e   : > { %v3784_v4 = vadd.f32 %v3752_v24, %v3651_v54  ;;  %v3884_v57 = vadd.f32 %v3852_v25, %v3783_v6  ;;  %v3954_v18 = vmul.f32 %v10342_v13, %v3616_v26  ;;  %v10398_v46 = vadd.f32 %v4355_v47, %v4286_v20  ;;  %v3719_v47 = vld [vmem:[#allocation3 + $0x1b0] sm:$0xff] }
 0x37f   : > { %v3985_v16 = vadd.f32 %v3953_v44, %v3883_v2  ;;  %v4287_v0 = vadd.f32 %v4255_v49, %v4185_v12  ;;  %v4356_v3 = vmul.f32 %v10403_v51, %v3716_v41  ;;  %v10412_v55 = vmul.f32 %v10409_v48, %v3818_v11  ;;  %v10423_v2 = vld [vmem:[%s11341_s5 + $0x8] ss:$0 sm:$0xff]  ;;  %v11668_v49 = vld [vmem:[#allocation21_spill] sm:$0xff] }
 0x380   : > { %v3785_v25 = vadd.f32 %v3753_v17, %v3652_v36  ;;  %v3853_v35 = vmul.f32 %v10351_v22, %v3817_v53  ;;  %v4054_v19 = vmul.f32 %v10357_v52, %v3716_v41  ;;  %v4155_v29 = vmul.f32 %v10388_v31, %v3817_v53 }
 0x381   : > { %v4186_v10 = vadd.f32 %v4154_v59, %v4085_v37  ;;  %v4388_v27 = vadd.f32 %v4356_v3, %v4287_v0  ;;  %v4457_v40 = vmul.f32 %v10409_v48, %v3817_v53  ;;  %v3986_v6 = vadd.f32 %v3954_v18, %v3884_v57  ;;  %v11667_v53 = vld [vmem:[#allocation23_spill] sm:$0xff]  ;;  %v3820_v57 = vld [vmem:[#allocation3 + $0x1b1] sm:$0xff] }
 0x382   : > { %v10418_v1 = vadd.f32 %v3853_v35, %v3784_v4  ;;  %v4256_v11 = vmul.f32 %v10423_v2, %v3616_v26  ;;  %v3534_v41 = vmax.f32 %v10269_v62, 0.0  ;;  %v4086_v54 = vadd.f32 %v4054_v19, %v3985_v16  ;;  %v10440_v62 = vld [vmem:[%s11340_s4] ss:$0 sm:$0xff]  ;;  %v11670_v3 = vld [vmem:[#allocation7_spill] sm:$0xff] }
 0x383   : > { %v4489_v12 = vadd.f32 %v4457_v40, %v4388_v27  ;;  %v10428_v59 = vmul.f32 %v10312_v5, %v3719_v47  ;;  %v4567_v20 = vsel %vm333_vm1, %v4533_v50, 0  ;;  %v5055_v24 = vsub.f32 %v10254_v30, %v10278_v8 }
 0x384   : > { %3579 = vst.msk [vmem:[#allocation3 + $0x1a8] sm:$0xff] %vm333_vm1, %v3534_v41  ;;  %v10432_v7 = vand.u32 4294901760, %v4567_v20  ;;  %v4570_v37 = vsel %vm333_vm1, %v4534_v32, 0  ;;  %v3505_v26 = vadd.f32 %v10440_v62, %v10282_v9  ;;  %v4288_v17 = vadd.f32 %v4256_v11, %v4186_v10  ;;  %v10459_v9 = vld [vmem:[%s11339_s3] ss:$0 sm:$0xff]  ;;  %v11673_v10 = vld [vmem:[#allocation8_spill] sm:$0xff] }
 0x385   : > { %4521 = vst.msk [vmem:[#allocation5 + $0xa0] sm:$0xff] %vm333_vm1, %v4489_v12  ;;  %v10445_v36 = vand.u32 4294901760, %v4570_v37  ;;  %v3504_v44 = vadd.f32 %v10440_v62, %v10287_v42  ;;  %v4472_v4 = vadd.f32 %v11668_v49, %v11667_v53  ;;  %v10454_v16 = vand.u32 4294901760, %v5055_v24  ;;  %v11674_v41 = vld [vmem:[#allocation10_spill] sm:$0xff]  ;;  %v11675_v12 = vld [vmem:[#allocation25_spill] sm:$0xff] }
 0x386   : > { %v10452_v18 = vsub.f32 %v4567_v20, %v10432_v7  ;;  %v3537_v0 = vmax.f32 %v3505_v26, 0.0  ;;  %v3468_v35 = vmul.f32 %v10459_v9, %v11670_v3  ;;  %v10467_v50 = vand.u32 4294901760, %v10292_v63 }
 0x387   : > { %v10464_v42 = vsub.f32 %v4570_v37, %v10445_v36  ;;  %v3536_v19 = vmax.f32 %v3504_v44, 0.0  ;;  %4504 = vst.msk [vmem:[#allocation5 + $0x18] sm:$0xff] %vm333_vm1, %v4472_v4  ;;  %v3467_v27 = vmul.f32 %v10459_v9, %v11673_v10  ;;  %v4087_v40 = vadd.f32 %v4055_v23, %v3986_v6  ;;  %7403 = vmatprep.subr.mxu1 %v10454_v16  ;;  %v4537_v4 = vld [vmem:[#allocation5 + $0x20] sm:$0xff] }
 0x388   : > { %11669 = vst [vmem:[#allocation17_spill] sm:$0xff] %v10452_v18  ;;  %11672 = vst [vmem:[#allocation20_spill] sm:$0xff] %v10467_v50  ;;  %v11458_v32 = vand.u32 4294901760, %v10452_v18  ;;  %v3507_v11 = vadd.f32 %v10440_v62, %v3468_v35  ;;  %v4474_v20 = vadd.f32 %v11675_v12, %v11674_v41  ;;  %v10479_v24 = vmul.f32 %v10351_v22, %v3820_v57 }
 0x389   : > { %11671 = vst [vmem:[#allocation18_spill] sm:$0xff] %v10464_v42  ;;  %3583 = vst.msk [vmem:[#allocation3 + $0x1d0] sm:$0xff] %vm333_vm1, %v3537_v0  ;;  %v4057_v37 = vmul.f32 %v10357_v52, %v3719_v47  ;;  %v11463_v26 = vand.u32 4294901760, %v10464_v42  ;;  %v3506_v23 = vadd.f32 %v10440_v62, %v3467_v27  ;;  %v4187_v6 = vadd.f32 %v4155_v29, %v4086_v54 }
 0x38a   : > { %3582 = vst.msk [vmem:[#allocation3 + $0x1c8] sm:$0xff] %vm333_vm1, %v3536_v19  ;;  %v10486_v44 = vmul.f32 %v10388_v31, %v3820_v57  ;;  %v10489_v53 = vmul.f32 %v10403_v51, %v3719_v47  ;;  %v3539_v49 = vmax.f32 %v3507_v11, 0.0  ;;  %4506 = vst.msk [vmem:[#allocation5 + $0x28] sm:$0xff] %vm333_vm1, %v4474_v20  ;;  %v10493_v0 = vadd.f32 %v10395_v38, %v4288_v17 }
 0x38b   : > { %v3617_v3 = vld [vmem:[#allocation3 + $0x1a7] sm:$0xff]  ;;  %v3618_v35 = vld [vmem:[#allocation3 + $0x1af] sm:$0xff]  ;;  %v3886_v19 = vadd.f32 %v10382_v39, %v3785_v25  ;;  %v10498_v29 = vsub.f32 %v10292_v63, %v10467_v50  ;;  %v3538_v54 = vmax.f32 %v3506_v23, 0.0  ;;  %v4734_v38 = vsub.f32 %v10452_v18, %v11458_v32 }
 0x38c   : > { %v3718_v10 = vld [vmem:[#allocation3 + $0x1a8] sm:$0xff]  ;;  %v3653_v47 = vmul.f32 %v10318_v61, %v3617_v3  ;;  %v3955_v11 = vmul.f32 %v10342_v13, %v3617_v3  ;;  %3586 = vst.msk [vmem:[#allocation3 + $0x1f0] sm:$0xff] %vm333_vm1, %v3539_v49  ;;  %v10508_v17 = vmul.f32 %v10409_v48, %v3820_v57  ;;  %v3956_v39 = vmul.f32 %v10342_v13, %v3618_v35 }
 0x38d   : > { %11676 = vst [vmem:[#allocation22_spill] sm:$0xff] %v10498_v29  ;;  %v3754_v27 = vmul.f32 %v10312_v5, %v3718_v10  ;;  %v4744_v63 = vsub.f32 %v10464_v42, %v11463_v26  ;;  %3585 = vst.msk [vmem:[#allocation3 + $0x1e8] sm:$0xff] %vm333_vm1, %v3538_v54  ;;  %v4579_v25 = vsel %vm333_vm1, %v4537_v4, 0  ;;  %v3654_v41 = vmul.f32 %v10318_v61, %v3618_v35  ;;  %v3819_v12 = vld [vmem:[#allocation3 + $0x1a9] sm:$0xff] }
 0x38e   : > { %v3987_v20 = vadd.f32 %v3955_v11, %v10418_v1  ;;  %v4188_v23 = vadd.f32 %v10391_v34, %v4087_v40  ;;  %v4257_v57 = vmul.f32 %v10423_v2, %v3617_v3  ;;  %v3988_v32 = vadd.f32 %v3956_v39, %v3886_v19  ;;  %v11678_v40 = vld [vmem:[#allocation9_spill] sm:$0xff] }
 0x38f   : > { %v3786_v49 = vadd.f32 %v3754_v27, %v3653_v47  ;;  %v4056_v8 = vmul.f32 %v10357_v52, %v3718_v10  ;;  %v4358_v54 = vmul.f32 %v10403_v51, %v3718_v10  ;;  %v4735_v42 = vand.u32 4294901760, %v4734_v38 }
 0x390   : > { %v4289_v26 = vadd.f32 %v4257_v57, %v4187_v6  ;;  %v10523_v4 = vand.u32 4294901760, %v4579_v25  ;;  %v3855_v21 = vmul.f32 %v10351_v22, %v3819_v12  ;;  %v4745_v1 = vand.u32 4294901760, %v4744_v63  ;;  %v3822_v63 = vld [vmem:[#allocation3 + $0x1d1] sm:$0xff]  ;;  %v11679_v57 = vld [vmem:[#allocation6_spill] sm:$0xff] }
 0x391   : > { %v4088_v50 = vadd.f32 %v4056_v8, %v3987_v20  ;;  %v3619_v11 = vld [vmem:[#allocation3 + $0x1c7] sm:$0xff]  ;;  %v10528_v3 = vmul.f32 %v10459_v9, %v11678_v40  ;;  %v3787_v19 = vadd.f32 %v10428_v59, %v3654_v41  ;;  %v4258_v47 = vmul.f32 %v10423_v2, %v3618_v35  ;;  %7355 = vmatprep.mubr.f32.mxu1 %v4735_v42  ;;  %v3721_v8 = vld [vmem:[#allocation3 + $0x1d0] sm:$0xff] }
 0x392   : > { %11677 = vst [vmem:[#allocation24_spill] sm:$0xff] %v10523_v4  ;;  %v3720_v34 = vld [vmem:[#allocation3 + $0x1c8] sm:$0xff]  ;;  %v4390_v6 = vadd.f32 %v4358_v54, %v4289_v26  ;;  %v4459_v10 = vmul.f32 %v10409_v48, %v3819_v12  ;;  %v3887_v27 = vadd.f32 %v3855_v21, %v3786_v49  ;;  %v4089_v38 = vadd.f32 %v4057_v37, %v3988_v32 }
 0x393   : > { %v4157_v39 = vmul.f32 %v10388_v31, %v3819_v12  ;;  %7356 = vmatmul.mubr.f32.vlgmr.msra.gmra.mrb[0].mxu1 %v4745_v1  ;;  %v3620_v20 = vld [vmem:[#allocation3 + $0x1cf] sm:$0xff]  ;;  %v10536_v40 = vmul.f32 %v10459_v9, %v11679_v57  ;;  %v4290_v18 = vadd.f32 %v4258_v47, %v4188_v23  ;;  %v3655_v26 = vmul.f32 %v10318_v61, %v3619_v11  ;;  %v4536_v47 = vld [vmem:[#allocation5 + $0x18] sm:$0xff] }
 0x394   : > { %v4491_v59 = vadd.f32 %v4459_v10, %v4390_v6  ;;  %7404 = vmatpush3.msra.mxu1 %v10454_v16  ;;  %v3756_v42 = vmul.f32 %v10312_v5, %v3720_v34  ;;  %v3957_v32 = vmul.f32 %v10342_v13, %v3619_v11  ;;  %v11680_v37 = vand.u32 4294901760, %v10498_v29  ;;  %v3821_v49 = vld [vmem:[#allocation3 + $0x1c9] sm:$0xff] }
 0x395   : > { %v4189_v21 = vadd.f32 %v4157_v39, %v4088_v50  ;;  %v10546_v41 = vsub.f32 %v4579_v25, %v10523_v4  ;;  %7453 = vmatprep.subr.mxu1 %v10254_v30  ;;  %v3757_v16 = vmul.f32 %v10312_v5, %v3721_v8  ;;  %v3858_v9 = vmul.f32 %v10351_v22, %v3822_v63 }
 0x396   : > { %v4754_v35 = vsub.f32 %v10498_v29, %v11680_v37  ;;  %4523 = vst.msk [vmem:[#allocation5 + $0xb0] sm:$0xff] %vm333_vm1, %v4491_v59  ;;  %v3888_v12 = vadd.f32 %v10479_v24, %v3787_v19  ;;  %v3958_v50 = vmul.f32 %v10342_v13, %v3620_v20  ;;  %v4059_v23 = vmul.f32 %v10357_v52, %v3721_v8  ;;  %v3824_v29 = vld [vmem:[#allocation3 + $0x1f1] sm:$0xff] }
 0x397   : > { %v3989_v54 = vadd.f32 %v3957_v32, %v3887_v27  ;;  %v4190_v1 = vadd.f32 %v10486_v44, %v4089_v38  ;;  %v4259_v25 = vmul.f32 %v10423_v2, %v3619_v11  ;;  %v10558_v6 = vadd.f32 %v10489_v53, %v4290_v18 }
 0x398   : > { %v3656_v10 = vmul.f32 %v10318_v61, %v3620_v20  ;;  %v3788_v39 = vadd.f32 %v3756_v42, %v3655_v26  ;;  %v4058_v57 = vmul.f32 %v10357_v52, %v3720_v34  ;;  %v4260_v24 = vmul.f32 %v10423_v2, %v3620_v20  ;;  %v3723_v42 = vld [vmem:[#allocation3 + $0x1f0] sm:$0xff] }
 0x399   : > { %v4291_v19 = vadd.f32 %v4259_v25, %v4189_v21  ;;  %v4360_v59 = vmul.f32 %v10403_v51, %v3720_v34  ;;  %v4755_v37 = vand.u32 4294901760, %v4754_v35  ;;  %v3857_v27 = vmul.f32 %v10351_v22, %v3821_v49 }
 0x39a   : > { %v3990_v44 = vadd.f32 %v3958_v50, %v3888_v12  ;;  %v4090_v38 = vadd.f32 %v4058_v57, %v3989_v54  ;;  %v4576_v11 = vsel %vm333_vm1, %v4536_v47, 0  ;;  %v4292_v32 = vadd.f32 %v4260_v24, %v4190_v1  ;;  %v3621_v12 = vld [vmem:[#allocation3 + $0x1e7] sm:$0xff] }
 0x39b   : > { %v4392_v18 = vadd.f32 %v4360_v59, %v4291_v19  ;;  %v4461_v53 = vmul.f32 %v10409_v48, %v3821_v49  ;;  %7358 = vmatprep.mubr.f32.mxu1 %v4755_v37  ;;  %v10567_v26 = vand.u32 4294901760, %v4576_v11  ;;  %v4160_v20 = vmul.f32 %v10388_v31, %v3822_v63 }
 0x39c   : > { %v4361_v34 = vmul.f32 %v10403_v51, %v3721_v8  ;;  %v10572_v21 = vmul.f32 %v10409_v48, %v3822_v63  ;;  %v4159_v35 = vmul.f32 %v10388_v31, %v3821_v49  ;;  %v3789_v50 = vadd.f32 %v3757_v16, %v3656_v10  ;;  %v3622_v8 = vld [vmem:[#allocation3 + $0x1ef] sm:$0xff] }
 0x39d   : > { %11681 = vst [vmem:[#allocation26_spill] sm:$0xff] %v10567_v26  ;;  %v3889_v54 = vadd.f32 %v3857_v27, %v3788_v39  ;;  %v4493_v1 = vadd.f32 %v4461_v53, %v4392_v18  ;;  %v10576_v25 = vsub.f32 %v4576_v11, %v10567_v26  ;;  %v4091_v47 = vadd.f32 %v4059_v23, %v3990_v44  ;;  %v3722_v63 = vld [vmem:[#allocation3 + $0x1e8] sm:$0xff] }
 0x39e   : > { %v4191_v57 = vadd.f32 %v4159_v35, %v4090_v38  ;;  %v10579_v24 = vmul.f32 %v10312_v5, %v3723_v42  ;;  %v10582_v19 = vmul.f32 %v10351_v22, %v3824_v29  ;;  %v10584_v59 = vadd.f32 %v4361_v34, %v4292_v32  ;;  %v10591_v10 = vld [vmem:[#allocation3 + $0x1e9] sm:$0xff] }
 0x39f   : > { %11682 = vst [vmem:[#allocation28_spill] sm:$0xff] %v10576_v25  ;;  %4525 = vst.msk [vmem:[#allocation5 + $0xc0] sm:$0xff] %vm333_vm1, %v4493_v1  ;;  %v11476_v16 = vand.u32 4294901760, %v10576_v25  ;;  %v10589_v49 = vmul.f32 %v10357_v52, %v3723_v42  ;;  %v3959_v23 = vmul.f32 %v10342_v13, %v3621_v12  ;;  %v10595_v39 = vmul.f32 %v10388_v31, %v3824_v29  ;;  %v4538_v53 = vld [vmem:[#allocation5 + $0x28] sm:$0xff] }
 0x3a0   : > { %v10598_v37 = vmul.f32 %v10403_v51, %v3723_v42  ;;  %v10601_v27 = vmul.f32 %v10409_v48, %v3824_v29  ;;  %v3657_v44 = vmul.f32 %v10318_v61, %v3621_v12  ;;  %v3658_v11 = vmul.f32 %v10318_v61, %v3622_v8 }
 0x3a1   : > { %v4764_v38 = vsub.f32 %v10576_v25, %v11476_v16  ;;  %v3758_v32 = vmul.f32 %v10312_v5, %v3722_v63  ;;  %v4261_v18 = vmul.f32 %v10423_v2, %v3621_v12  ;;  %v10612_v42 = vmul.f32 %v10351_v22, %v10591_v10 }
 0x3a2   : > { %v3890_v34 = vadd.f32 %v3858_v9, %v3789_v50  ;;  %v3960_v29 = vmul.f32 %v10342_v13, %v3622_v8  ;;  %v4060_v35 = vmul.f32 %v10357_v52, %v3722_v63  ;;  %v3991_v4 = vadd.f32 %v3959_v23, %v3889_v54 }
 0x3a3   : > { %v4765_v1 = vand.u32 4294901760, %v4764_v38  ;;  %v4293_v26 = vadd.f32 %v4261_v18, %v4191_v57  ;;  %v4362_v16 = vmul.f32 %v10403_v51, %v3722_v63  ;;  %v4192_v61 = vadd.f32 %v4160_v20, %v4091_v47  ;;  %v4539_v57 = vld [vmem:[#allocation5 + $0x30] sm:$0xff] }
 0x3a4   : > { %v11482_v5 = vand.u32 4294901760, %v10546_v41  ;;  %v4582_v12 = vsel %vm333_vm1, %v4538_v53, 0  ;;  %v3509_v25 = vadd.f32 %v10440_v62, %v10528_v3  ;;  %v4463_v9 = vmul.f32 %v10409_v48, %v10591_v10  ;;  %v4541_v3 = vld [vmem:[#allocation5 + $0x40] sm:$0xff]  ;;  %v4543_v53 = vld [vmem:[#allocation5 + $0x50] sm:$0xff] }
 0x3a5   : > { %7359 = vmatmul.mubr.f32.gmra.mrb[2].mxu1 %v4765_v1  ;;  %v4394_v22 = vadd.f32 %v4362_v16, %v4293_v26  ;;  %v10623_v50 = vand.u32 4294901760, %v4582_v12  ;;  %v3508_v54 = vadd.f32 %v10440_v62, %v10536_v40  ;;  %v3790_v63 = vadd.f32 %v3758_v32, %v3657_v44  ;;  %v11683_v32 = vld [vmem:[#allocation12_spill] sm:$0xff] }
 0x3a6   : > { %v4262_v20 = vmul.f32 %v10423_v2, %v3622_v8  ;;  %v4774_v47 = vsub.f32 %v10546_v41, %v11482_v5  ;;  %v3541_v23 = vmax.f32 %v3509_v25, 0.0  ;;  %v3992_v38 = vadd.f32 %v3960_v29, %v3890_v34  ;;  %v4545_v8 = vld [vmem:[#allocation5 + $0x60] sm:$0xff]  ;;  %v11684_v34 = vld [vmem:[#allocation11_spill] sm:$0xff] }
 0x3a7   : > { %v4495_v26 = vadd.f32 %v4463_v9, %v4394_v22  ;;  %v10632_v16 = vsub.f32 %v4582_v12, %v10623_v50  ;;  %v3540_v18 = vmax.f32 %v3508_v54, 0.0  ;;  %v4092_v1 = vadd.f32 %v4060_v35, %v3991_v4  ;;  %v4547_v35 = vld [vmem:[#allocation5 + $0x70] sm:$0xff]  ;;  %v11685_v12 = vld [vmem:[#allocation13_spill] sm:$0xff]  ;;  %v11686_v54 = vld [vmem:[#allocation14_spill] sm:$0xff] }
 0x3a8   : > { %v4294_v30 = vadd.f32 %v4262_v20, %v4192_v61  ;;  %v4775_v62 = vand.u32 4294901760, %v4774_v47  ;;  %3589 = vst.msk [vmem:[#allocation3 + $0x210] sm:$0xff] %vm333_vm1, %v3541_v23  ;;  %v4585_v40 = vsel %vm333_vm1, %v4539_v57, 0  ;;  %v4476_v29 = vadd.f32 %v11684_v34, %v11683_v32  ;;  %v4230_v32 = vld [vmem:[#allocation3 + $0x22f] sm:$0xff] }
 0x3a9   : > { %4527 = vst.msk [vmem:[#allocation5 + $0xd0] sm:$0xff] %vm333_vm1, %v4495_v26  ;;  %v11481_v25 = vand.u32 4294901760, %v10632_v16  ;;  %3588 = vst.msk [vmem:[#allocation3 + $0x208] sm:$0xff] %vm333_vm1, %v3540_v18  ;;  %v10639_v44 = vand.u32 4294901760, %v4585_v40  ;;  %v4591_v4 = vsel %vm333_vm1, %v4541_v3, 0  ;;  %v4478_v22 = vadd.f32 %v11685_v12, %v10188_v60 }
 0x3aa   : > { %7361 = vmatprep.mubr.f32.mxu1 %v4775_v62  ;;  %v10644_v61 = vand.u32 4294901760, %v4591_v4  ;;  %v4597_v9 = vsel %vm333_vm1, %v4543_v53, 0  ;;  %v4480_v57 = vadd.f32 %v11686_v54, %v10258_v56  ;;  %4508 = vst.msk [vmem:[#allocation5 + $0x38] sm:$0xff] %vm333_vm1, %v4476_v29  ;;  %v4603_v3 = vsel %vm333_vm1, %v4545_v8, 0 }
 0x3ab   : > { %v4784_v20 = vsub.f32 %v10632_v16, %v11481_v25  ;;  %v10655_v47 = vsub.f32 %v4585_v40, %v10639_v44  ;;  %v10658_v23 = vand.u32 4294901760, %v4597_v9  ;;  %v3791_v60 = vadd.f32 %v10579_v24, %v3658_v11  ;;  %4510 = vst.msk [vmem:[#allocation5 + $0x48] sm:$0xff] %vm333_vm1, %v4478_v22  ;;  %v4229_v40 = vld [vmem:[#allocation3 + $0x227] sm:$0xff] }
 0x3ac   : > { %v4093_v26 = vadd.f32 %v10589_v49, %v3992_v38  ;;  %4512 = vst.msk [vmem:[#allocation5 + $0x58] sm:$0xff] %vm333_vm1, %v4480_v57  ;;  %v4482_v56 = vadd.f32 %v10249_v45, %v10262_v14  ;;  %v4609_v18 = vsel %vm333_vm1, %v4547_v35, 0  ;;  %v4161_v53 = vmul.f32 %v10388_v31, %v10591_v10  ;;  %v4330_v49 = vld [vmem:[#allocation3 + $0x228] sm:$0xff]  ;;  %v4549_v10 = vld [vmem:[#allocation5 + $0x80] sm:$0xff] }
 0x3ad   : > { %11687 = vst [vmem:[#allocation29_spill] sm:$0xff] %v10655_v47  ;;  %v4785_v62 = vand.u32 4294901760, %v4784_v20  ;;  %v11480_v8 = vand.u32 4294901760, %v10655_v47  ;;  %v10672_v24 = vsub.f32 %v4591_v4, %v10644_v61  ;;  %v10675_v11 = vsub.f32 %v4597_v9, %v10658_v23 }
 0x3ae   : > { %v10677_v38 = vand.u32 4294901760, %v4603_v3  ;;  %4514 = vst.msk [vmem:[#allocation5 + $0x68] sm:$0xff] %vm333_vm1, %v4482_v56  ;;  %v10680_v45 = vand.u32 4294901760, %v4609_v18  ;;  %v4484_v14 = vadd.f32 %v10300_v43, %v10328_v33  ;;  %v3891_v34 = vadd.f32 %v10612_v42, %v3790_v63 }
 0x3af   : > { %11688 = vst [vmem:[#allocation30_spill] sm:$0xff] %v10672_v24  ;;  %v4193_v29 = vadd.f32 %v4161_v53, %v4092_v1  ;;  %v10686_v4 = vadd.f32 %v10598_v37, %v4294_v30  ;;  %7362 = vmatmul.mubr.f32.gmra.mrb[4].mxu1 %v4785_v62  ;;  %v4794_v35 = vsub.f32 %v10655_v47, %v11480_v8  ;;  %v11485_v57 = vand.u32 4294901760, %v10672_v24  ;;  %v4027_v56 = vld [vmem:[#allocation3 + $0x210] sm:$0xff] }
 0x3b0   : > { %v3892_v12 = vadd.f32 %v10582_v19, %v3791_v60  ;;  %v3925_v22 = vld [vmem:[#allocation3 + $0x207] sm:$0xff]  ;;  %v4194_v54 = vadd.f32 %v10595_v39, %v4093_v26  ;;  %v10694_v43 = vmul.f32 %v10423_v2, %v4229_v40  ;;  %v10697_v33 = vmul.f32 %v10423_v2, %v4230_v32  ;;  %4516 = vst.msk [vmem:[#allocation5 + $0x78] sm:$0xff] %vm333_vm1, %v4484_v14  ;;  %v3926_v30 = vld [vmem:[#allocation3 + $0x20f] sm:$0xff] }
 0x3b1   : > { %v4026_v9 = vld [vmem:[#allocation3 + $0x208] sm:$0xff]  ;;  %v3961_v37 = vmul.f32 %v10342_v13, %v3925_v22  ;;  %v4263_v42 = vmul.f32 %v10423_v2, %v3925_v22  ;;  %v10703_v63 = vmul.f32 %v10403_v51, %v4330_v49  ;;  %v10706_v19 = vsel %vm333_vm1, %v4549_v10, 0  ;;  %v4540_v1 = vld [vmem:[#allocation5 + $0x38] sm:$0xff] }
 0x3b2   : > { %v4127_v39 = vld [vmem:[#allocation3 + $0x209] sm:$0xff]  ;;  %v10711_v60 = vsub.f32 %v4603_v3, %v10677_v38  ;;  %v10714_v26 = vsub.f32 %v4609_v18, %v10680_v45  ;;  %v10716_v53 = vld [vmem:[#allocation3 + $0x211] sm:$0xff]  ;;  %v4364_v32 = vmul.f32 %v10403_v51, %v4026_v9  ;;  %v4795_v49 = vand.u32 4294901760, %v4794_v35 }
 0x3b3   : > { %v3993_v62 = vadd.f32 %v3961_v37, %v3891_v34  ;;  %v4295_v40 = vadd.f32 %v4263_v42, %v4193_v29  ;;  %v4542_v14 = vld [vmem:[#allocation5 + $0x48] sm:$0xff]  ;;  %v3962_v10 = vmul.f32 %v10342_v13, %v3926_v30  ;;  %v4588_v22 = vsel %vm333_vm1, %v4540_v1, 0  ;;  %v4544_v29 = vld [vmem:[#allocation5 + $0x58] sm:$0xff] }
 0x3b4   : > { %v4594_v8 = vsel %vm333_vm1, %v4542_v14, 0  ;;  %v10723_v3 = vand.u32 4294901760, %v10706_v19  ;;  %v4062_v18 = vmul.f32 %v10357_v52, %v4026_v9  ;;  %v4465_v5 = vmul.f32 %v10409_v48, %v4127_v39  ;;  %7364 = vmatprep.mubr.f32.mxu1 %v4795_v49 }
 0x3b5   : > { %v4396_v25 = vadd.f32 %v4364_v32, %v4295_v40  ;;  %v10727_v34 = vand.u32 4294901760, %v4588_v22  ;;  %v4063_v35 = vmul.f32 %v10357_v52, %v4027_v56  ;;  %v10732_v13 = vmul.f32 %v10388_v31, %v10716_v53  ;;  %v4546_v49 = vld [vmem:[#allocation5 + $0x68] sm:$0xff] }
 0x3b6   : > { %v4814_v37 = vsub.f32 %v10672_v24, %v11485_v57  ;;  %v10737_v42 = vand.u32 4294901760, %v4594_v8  ;;  %v4094_v9 = vadd.f32 %v4062_v18, %v3993_v62  ;;  %v4264_v1 = vmul.f32 %v10423_v2, %v3926_v30 }
 0x3b7   : > { %v4497_v40 = vadd.f32 %v4465_v5, %v4396_v25  ;;  %v10741_v32 = vsub.f32 %v4588_v22, %v10727_v34  ;;  %v4365_v52 = vmul.f32 %v10403_v51, %v4027_v56  ;;  %v4163_v14 = vmul.f32 %v10388_v31, %v4127_v39  ;;  %v4548_v25 = vld [vmem:[#allocation5 + $0x78] sm:$0xff] }
 0x3b8   : > { %v10746_v20 = vsub.f32 %v4594_v8, %v10737_v42  ;;  %v4600_v47 = vsel %vm333_vm1, %v4544_v29, 0  ;;  %v3994_v57 = vadd.f32 %v3962_v10, %v3892_v12  ;;  %v4296_v24 = vadd.f32 %v4264_v1, %v4194_v54 }
 0x3b9   : > { %4529 = vst.msk [vmem:[#allocation5 + $0xe0] sm:$0xff] %vm333_vm1, %v4497_v40  ;;  %v11488_v2 = vand.u32 4294901760, %v10741_v32  ;;  %v10751_v5 = vand.u32 4294901760, %v4600_v47  ;;  %v4815_v30 = vand.u32 4294901760, %v4814_v37  ;;  %v11689_v56 = vand.u32 4294901760, %v10675_v11 }
 0x3ba   : > { %v11489_v62 = vand.u32 4294901760, %v10746_v20  ;;  %v4606_v8 = vsel %vm333_vm1, %v4546_v49, 0  ;;  %v4195_v39 = vadd.f32 %v4163_v14, %v4094_v9  ;;  %v11491_v18 = vand.u32 4294901760, %v10711_v60  ;;  %v4551_v9 = vld [vmem:[#allocation5 + $0x90] sm:$0xff]  ;;  %v4553_v14 = vld [vmem:[#allocation5 + $0xa0] sm:$0xff] }
 0x3bb   : > { %v4834_v31 = vsub.f32 %v10675_v11, %v11689_v56  ;;  %v4804_v12 = vsub.f32 %v10741_v32, %v11488_v2  ;;  %v10762_v54 = vsub.f32 %v4600_v47, %v10751_v5  ;;  %v10764_v10 = vand.u32 4294901760, %v4606_v8 }
 0x3bc   : > { %v4824_v22 = vsub.f32 %v10746_v20, %v11489_v62  ;;  %v4612_v37 = vsel %vm333_vm1, %v4548_v25, 0  ;;  %v10780_v62 = vsub.f32 %v10706_v19, %v10723_v3  ;;  %v4486_v29 = vadd.f32 %v10334_v58, %v10373_v15 }
 0x3bd   : > { %v4805_v1 = vand.u32 4294901760, %v4804_v12  ;;  %v11490_v40 = vand.u32 4294901760, %v10762_v54  ;;  %v10774_v49 = vsub.f32 %v4606_v8, %v10764_v10  ;;  %v10776_v47 = vand.u32 4294901760, %v4612_v37 }
 0x3be   : > { %v4825_v56 = vand.u32 4294901760, %v4824_v22  ;;  %v4835_v2 = vand.u32 4294901760, %v4834_v31  ;;  %v4621_v22 = vsel %vm333_vm1, %v4551_v9, 0  ;;  %v4555_v31 = vld [vmem:[#allocation5 + $0xb0] sm:$0xff]  ;;  %v4854_v19 = vsub.f32 %v10711_v60, %v11491_v18  ;;  %4518 = vst.msk [vmem:[#allocation5 + $0x88] sm:$0xff] %vm333_vm1, %v4486_v29 }
 0x3bf   : > { %7365 = vmatmul.mubr.f32.gmra.mrb[6].mxu1 %v4805_v1  ;;  %v4844_v25 = vsub.f32 %v10762_v54, %v11490_v40  ;;  %v10789_v12 = vsub.f32 %v4612_v37, %v10776_v47  ;;  %v10796_v58 = vand.u32 4294901760, %v4621_v22  ;;  %v4488_v15 = vadd.f32 %v10367_v28, %v10398_v46 }
 0x3c0   : > { %7367 = vmatprep.mubr.f32.mxu1 %v4815_v30  ;;  %v4627_v1 = vsel %vm333_vm1, %v4553_v14, 0  ;;  %v4095_v40 = vadd.f32 %v4063_v35, %v3994_v57  ;;  %v4297_v37 = vadd.f32 %v10694_v43, %v4195_v39  ;;  %v11690_v9 = vand.u32 4294901760, %v10714_v26  ;;  %v4557_v57 = vld [vmem:[#allocation5 + $0xc0] sm:$0xff] }
 0x3c1   : > { %v10805_v8 = vand.u32 4294901760, %v4627_v1  ;;  %v11495_v18 = vand.u32 4294901760, %v10780_v62  ;;  %v10809_v29 = vsub.f32 %v4621_v22, %v10796_v58  ;;  %4520 = vst.msk [vmem:[#allocation5 + $0x98] sm:$0xff] %vm333_vm1, %v4488_v15  ;;  %v4490_v28 = vadd.f32 %v10412_v55, %v10493_v0 }
 0x3c2   : > { %v4874_v30 = vsub.f32 %v10714_v26, %v11690_v9  ;;  %v4633_v46 = vsel %vm333_vm1, %v4555_v31, 0  ;;  %v4845_v43 = vand.u32 4294901760, %v4844_v25  ;;  %v11692_v35 = vand.u32 4294901760, %v10774_v49 }
 0x3c3   : > { %11691 = vst [vmem:[#allocation31_spill] sm:$0xff] %v10809_v29  ;;  %7368 = vmatmul.mubr.f32.gmra.mrb[8].mxu1 %v4825_v56  ;;  %v11496_v14 = vand.u32 4294901760, %v10789_v12  ;;  %v10820_v9 = vsub.f32 %v4627_v1, %v10805_v8  ;;  %v4397_v22 = vadd.f32 %v4365_v52, %v4296_v24  ;;  %v4855_v15 = vand.u32 4294901760, %v4854_v19  ;;  %4522 = vst.msk [vmem:[#allocation5 + $0xa8] sm:$0xff] %vm333_vm1, %v4490_v28  ;;  %v4559_v19 = vld [vmem:[#allocation5 + $0xd0] sm:$0xff] }
 0x3c4   : > { %v4864_v39 = vsub.f32 %v10774_v49, %v11692_v35  ;;  %7370 = vmatprep.mubr.f32.mxu1 %v4835_v2  ;;  %v10823_v55 = vand.u32 4294901760, %v4633_v46  ;;  %v4492_v0 = vadd.f32 %v10508_v17, %v10558_v6  ;;  %v4466_v56 = vmul.f32 %v10409_v48, %v10716_v53 }
 0x3c5   : > { %11693 = vst [vmem:[#allocation32_spill] sm:$0xff] %v10820_v9  ;;  %v4196_v25 = vadd.f32 %v10732_v13, %v4095_v40  ;;  %v11493_v31 = vand.u32 4294901760, %v10809_v29  ;;  %v4639_v1 = vsel %vm333_vm1, %v4557_v57, 0  ;;  %v4398_v24 = vadd.f32 %v10703_v63, %v4297_v37  ;;  %v4550_v40 = vld [vmem:[#allocation5 + $0x88] sm:$0xff] }
 0x3c6   : > { %v11492_v52 = vand.u32 4294901760, %v10820_v9  ;;  %4524 = vst.msk [vmem:[#allocation5 + $0xb8] sm:$0xff] %vm333_vm1, %v4492_v0  ;;  %v4494_v2 = vadd.f32 %v10572_v21, %v10584_v59  ;;  %v4496_v17 = vadd.f32 %v10601_v27, %v10686_v4  ;;  %v4865_v6 = vand.u32 4294901760, %v4864_v39  ;;  %v4431_v37 = vld [vmem:[#allocation3 + $0x229] sm:$0xff] }
 0x3c7   : > { %7371 = vmatmul.mubr.f32.gmra.mrb[10].mxu1 %v4845_v43  ;;  %v4875_v53 = vand.u32 4294901760, %v4874_v30  ;;  %v4884_v13 = vsub.f32 %v10789_v12, %v11496_v14  ;;  %v4894_v63 = vsub.f32 %v10780_v62, %v11495_v18  ;;  %v4618_v21 = vsel %vm333_vm1, %v4550_v40, 0 }
 0x3c8   : > { %7373 = vmatprep.mubr.f32.mxu1 %v4855_v15  ;;  %v10847_v59 = vsub.f32 %v4633_v46, %v10823_v55  ;;  %v10849_v27 = vand.u32 4294901760, %v4639_v1  ;;  %4526 = vst.msk [vmem:[#allocation5 + $0xc8] sm:$0xff] %vm333_vm1, %v4494_v2  ;;  %4528 = vst.msk [vmem:[#allocation5 + $0xd8] sm:$0xff] %vm333_vm1, %v4496_v17  ;;  %v4498_v4 = vadd.f32 %v4466_v56, %v4397_v22  ;;  %v10854_v28 = vand.u32 4294901760, %v4618_v21  ;;  %v4552_v43 = vld [vmem:[#allocation5 + $0x98] sm:$0xff]  ;;  %v4561_v2 = vld [vmem:[#allocation5 + $0xe0] sm:$0xff] }
 0x3c9   : > { %v4298_v30 = vadd.f32 %v10697_v33, %v4196_v25  ;;  %v4914_v57 = vsub.f32 %v10809_v29, %v11493_v31  ;;  %v4624_v35 = vsel %vm333_vm1, %v4552_v43, 0  ;;  %v10863_v46 = vsub.f32 %v10820_v9, %v11492_v52  ;;  %v4331_v43 = vld [vmem:[#allocation3 + $0x230] sm:$0xff] }
 0x3ca   : > { %11694 = vst [vmem:[#allocation33_spill] sm:$0xff] %v10847_v59  ;;  %11695 = vst [vmem:[#allocation34_spill] sm:$0xff] %v10849_v27  ;;  %v4645_v39 = vsel %vm333_vm1, %v4559_v19, 0  ;;  %v4467_v33 = vmul.f32 %v10409_v48, %v4431_v37  ;;  %v4885_v22 = vand.u32 4294901760, %v4884_v13  ;;  %v4895_v15 = vand.u32 4294901760, %v4894_v63  ;;  %v4554_v25 = vld [vmem:[#allocation5 + $0xa8] sm:$0xff] }
 0x3cb   : > { %4530 = vst.msk [vmem:[#allocation5 + $0xe8] sm:$0xff] %vm333_vm1, %v4498_v4  ;;  %7374 = vmatmul.mubr.f32.gmra.mrb[12].mxu1 %v4865_v6  ;;  %v10869_v0 = vsub.f32 %v4618_v21, %v10854_v28  ;;  %v10871_v56 = vand.u32 4294901760, %v4624_v35  ;;  %v4630_v17 = vsel %vm333_vm1, %v4554_v25, 0  ;;  %v11499_v40 = vand.u32 4294901760, %v10847_v59  ;;  %v4432_v9 = vld [vmem:[#allocation3 + $0x231] sm:$0xff] }
 0x3cc   : > { %7376 = vmatprep.mubr.f32.mxu1 %v4875_v53  ;;  %v10876_v19 = vsub.f32 %v4639_v1, %v10849_v27  ;;  %v4499_v4 = vadd.f32 %v4467_v33, %v4398_v24  ;;  %v10882_v63 = vand.u32 4294901760, %v4630_v17  ;;  %v10884_v21 = vand.u32 4294901760, %v4645_v39 }
 0x3cd   : > { %11696 = vst [vmem:[#allocation35_spill] sm:$0xff] %v10869_v0  ;;  %v11494_v6 = vand.u32 4294901760, %v10869_v0  ;;  %v10880_v13 = vsub.f32 %v4624_v35, %v10871_v56  ;;  %v4556_v37 = vld [vmem:[#allocation5 + $0xb8] sm:$0xff]  ;;  %v4915_v53 = vand.u32 4294901760, %v4914_v57  ;;  %v4935_v25 = vand.u32 4294901760, %v10863_v46 }
 0x3ce   : > { %11698 = vst [vmem:[#allocation39_spill] sm:$0xff] %v10884_v21  ;;  %v4636_v52 = vsel %vm333_vm1, %v4556_v37, 0  ;;  %v4651_v1 = vsel %vm333_vm1, %v4561_v2, 0  ;;  %4531 = vst.msk [vmem:[#allocation5 + $0xf0] sm:$0xff] %vm333_vm1, %v4499_v4  ;;  %v10895_v33 = vsub.f32 %v4630_v17, %v10882_v63  ;;  %v4954_v2 = vsub.f32 %v10847_v59, %v11499_v40 }
 0x3cf   : > { %11697 = vst [vmem:[#allocation37_spill] sm:$0xff] %v10880_v13  ;;  %7377 = vmatmul.mubr.f32.gmra.mrb[14].mxu1 %v4885_v22  ;;  %v4904_v24 = vsub.f32 %v10869_v0, %v11494_v6  ;;  %v11502_v35 = vand.u32 4294901760, %v10880_v13  ;;  %v10897_v31 = vand.u32 4294901760, %v4636_v52  ;;  %v4558_v57 = vld [vmem:[#allocation5 + $0xc8] sm:$0xff]  ;;  %v4560_v46 = vld [vmem:[#allocation5 + $0xd8] sm:$0xff]  ;;  %v4367_v37 = vmul.f32 %v10403_v51, %v4331_v43 }
 0x3d0   : > { %11699 = vst [vmem:[#allocation36_spill] sm:$0xff] %v10895_v33  ;;  %7379 = vmatprep.mubr.f32.mxu1 %v4895_v15  ;;  %v4642_v22 = vsel %vm333_vm1, %v4558_v57, 0  ;;  %v4648_v4 = vsel %vm333_vm1, %v4560_v46, 0  ;;  %v11509_v18 = vand.u32 4294901760, %v10895_v33  ;;  %v10916_v57 = vsub.f32 %v4645_v39, %v10884_v21 }
 0x3d1   : > { %v4905_v6 = vand.u32 4294901760, %v4904_v24  ;;  %v4924_v17 = vsub.f32 %v10880_v13, %v11502_v35  ;;  %v10910_v14 = vsub.f32 %v4636_v52, %v10897_v31  ;;  %v10913_v59 = vand.u32 4294901760, %v4642_v22 }
 0x3d2   : > { %v4562_v15 = vld [vmem:[#allocation5 + $0xe8] sm:$0xff]  ;;  %v10918_v51 = vand.u32 4294901760, %v4648_v4  ;;  %v4944_v24 = vsub.f32 %v10895_v33, %v11509_v18  ;;  %v10928_v40 = vand.u32 4294901760, %v4651_v1  ;;  %v4399_v39 = vadd.f32 %v4367_v37, %v4298_v30 }
 0x3d3   : > { %11700 = vst [vmem:[#allocation38_spill] sm:$0xff] %v10913_v59  ;;  %7380 = vmatmul.mubr.f32.gmra.mrb[16].mxu1 %v4905_v6  ;;  %v4925_v43 = vand.u32 4294901760, %v4924_v17  ;;  %v4654_v46 = vsel %vm333_vm1, %v4562_v15, 0  ;;  %v10926_v35 = vsub.f32 %v4642_v22, %v10913_v59  ;;  %v4468_v13 = vmul.f32 %v10409_v48, %v4432_v9 }
 0x3d4   : > { %11701 = vst [vmem:[#allocation40_spill] sm:$0xff] %v10918_v51  ;;  %7382 = vmatprep.mubr.f32.mxu1 %v4915_v53  ;;  %11702 = vst [vmem:[#allocation41_spill] sm:$0xff] %v10928_v40  ;;  %v4955_v6 = vand.u32 4294901760, %v4954_v2  ;;  %v10931_v17 = vand.u32 4294901760, %v4654_v46  ;;  %v4945_v52 = vand.u32 4294901760, %v4944_v24  ;;  %v11704_v15 = vand.u32 4294901760, %v10910_v14 }
 0x3d5   : > { %v4563_v29 = vld [vmem:[#allocation5 + $0xf0] sm:$0xff]  ;;  %v4500_v18 = vadd.f32 %v4468_v13, %v4399_v39  ;;  %v11518_v22 = vand.u32 4294901760, %v10926_v35  ;;  %v10939_v33 = vsub.f32 %v4648_v4, %v10918_v51  ;;  %v11705_v48 = vand.u32 4294901760, %v10876_v19 }
 0x3d6   : > { %11703 = vst [vmem:[#allocation42_spill] sm:$0xff] %v10931_v17  ;;  %v4657_v0 = vsel %vm333_vm1, %v4563_v29, 0  ;;  %v4964_v53 = vsub.f32 %v10910_v14, %v11704_v15  ;;  %v11517_v30 = vand.u32 4294901760, %v10916_v57  ;;  %v10946_v29 = vsub.f32 %v4651_v1, %v10928_v40 }
 0x3d7   : > { %7383 = vmatmul.mubr.f32.gmra.mrb[18].mxu1 %v4925_v43  ;;  %v4974_v9 = vsub.f32 %v10876_v19, %v11705_v48  ;;  %v10948_v13 = vand.u32 4294901760, %v4657_v0  ;;  %4532 = vst.msk [vmem:[#allocation5 + $0xf8] sm:$0xff] %vm333_vm1, %v4500_v18  ;;  %v4984_v4 = vsub.f32 %v10926_v35, %v11518_v22  ;;  %v10956_v37 = vsub.f32 %v4654_v46, %v10931_v17  ;;  %v11723_v22 = vld [vmem:[#allocation32_spill] sm:$0xff] }
 0x3d8   : > { %7385 = vmatprep.mubr.f32.mxu1 %v4935_v25  ;;  %v4965_v2 = vand.u32 4294901760, %v4964_v53  ;;  %v11512_v25 = vand.u32 4294901760, %v10939_v33  ;;  %v4994_v1 = vsub.f32 %v10916_v57, %v11517_v30  ;;  %v11513_v24 = vand.u32 4294901760, %v10946_v29  ;;  %v11722_v30 = vld [vmem:[#allocation37_spill] sm:$0xff] }
 0x3d9   : > { %11706 = vst [vmem:[#allocation43_spill] sm:$0xff] %v10948_v13  ;;  %v4975_v43 = vand.u32 4294901760, %v4974_v9  ;;  %v10963_v18 = vsub.f32 %v4657_v0, %v10948_v13  ;;  %v11514_v46 = vand.u32 4294901760, %v10956_v37 }
 0x3da   : > { %v5004_v39 = vsub.f32 %v10939_v33, %v11512_v25  ;;  %v5014_v53 = vsub.f32 %v10946_v29, %v11513_v24 }
 0x3db   : > { %7386 = vmatmul.mubr.f32.gmra.mrb[20].mxu1 %v4945_v52  ;;  %v4985_v52 = vand.u32 4294901760, %v4984_v4  ;;  %v11516_v48 = vand.u32 4294901760, %v10963_v18  ;;  %v5024_v4 = vsub.f32 %v10956_v37, %v11514_v46 }
 0x3dc   : > { %7388 = vmatprep.mubr.f32.mxu1 %v4955_v6  ;;  %v4995_v6 = vand.u32 4294901760, %v4994_v1 }
 0x3dd   : > { %v5034_v1 = vsub.f32 %v10963_v18, %v11516_v48  ;;  %v11721_v48 = vld [vmem:[#allocation31_spill] sm:$0xff] }
 0x3de   : > { %v4564_v15 = vld [vmem:[#allocation5 + $0xf8] sm:$0xff] }
 0x3df   : > { %7389 = vmatmul.mubr.f32.gmra.mrb[22].mxu1 %v4965_v2  ;;  %v4660_v0 = vsel %vm333_vm1, %v4564_v15, 0  ;;  %v5005_v2 = vand.u32 4294901760, %v5004_v39  ;;  %v5025_v15 = vand.u32 4294901760, %v5024_v4  ;;  %v5035_v39 = vand.u32 4294901760, %v5034_v1  ;;  %v11712_v4 = vld [vmem:[#allocation24_spill] sm:$0xff]  ;;  %v11715_v1 = vld [vmem:[#allocation22_spill] sm:$0xff] }
 0x3e0   : > { %7391 = vmatprep.mubr.f32.mxu1 %v4975_v43  ;;  %v10974_v9 = vand.u32 4294901760, %v4660_v0  ;;  %v5015_v43 = vand.u32 4294901760, %v5014_v53  ;;  %v11709_v53 = vld [vmem:[#allocation20_spill] sm:$0xff] }
 0x3e2   : > { %11707 = vst [vmem:[#allocation44_spill] sm:$0xff] %v10974_v9  ;;  %v10980_v25 = vsub.f32 %v4660_v0, %v10974_v9  ;;  %v11710_v0 = vld [vmem:[#allocation19_spill] sm:$0xff] }
 0x3e3   : > { %7392 = vmatmul.mubr.f32.gmra.mrb[24].mxu1 %v4985_v52 }
 0x3e4   : > { %7394 = vmatprep.mubr.f32.mxu1 %v4995_v6  ;;  %v11515_v24 = vand.u32 4294901760, %v10980_v25  ;;  %v11708_v6 = vld [vmem:[#allocation15_spill] sm:$0xff] }
 0x3e6   : > { %v5044_v52 = vsub.f32 %v10980_v25, %v11515_v24  ;;  %v11720_v24 = vld [vmem:[#allocation35_spill] sm:$0xff] }
 0x3e7   : > { %7395 = vmatmul.mubr.f32.gmra.mrb[26].mxu1 %v5005_v2  ;;  %v11711_v2 = vld [vmem:[#allocation26_spill] sm:$0xff] }
 0x3e8   : > { %7397 = vmatprep.mubr.f32.mxu1 %v5015_v43  ;;  %v5045_v46 = vand.u32 4294901760, %v5044_v52  ;;  %v11714_v43 = vld [vmem:[#allocation18_spill] sm:$0xff]  ;;  %v11717_v52 = vld [vmem:[#allocation28_spill] sm:$0xff] }
 0x3eb   : > { %7398 = vmatmul.mubr.f32.gmra.mrb[28].mxu1 %v5025_v15  ;;  %v11716_v15 = vld [vmem:[#allocation16_spill] sm:$0xff] }
 0x3ec   : > { %7400 = vmatprep.mubr.f32.mxu1 %v5035_v39  ;;  %v11718_v39 = vld [vmem:[#allocation29_spill] sm:$0xff] }
 0x3ef   : > { %7401 = vmatmul.mubr.f32.gmra.mrb[30].mxu1 %v5045_v46  ;;  %v11713_v46 = vld [vmem:[#allocation17_spill] sm:$0xff] }
 0x3f0   : > { %7405 = vmatprep.mubr.f32.mxu1 %v10432_v7 }
 0x3f3   : > { %7406 = vmatmul.mubr.f32.vlgmr.msra.gmra.mrb[0].mxu1 %v10445_v36 }
 0x3f4   : > { %7454 = vmatpush3.msra.mxu1 %v11708_v6  ;;  %7408 = vmatprep.mubr.f32.mxu1 %v11709_v53  ;;  %v11719_v6 = vld [vmem:[#allocation30_spill] sm:$0xff] }
 0x3f5   : > { %7503 = vmatprep.subr.mxu1 %v11710_v0 }
 0x3f7   : > { %7409 = vmatmul.mubr.f32.gmra.mrb[2].mxu1 %v11711_v2 }
 0x3f8   : > { %7411 = vmatprep.mubr.f32.mxu1 %v11712_v4 }
 0x3fb   : > { %7412 = vmatmul.mubr.f32.gmra.mrb[4].mxu1 %v10623_v50 }
 0x3fc   : > { %7414 = vmatprep.mubr.f32.mxu1 %v10639_v44 }
 0x3ff   : > { %7415 = vmatmul.mubr.f32.gmra.mrb[6].mxu1 %v10727_v34 }
 0x400   : > { %7417 = vmatprep.mubr.f32.mxu1 %v10644_v61 }
 0x403   : > { %7418 = vmatmul.mubr.f32.gmra.mrb[8].mxu1 %v10737_v42 }
 0x404   : > { %7420 = vmatprep.mubr.f32.mxu1 %v10658_v23 }
 0x407   : > { %7421 = vmatmul.mubr.f32.gmra.mrb[10].mxu1 %v10751_v5 }
 0x408   : > { %7423 = vmatprep.mubr.f32.mxu1 %v10677_v38 }
 0x40b   : > { %7424 = vmatmul.mubr.f32.gmra.mrb[12].mxu1 %v10764_v10 }
 0x40c   : > { %7426 = vmatprep.mubr.f32.mxu1 %v10680_v45 }
 0x40f   : > { %7427 = vmatmul.mubr.f32.gmra.mrb[14].mxu1 %v10776_v47 }
 0x410   : > { %7429 = vmatprep.mubr.f32.mxu1 %v10723_v3 }
 0x413   : > { %7430 = vmatmul.mubr.f32.gmra.mrb[16].mxu1 %v10854_v28 }
 0x414   : > { %7432 = vmatprep.mubr.f32.mxu1 %v10796_v58 }
 0x417   : > { %7433 = vmatmul.mubr.f32.gmra.mrb[18].mxu1 %v10871_v56 }
 0x418   : > { %7435 = vmatprep.mubr.f32.mxu1 %v10805_v8 }
 0x41b   : > { %7436 = vmatmul.mubr.f32.gmra.mrb[20].mxu1 %v10882_v63 }
 0x41c   : > { %7438 = vmatprep.mubr.f32.mxu1 %v10823_v55 }
 0x41f   : > { %7439 = vmatmul.mubr.f32.gmra.mrb[22].mxu1 %v10897_v31 }
 0x420   : > { %7441 = vmatprep.mubr.f32.mxu1 %v10849_v27  ;;  %v11731_v27 = vand.u32 4294901760, %v10632_v16 }
 0x423   : > { %7442 = vmatmul.mubr.f32.gmra.mrb[24].mxu1 %v10913_v59  ;;  %v11730_v59 = vand.u32 4294901760, %v10546_v41 }
 0x424   : > { %7444 = vmatprep.mubr.f32.mxu1 %v10884_v21  ;;  %v11729_v21 = vand.u32 4294901760, %v11717_v52 }
 0x427   : > { %7445 = vmatmul.mubr.f32.gmra.mrb[26].mxu1 %v10918_v51  ;;  %v11728_v51 = vand.u32 4294901760, %v11715_v1 }
 0x428   : > { %7447 = vmatprep.mubr.f32.mxu1 %v10928_v40  ;;  %v11727_v40 = vand.u32 4294901760, %v11714_v43 }
 0x42b   : > { %7448 = vmatmul.mubr.f32.gmra.mrb[28].mxu1 %v10931_v17  ;;  %v11726_v17 = vand.u32 4294901760, %v11713_v46 }
 0x42c   : > { %7450 = vmatprep.mubr.f32.mxu1 %v10948_v13  ;;  %v11725_v13 = vld [vmem:[#allocation33_spill] sm:$0xff] }
 0x42f   : > { %7451 = vmatmul.mubr.f32.gmra.mrb[30].mxu1 %v10974_v9  ;;  %v11724_v9 = vld [vmem:[#allocation36_spill] sm:$0xff] }
 0x430   : > { %7455 = vmatprep.mubr.f32.mxu1 %v11713_v46  ;;  %v11734_v46 = vand.u32 4294901760, %v11719_v6 }
 0x433   : > { %7456 = vmatmul.mubr.f32.vlgmr.msra.gmra.mrb[0].mxu1 %v11714_v43 }
 0x434   : > { %7504 = vmatpush3.msra.mxu1 %v11710_v0  ;;  %7458 = vmatprep.mubr.f32.mxu1 %v11715_v1 }
 0x435   : > { %7553 = vmatprep.subr.mxu1 %v11716_v15 }
 0x437   : > { %7459 = vmatmul.mubr.f32.gmra.mrb[2].mxu1 %v11717_v52 }
 0x438   : > { %7461 = vmatprep.mubr.f32.mxu1 %v10546_v41  ;;  %v11737_v41 = vand.u32 4294901760, %v10762_v54 }
 0x43b   : > { %7462 = vmatmul.mubr.f32.gmra.mrb[4].mxu1 %v10632_v16  ;;  %v11738_v16 = vand.u32 4294901760, %v10711_v60 }
 0x43c   : > { %7464 = vmatprep.mubr.f32.mxu1 %v11718_v39 }
 0x43f   : > { %7465 = vmatmul.mubr.f32.gmra.mrb[6].mxu1 %v10741_v32 }
 0x440   : > { %7467 = vmatprep.mubr.f32.mxu1 %v11719_v6 }
 0x443   : > { %7468 = vmatmul.mubr.f32.gmra.mrb[8].mxu1 %v10746_v20 }
 0x444   : > { %7470 = vmatprep.mubr.f32.mxu1 %v10675_v11 }
 0x447   : > { %7471 = vmatmul.mubr.f32.gmra.mrb[10].mxu1 %v10762_v54  ;;  %v11744_v54 = vand.u32 4294901760, %v11721_v48 }
 0x448   : > { %7473 = vmatprep.mubr.f32.mxu1 %v10711_v60  ;;  %v11745_v60 = vand.u32 4294901760, %v11722_v30 }
 0x44b   : > { %7474 = vmatmul.mubr.f32.gmra.mrb[12].mxu1 %v10774_v49 }
 0x44c   : > { %7476 = vmatprep.mubr.f32.mxu1 %v10714_v26 }
 0x44f   : > { %7477 = vmatmul.mubr.f32.gmra.mrb[14].mxu1 %v10789_v12 }
 0x450   : > { %7479 = vmatprep.mubr.f32.mxu1 %v10780_v62 }
 0x453   : > { %7480 = vmatmul.mubr.f32.gmra.mrb[16].mxu1 %v11720_v24 }
 0x454   : > { %7482 = vmatprep.mubr.f32.mxu1 %v11721_v48  ;;  %v11751_v48 = vand.u32 4294901760, %v10926_v35 }
 0x457   : > { %7483 = vmatmul.mubr.f32.gmra.mrb[18].mxu1 %v11722_v30  ;;  %v11752_v30 = vand.u32 4294901760, %v10916_v57 }
 0x458   : > { %7485 = vmatprep.mubr.f32.mxu1 %v11723_v22 }
 0x45b   : > { %7486 = vmatmul.mubr.f32.gmra.mrb[20].mxu1 %v11724_v9 }
 0x45c   : > { %7488 = vmatprep.mubr.f32.mxu1 %v11725_v13 }
 0x45f   : > { %7489 = vmatmul.mubr.f32.gmra.mrb[22].mxu1 %v10910_v14 }
 0x460   : > { %7491 = vmatprep.mubr.f32.mxu1 %v10876_v19 }
 0x463   : > { %7492 = vmatmul.mubr.f32.gmra.mrb[24].mxu1 %v10926_v35  ;;  %v11758_v35 = vld [vmem:[#allocation34_spill] sm:$0xff] }
 0x464   : > { %7494 = vmatprep.mubr.f32.mxu1 %v10916_v57  ;;  %v11760_v57 = vld [vmem:[#allocation39_spill] sm:$0xff] }
 0x467   : > { %7495 = vmatmul.mubr.f32.gmra.mrb[26].mxu1 %v10939_v33 }
 0x468   : > { %7497 = vmatprep.mubr.f32.mxu1 %v10946_v29 }
 0x46b   : > { %7498 = vmatmul.mubr.f32.gmra.mrb[28].mxu1 %v10956_v37 }
 0x46c   : > { %7500 = vmatprep.mubr.f32.mxu1 %v10963_v18 }
 0x46f   : > { %7501 = vmatmul.mubr.f32.gmra.mrb[30].mxu1 %v10980_v25 }
 0x470   : > { %7505 = vmatprep.mubr.f32.mxu1 %v11726_v17  ;;  %v11732_v17 = vand.u32 4294901760, %v11718_v39 }
 0x473   : > { %7506 = vmatmul.mubr.f32.vlgmr.msra.gmra.mrb[0].mxu1 %v11727_v40  ;;  %v11733_v40 = vand.u32 4294901760, %v10741_v32  ;;  %v11740_v32 = vand.u32 4294901760, %v10714_v26  ;;  %v11747_v26 = vand.u32 4294901760, %v11724_v9  ;;  %v11754_v9 = vand.u32 4294901760, %v10946_v29  ;;  %v11761_v29 = vld [vmem:[#allocation40_spill] sm:$0xff] }
 0x474   : > { %7554 = vmatpush3.msra.mxu1 %v11716_v15  ;;  %7508 = vmatprep.mubr.f32.mxu1 %v11728_v51  ;;  %v11735_v51 = vand.u32 4294901760, %v10746_v20  ;;  %v11742_v20 = vand.u32 4294901760, %v10780_v62  ;;  %v11749_v62 = vand.u32 4294901760, %v10910_v14  ;;  %v11756_v14 = vand.u32 4294901760, %v10963_v18  ;;  %v11764_v18 = vld [vmem:[#allocation43_spill] sm:$0xff] }
 0x475   : > { %7603 = vmatprep.subr.mxu1 %v11710_v0 }
 0x477   : > { %7509 = vmatmul.mubr.f32.gmra.mrb[2].mxu1 %v11729_v21  ;;  %v11736_v21 = vand.u32 4294901760, %v10675_v11  ;;  %v11743_v11 = vand.u32 4294901760, %v11720_v24  ;;  %v11750_v24 = vand.u32 4294901760, %v10876_v19  ;;  %v11757_v19 = vand.u32 4294901760, %v10980_v25  ;;  %v11762_v25 = vld [vmem:[#allocation41_spill] sm:$0xff] }
 0x478   : > { %7511 = vmatprep.mubr.f32.mxu1 %v11730_v59  ;;  %v11739_v59 = vand.u32 4294901760, %v10774_v49  ;;  %v11746_v49 = vand.u32 4294901760, %v11723_v22  ;;  %v11753_v22 = vand.u32 4294901760, %v10939_v33  ;;  %v11759_v33 = vld [vmem:[#allocation38_spill] sm:$0xff] }
 0x47b   : > { %7512 = vmatmul.mubr.f32.gmra.mrb[4].mxu1 %v11731_v27  ;;  %v11741_v27 = vand.u32 4294901760, %v10789_v12  ;;  %v11748_v12 = vand.u32 4294901760, %v11725_v13  ;;  %v11755_v13 = vand.u32 4294901760, %v10956_v37  ;;  %v11763_v37 = vld [vmem:[#allocation42_spill] sm:$0xff] }
 0x47c   : > { %7514 = vmatprep.mubr.f32.mxu1 %v11732_v17 }
 0x47f   : > { %7515 = vmatmul.mubr.f32.gmra.mrb[6].mxu1 %v11733_v40 }
 0x480   : > { %7517 = vmatprep.mubr.f32.mxu1 %v11734_v46 }
 0x483   : > { %7518 = vmatmul.mubr.f32.gmra.mrb[8].mxu1 %v11735_v51 }
 0x484   : > { %7520 = vmatprep.mubr.f32.mxu1 %v11736_v21 }
 0x487   : > { %7521 = vmatmul.mubr.f32.gmra.mrb[10].mxu1 %v11737_v41 }
 0x488   : > { %7523 = vmatprep.mubr.f32.mxu1 %v11738_v16 }
 0x48b   : > { %7524 = vmatmul.mubr.f32.gmra.mrb[12].mxu1 %v11739_v59 }
 0x48c   : > { %7526 = vmatprep.mubr.f32.mxu1 %v11740_v32 }
 0x48f   : > { %7527 = vmatmul.mubr.f32.gmra.mrb[14].mxu1 %v11741_v27 }
 0x490   : > { %7529 = vmatprep.mubr.f32.mxu1 %v11742_v20 }
 0x493   : > { %7530 = vmatmul.mubr.f32.gmra.mrb[16].mxu1 %v11743_v11 }
 0x494   : > { %7532 = vmatprep.mubr.f32.mxu1 %v11744_v54 }
 0x497   : > { %7533 = vmatmul.mubr.f32.gmra.mrb[18].mxu1 %v11745_v60 }
 0x498   : > { %7535 = vmatprep.mubr.f32.mxu1 %v11746_v49 }
 0x49b   : > { %7536 = vmatmul.mubr.f32.gmra.mrb[20].mxu1 %v11747_v26 }
 0x49c   : > { %7538 = vmatprep.mubr.f32.mxu1 %v11748_v12 }
 0x49f   : > { %7539 = vmatmul.mubr.f32.gmra.mrb[22].mxu1 %v11749_v62 }
 0x4a0   : > { %7541 = vmatprep.mubr.f32.mxu1 %v11750_v24 }
 0x4a3   : > { %7542 = vmatmul.mubr.f32.gmra.mrb[24].mxu1 %v11751_v48 }
 0x4a4   : > { %7544 = vmatprep.mubr.f32.mxu1 %v11752_v30 }
 0x4a7   : > { %7545 = vmatmul.mubr.f32.gmra.mrb[26].mxu1 %v11753_v22 }
 0x4a8   : > { %7547 = vmatprep.mubr.f32.mxu1 %v11754_v9 }
 0x4ab   : > { %7548 = vmatmul.mubr.f32.gmra.mrb[28].mxu1 %v11755_v13 }
 0x4ac   : > { %7550 = vmatprep.mubr.f32.mxu1 %v11756_v14 }
 0x4af   : > { %7551 = vmatmul.mubr.f32.gmra.mrb[30].mxu1 %v11757_v19 }
 0x4b0   : > { %7555 = vmatprep.mubr.f32.mxu1 %v10432_v7 }
 0x4b3   : > { %7556 = vmatmul.mubr.f32.vlgmr.msra.gmra.mrb[0].mxu1 %v10445_v36 }
 0x4b4   : > { %7604 = vmatpush3.msra.mxu1 %v11710_v0  ;;  %7558 = vmatprep.mubr.f32.mxu1 %v11709_v53  ;;  %v11765_v0 = vld [vmem:[#allocation44_spill] sm:$0xff] }
 0x4b7   : > { %7559 = vmatmul.mubr.f32.gmra.mrb[2].mxu1 %v11711_v2 }
 0x4b8   : > { %7561 = vmatprep.mubr.f32.mxu1 %v11712_v4 }
 0x4bb   : > { %7562 = vmatmul.mubr.f32.gmra.mrb[4].mxu1 %v10623_v50 }
 0x4bc   : > { %7564 = vmatprep.mubr.f32.mxu1 %v10639_v44 }
 0x4bf   : > { %7565 = vmatmul.mubr.f32.gmra.mrb[6].mxu1 %v10727_v34 }
 0x4c0   : > { %7567 = vmatprep.mubr.f32.mxu1 %v10644_v61 }
 0x4c3   : > { %7568 = vmatmul.mubr.f32.gmra.mrb[8].mxu1 %v10737_v42 }
 0x4c4   : > { %7570 = vmatprep.mubr.f32.mxu1 %v10658_v23 }
 0x4c7   : > { %7571 = vmatmul.mubr.f32.gmra.mrb[10].mxu1 %v10751_v5 }
 0x4c8   : > { %7573 = vmatprep.mubr.f32.mxu1 %v10677_v38 }
 0x4cb   : > { %7574 = vmatmul.mubr.f32.gmra.mrb[12].mxu1 %v10764_v10 }
 0x4cc   : > { %7576 = vmatprep.mubr.f32.mxu1 %v10680_v45 }
 0x4cf   : > { %7577 = vmatmul.mubr.f32.gmra.mrb[14].mxu1 %v10776_v47 }
 0x4d0   : > { %7579 = vmatprep.mubr.f32.mxu1 %v10723_v3 }
 0x4d3   : > { %7580 = vmatmul.mubr.f32.gmra.mrb[16].mxu1 %v10854_v28 }
 0x4d4   : > { %7582 = vmatprep.mubr.f32.mxu1 %v10796_v58 }
 0x4d7   : > { %7583 = vmatmul.mubr.f32.gmra.mrb[18].mxu1 %v10871_v56 }
 0x4d8   : > { %7585 = vmatprep.mubr.f32.mxu1 %v10805_v8 }
 0x4db   : > { %7586 = vmatmul.mubr.f32.gmra.mrb[20].mxu1 %v10882_v63 }
 0x4dc   : > { %7588 = vmatprep.mubr.f32.mxu1 %v10823_v55 }
 0x4df   : > { %7589 = vmatmul.mubr.f32.gmra.mrb[22].mxu1 %v10897_v31 }
 0x4e0   : > { %7591 = vmatprep.mubr.f32.mxu1 %v11758_v35 }
 0x4e3   : > { %7592 = vmatmul.mubr.f32.gmra.mrb[24].mxu1 %v11759_v33 }
 0x4e4   : > { %7594 = vmatprep.mubr.f32.mxu1 %v11760_v57 }
 0x4e7   : > { %7595 = vmatmul.mubr.f32.gmra.mrb[26].mxu1 %v11761_v29 }
 0x4e8   : > { %7597 = vmatprep.mubr.f32.mxu1 %v11762_v25 }
 0x4eb   : > { %7598 = vmatmul.mubr.f32.gmra.mrb[28].mxu1 %v11763_v37 }
 0x4ec   : > { %7600 = vmatprep.mubr.f32.mxu1 %v11764_v18 }
 0x4ef   : > { %7601 = vmatmul.mubr.f32.gmra.mrb[30].mxu1 %v11765_v0 }
 0x4f0   : > { %7605 = vmatprep.mubr.f32.mxu1 %v10432_v7  ;;  %v11191_v7 = vld [vmem:[%s11343_s7] ss:$0 sm:$0xff] }
 0x4f3   : > { %7606 = vmatmul.mubr.f32.vlgmr.msra.gmra.mrb[0].mxu1 %v10445_v36 }
 0x4f4   : > { %7608 = vmatprep.mubr.f32.mxu1 %v11709_v53 }
 0x4f7   : > { %7609 = vmatmul.mubr.f32.gmra.mrb[2].mxu1 %v11711_v2 }
 0x4f8   : > { %7611 = vmatprep.mubr.f32.mxu1 %v11712_v4 }
 0x4fb   : > { %7612 = vmatmul.mubr.f32.gmra.mrb[4].mxu1 %v10623_v50  ;;  %v11196_v50 = vld [vmem:[%s11344_s8] ss:$0 sm:$0xff] }
 0x4fc   : > { %7614 = vmatprep.mubr.f32.mxu1 %v10639_v44 }
 0x4ff   : > { %7615 = vmatmul.mubr.f32.gmra.mrb[6].mxu1 %v10727_v34 }
 0x500   : > { %7617 = vmatprep.mubr.f32.mxu1 %v10644_v61 }
 0x503   : > { %7618 = vmatmul.mubr.f32.gmra.mrb[8].mxu1 %v10737_v42 }
 0x504   : > { %7620 = vmatprep.mubr.f32.mxu1 %v10658_v23 }
 0x507   : > { %7621 = vmatmul.mubr.f32.gmra.mrb[10].mxu1 %v10751_v5 }
 0x508   : > { %7623 = vmatprep.mubr.f32.mxu1 %v10677_v38 }
 0x50b   : > { %7624 = vmatmul.mubr.f32.gmra.mrb[12].mxu1 %v10764_v10 }
 0x50c   : > { %7626 = vmatprep.mubr.f32.mxu1 %v10680_v45 }
 0x50f   : > { %7627 = vmatmul.mubr.f32.gmra.mrb[14].mxu1 %v10776_v47 }
 0x510   : > { %7629 = vmatprep.mubr.f32.mxu1 %v10723_v3 }
 0x513   : > { %7630 = vmatmul.mubr.f32.gmra.mrb[16].mxu1 %v10854_v28 }
 0x514   : > { %7632 = vmatprep.mubr.f32.mxu1 %v10796_v58 }
 0x517   : > { %7633 = vmatmul.mubr.f32.gmra.mrb[18].mxu1 %v10871_v56 }
 0x518   : > { %7635 = vmatprep.mubr.f32.mxu1 %v10805_v8 }
 0x51b   : > { %7636 = vmatmul.mubr.f32.gmra.mrb[20].mxu1 %v10882_v63 }
 0x51c   : > { %7638 = vmatprep.mubr.f32.mxu1 %v10823_v55 }
 0x51f   : > { %7639 = vmatmul.mubr.f32.gmra.mrb[22].mxu1 %v10897_v31 }
 0x520   : > { %7641 = vmatprep.mubr.f32.mxu1 %v11758_v35 }
 0x523   : > { %7642 = vmatmul.mubr.f32.gmra.mrb[24].mxu1 %v11759_v33 }
 0x524   : > { %7644 = vmatprep.mubr.f32.mxu1 %v11760_v57 }
 0x527   : > { %7645 = vmatmul.mubr.f32.gmra.mrb[26].mxu1 %v11761_v29 }
 0x528   : > { %7647 = vmatprep.mubr.f32.mxu1 %v11762_v25 }
 0x52b   : > { %7648 = vmatmul.mubr.f32.gmra.mrb[28].mxu1 %v11763_v37 }
 0x52c   : > { %7650 = vmatprep.mubr.f32.mxu1 %v11764_v18 }
 0x52f   : > { %7651 = vmatmul.mubr.f32.gmra.mrb[30].mxu1 %v11765_v0 }
 0x5c6   : > { %v7607_v36 = vpop.f32.mrb[0].mxu1 }
 0x5c7   : > { %v6452_v44 = vmul.f32 %v7607_v36, %v11191_v7  ;;  %v6254_v61 = vpop.f32.mrb[1].mxu1 }
 0x5c8   : > { %v6451_v23 = vmul.f32 %v11191_v7, %v6254_v61 }
 0x5c9   : > { %v6491_v38 = vadd.f32 %v11196_v50, %v6452_v44 }
 0x5ca   : > { %v6490_v45 = vadd.f32 %v11196_v50, %v6451_v23  ;;  %v7610_v3 = vpop.f32.mrb[2].mxu1 }
 0x5cb   : > { %6524 = vst.msk [vmem:[%s11204_s18 + $0x8] sm:$0xff] %vm6522_vm3, %v6491_v38  ;;  %v6454_v34 = vmul.f32 %v7610_v3, %v11191_v7  ;;  %v6266_v42 = vpop.f32.mrb[3].mxu1 }
 0x5cc   : > { %6523 = vst.msk [vmem:[%s11204_s18] sm:$0xff] %vm6522_vm3, %v6490_v45  ;;  %v6453_v5 = vmul.f32 %v11191_v7, %v6266_v42 }
 0x5cd   : > { %v6493_v10 = vadd.f32 %v11196_v50, %v6454_v34 }
 0x5ce   : > { %v6492_v47 = vadd.f32 %v11196_v50, %v6453_v5  ;;  %v7613_v8 = vpop.f32.mrb[4].mxu1 }
 0x5cf   : > { %6526 = vst.msk [vmem:[%s11204_s18 + $0x18] sm:$0xff] %vm6522_vm3, %v6493_v10  ;;  %v6456_v58 = vmul.f32 %v7613_v8, %v11191_v7  ;;  %v6278_v55 = vpop.f32.mrb[5].mxu1 }
 0x5d0   : > { %6525 = vst.msk [vmem:[%s11204_s18 + $0x10] sm:$0xff] %vm6522_vm3, %v6492_v47  ;;  %v6455_v31 = vmul.f32 %v11191_v7, %v6278_v55 }
 0x5d1   : > { %v6495_v28 = vadd.f32 %v11196_v50, %v6456_v58 }
 0x5d2   : > { %v6494_v56 = vadd.f32 %v11196_v50, %v6455_v31  ;;  %v7616_v63 = vpop.f32.mrb[6].mxu1 }
 0x5d3   : > { %6528 = vst.msk [vmem:[%s11204_s18 + $0x28] sm:$0xff] %vm6522_vm3, %v6495_v28  ;;  %v6458_v53 = vmul.f32 %v7616_v63, %v11191_v7  ;;  %v6290_v2 = vpop.f32.mrb[7].mxu1 }
 0x5d4   : > { %6527 = vst.msk [vmem:[%s11204_s18 + $0x20] sm:$0xff] %vm6522_vm3, %v6494_v56  ;;  %v6457_v4 = vmul.f32 %v11191_v7, %v6290_v2 }
 0x5d5   : > { %v6497_v43 = vadd.f32 %v11196_v50, %v6458_v53 }
 0x5d6   : > { %v6496_v1 = vadd.f32 %v11196_v50, %v6457_v4  ;;  %v7619_v15 = vpop.f32.mrb[8].mxu1 }
 0x5d7   : > { %6530 = vst.msk [vmem:[%s11204_s18 + $0x38] sm:$0xff] %vm6522_vm3, %v6497_v43  ;;  %v6460_v52 = vmul.f32 %v7619_v15, %v11191_v7  ;;  %v6302_v39 = vpop.f32.mrb[9].mxu1 }
 0x5d8   : > { %6529 = vst.msk [vmem:[%s11204_s18 + $0x30] sm:$0xff] %vm6522_vm3, %v6496_v1  ;;  %v6459_v6 = vmul.f32 %v11191_v7, %v6302_v39 }
 0x5d9   : > { %v6499_v17 = vadd.f32 %v11196_v50, %v6460_v52 }
 0x5da   : > { %v6498_v40 = vadd.f32 %v11196_v50, %v6459_v6  ;;  %v7622_v46 = vpop.f32.mrb[10].mxu1 }
 0x5db   : > { %6532 = vst.msk [vmem:[%s11204_s18 + $0x48] sm:$0xff] %vm6522_vm3, %v6499_v17  ;;  %v6462_v51 = vmul.f32 %v7622_v46, %v11191_v7  ;;  %v6314_v21 = vpop.f32.mrb[11].mxu1 }
 0x5dc   : > { %6531 = vst.msk [vmem:[%s11204_s18 + $0x40] sm:$0xff] %vm6522_vm3, %v6498_v40  ;;  %v6461_v41 = vmul.f32 %v11191_v7, %v6314_v21 }
 0x5dd   : > { %v6501_v16 = vadd.f32 %v11196_v50, %v6462_v51 }
 0x5de   : > { %v6500_v59 = vadd.f32 %v11196_v50, %v6461_v41  ;;  %v7625_v32 = vpop.f32.mrb[12].mxu1 }
 0x5df   : > { %6534 = vst.msk [vmem:[%s11204_s18 + $0x58] sm:$0xff] %vm6522_vm3, %v6501_v16  ;;  %v6464_v27 = vmul.f32 %v7625_v32, %v11191_v7  ;;  %v6326_v20 = vpop.f32.mrb[13].mxu1 }
 0x5e0   : > { %6533 = vst.msk [vmem:[%s11204_s18 + $0x50] sm:$0xff] %vm6522_vm3, %v6500_v59  ;;  %v6463_v11 = vmul.f32 %v11191_v7, %v6326_v20 }
 0x5e1   : > { %v6503_v54 = vadd.f32 %v11196_v50, %v6464_v27 }
 0x5e2   : > { %v6502_v60 = vadd.f32 %v11196_v50, %v6463_v11  ;;  %v7628_v49 = vpop.f32.mrb[14].mxu1 }
 0x5e3   : > { %6536 = vst.msk [vmem:[%s11204_s18 + $0x68] sm:$0xff] %vm6522_vm3, %v6503_v54  ;;  %v6466_v26 = vmul.f32 %v7628_v49, %v11191_v7  ;;  %v6338_v12 = vpop.f32.mrb[15].mxu1 }
 0x5e4   : > { %6535 = vst.msk [vmem:[%s11204_s18 + $0x60] sm:$0xff] %vm6522_vm3, %v6502_v60  ;;  %v6465_v62 = vmul.f32 %v11191_v7, %v6338_v12 }
 0x5e5   : > { %v6505_v24 = vadd.f32 %v11196_v50, %v6466_v26 }
 0x5e6   : > { %v6504_v48 = vadd.f32 %v11196_v50, %v6465_v62  ;;  %v7631_v30 = vpop.f32.mrb[16].mxu1 }
 0x5e7   : > { %6538 = vst.msk [vmem:[%s11204_s18 + $0x78] sm:$0xff] %vm6522_vm3, %v6505_v24  ;;  %v6468_v22 = vmul.f32 %v7631_v30, %v11191_v7  ;;  %v6350_v9 = vpop.f32.mrb[17].mxu1 }
 0x5e8   : > { %6537 = vst.msk [vmem:[%s11204_s18 + $0x70] sm:$0xff] %vm6522_vm3, %v6504_v48  ;;  %v6467_v13 = vmul.f32 %v11191_v7, %v6350_v9 }
 0x5e9   : > { %v6507_v14 = vadd.f32 %v11196_v50, %v6468_v22 }
 0x5ea   : > { %v6506_v19 = vadd.f32 %v11196_v50, %v6467_v13  ;;  %v7634_v35 = vpop.f32.mrb[18].mxu1 }
 0x5eb   : > { %6540 = vst.msk [vmem:[%s11204_s18 + $0x88] sm:$0xff] %vm6522_vm3, %v6507_v14  ;;  %v6470_v33 = vmul.f32 %v7634_v35, %v11191_v7  ;;  %v6362_v57 = vpop.f32.mrb[19].mxu1 }
 0x5ec   : > { %6539 = vst.msk [vmem:[%s11204_s18 + $0x80] sm:$0xff] %vm6522_vm3, %v6506_v19  ;;  %v6469_v29 = vmul.f32 %v11191_v7, %v6362_v57 }
 0x5ed   : > { %v6509_v25 = vadd.f32 %v11196_v50, %v6470_v33 }
 0x5ee   : > { %v6508_v37 = vadd.f32 %v11196_v50, %v6469_v29  ;;  %v7637_v18 = vpop.f32.mrb[20].mxu1 }
 0x5ef   : > { %6542 = vst.msk [vmem:[%s11204_s18 + $0x98] sm:$0xff] %vm6522_vm3, %v6509_v25  ;;  %v6472_v0 = vmul.f32 %v7637_v18, %v11191_v7  ;;  %v6374_v36 = vpop.f32.mrb[21].mxu1 }
 0x5f0   : > { %6541 = vst.msk [vmem:[%s11204_s18 + $0x90] sm:$0xff] %vm6522_vm3, %v6508_v37  ;;  %v6471_v44 = vmul.f32 %v11191_v7, %v6374_v36 }
 0x5f1   : > { %v6511_v61 = vadd.f32 %v11196_v50, %v6472_v0 }
 0x5f2   : > { %v6510_v23 = vadd.f32 %v11196_v50, %v6471_v44  ;;  %v7640_v38 = vpop.f32.mrb[22].mxu1 }
 0x5f3   : > { %6544 = vst.msk [vmem:[%s11204_s18 + $0xa8] sm:$0xff] %vm6522_vm3, %v6511_v61  ;;  %v6474_v45 = vmul.f32 %v7640_v38, %v11191_v7  ;;  %v6386_v3 = vpop.f32.mrb[23].mxu1 }
 0x5f4   : > { %6543 = vst.msk [vmem:[%s11204_s18 + $0xa0] sm:$0xff] %vm6522_vm3, %v6510_v23  ;;  %v6473_v34 = vmul.f32 %v11191_v7, %v6386_v3 }
 0x5f5   : > { %v6513_v42 = vadd.f32 %v11196_v50, %v6474_v45 }
 0x5f6   : > { %v6512_v5 = vadd.f32 %v11196_v50, %v6473_v34  ;;  %v7643_v10 = vpop.f32.mrb[24].mxu1 }
 0x5f7   : > { %6546 = vst.msk [vmem:[%s11204_s18 + $0xb8] sm:$0xff] %vm6522_vm3, %v6513_v42  ;;  %v6476_v47 = vmul.f32 %v7643_v10, %v11191_v7  ;;  %v6398_v8 = vpop.f32.mrb[25].mxu1 }
 0x5f8   : > { %6545 = vst.msk [vmem:[%s11204_s18 + $0xb0] sm:$0xff] %vm6522_vm3, %v6512_v5  ;;  %v6475_v58 = vmul.f32 %v11191_v7, %v6398_v8 }
 0x5f9   : > { %v6515_v55 = vadd.f32 %v11196_v50, %v6476_v47 }
 0x5fa   : > { %v6514_v31 = vadd.f32 %v11196_v50, %v6475_v58  ;;  %v7646_v28 = vpop.f32.mrb[26].mxu1 }
 0x5fb   : > { %6548 = vst.msk [vmem:[%s11204_s18 + $0xc8] sm:$0xff] %vm6522_vm3, %v6515_v55  ;;  %v6478_v56 = vmul.f32 %v7646_v28, %v11191_v7  ;;  %v6410_v63 = vpop.f32.mrb[27].mxu1 }
 0x5fc   : > { %6547 = vst.msk [vmem:[%s11204_s18 + $0xc0] sm:$0xff] %vm6522_vm3, %v6514_v31  ;;  %v6477_v53 = vmul.f32 %v11191_v7, %v6410_v63 }
 0x5fd   : > { %v6517_v2 = vadd.f32 %v11196_v50, %v6478_v56 }
 0x5fe   : > { %v6516_v4 = vadd.f32 %v11196_v50, %v6477_v53  ;;  %v7649_v43 = vpop.f32.mrb[28].mxu1 }
 0x5ff   : > { %6550 = vst.msk [vmem:[%s11204_s18 + $0xd8] sm:$0xff] %vm6522_vm3, %v6517_v2  ;;  %v6480_v1 = vmul.f32 %v7649_v43, %v11191_v7  ;;  %v6422_v15 = vpop.f32.mrb[29].mxu1 }
 0x600   : > { %6549 = vst.msk [vmem:[%s11204_s18 + $0xd0] sm:$0xff] %vm6522_vm3, %v6516_v4  ;;  %v6479_v52 = vmul.f32 %v11191_v7, %v6422_v15 }
 0x601   : > { %v6519_v39 = vadd.f32 %v11196_v50, %v6480_v1 }
 0x602   : > { %v6518_v6 = vadd.f32 %v11196_v50, %v6479_v52  ;;  %v7652_v17 = vpop.f32.mrb[30].mxu1 }
 0x603   : > { %6552 = vst.msk [vmem:[%s11204_s18 + $0xe8] sm:$0xff] %vm6522_vm3, %v6519_v39  ;;  %v6482_v40 = vmul.f32 %v7652_v17, %v11191_v7  ;;  %v6434_v46 = vpop.f32.mrb[31].mxu1 }
 0x604   : > { %6551 = vst.msk [vmem:[%s11204_s18 + $0xe0] sm:$0xff] %vm6522_vm3, %v6518_v6  ;;  %v6481_v51 = vmul.f32 %v11191_v7, %v6434_v46 }
 0x605   : > { %v6521_v21 = vadd.f32 %v11196_v50, %v6482_v40 }
 0x606   : > { %v6520_v41 = vadd.f32 %v11196_v50, %v6481_v51 }
 0x607   : > { %6554 = vst.msk [vmem:[%s11204_s18 + $0xf8] sm:$0xff] %vm6522_vm3, %v6521_v21 }
 0x608   : > { %6553 = vst.msk [vmem:[%s11204_s18 + $0xf0] sm:$0xff] %vm6522_vm3, %v6520_v41 }
 0x609 PF: > { %s19_s30 = sadd.s32 1, %s8008_s30  }
 0x60a   : > { %p16_p4 = scmp.ge.s32.totalorder %s19_s30, 4  }
 0x60c   :  { %18 = sbr.rel (!%p16_p4) target bundleno = 1 (0x1), region = 108 }

</bundles_post_ra>
